<compile_context>
chip_gen: v7x
topology: tpu7x:2x2x1
jax: 0.10.0
libtpu: 0.0.40
codegen_flags: <defaults>
</compile_context>

<pallas_src>
import jax
import jax.numpy as jnp
from jax.experimental import pallas as pl
from jax.experimental.pallas import tpu as pltpu


def _round_up(n: int, m: int) -> int:
    return ((n + m - 1) // m) * m


def _make_kernel(num_layers: int, seq_len: int, tile_b: int, h_pad: int,
                 nsub: int, chunk_t: int, unroll, mxu_dtype):
    """Kernel body for fixed (static) config."""
    sub_b = tile_b // nsub

    def kernel(*refs):
        # refs layout:
        #   [x_ref,
        #    w_ih_T_0, w_hh_T_0, ..., w_ih_T_{L-1}, w_hh_T_{L-1},
        #    fc1_T, fc2_T,
        #    out_ref,
        #    seq_ref (scratch)]
        x_ref = refs[0]
        w_refs = refs[1:1 + 2 * num_layers]
        fc1_ref = refs[1 + 2 * num_layers]            # (H_pad, FC_pad)
        fc2_ref = refs[2 + 2 * num_layers]            # (FC_pad, OUT_pad)
        out_ref = refs[3 + 2 * num_layers]            # (TILE_B, OUT_pad)
        seq_ref = refs[4 + 2 * num_layers]            # (T, TILE_B, H_pad) f32

        # ---- layer-0 input projection, chunked over time (streams VMEM) ----
        w_ih0 = w_refs[0][...]                        # (D_pad, H_pad), pre-transposed
        c = 0
        while c < seq_len:                            # static trace-time loop
            ct = min(chunk_t, seq_len - c)
            xin = x_ref[pl.ds(c, ct), :, :]           # (ct, TILE_B, D_pad), mxu dtype
            din = xin.shape[-1]
            proj = jnp.dot(xin.reshape(ct * tile_b, din), w_ih0,
                           preferred_element_type=jnp.float32)
            seq_ref[pl.ds(c, ct), :, :] = proj.reshape(ct, tile_b, h_pad)
            c += ct

        last_hs = None
        for layer in range(num_layers):               # static unroll over layers
            w_hh_t = w_refs[2 * layer + 1][...]       # (H_pad, H_pad), pre-transposed
            fuse_next = layer + 1 < num_layers
            w_ih_next = w_refs[2 * (layer + 1)][...] if fuse_next else None

            def step(t, hs, w_hh_t=w_hh_t, w_ih_next=w_ih_next,
                     fuse_next=fuse_next):
                # seq_ref[t] holds this layer's pre-computed input projection.
                row = seq_ref[t]                      # (TILE_B, H_pad) f32
                new_hs = []
                # Independent sub-tile matmuls break the h-chain latency:
                # consecutive MXU pushes are data-independent.
                for s in range(nsub):
                    xr = row[s * sub_b:(s + 1) * sub_b]
                    pre = xr + jnp.dot(hs[s].astype(mxu_dtype), w_hh_t,
                                       preferred_element_type=jnp.float32)
                    new_hs.append(jnp.maximum(pre, 0.0))  # relu, f32 VPU
                if fuse_next:
                    # Fused next-layer input projection: depends only on h_t,
                    # fills MXU bubbles created by the serial recurrence.
                    projs = [jnp.dot(h.astype(mxu_dtype), w_ih_next,
                                     preferred_element_type=jnp.float32)
                             for h in new_hs]
                    seq_ref[t] = (projs[0] if nsub == 1
                                  else jnp.concatenate(projs, axis=0))
                return tuple(new_hs)

            h0 = tuple(jnp.zeros((sub_b, h_pad), jnp.float32)
                       for _ in range(nsub))
            last_hs = jax.lax.fori_loop(0, seq_len, step, h0, unroll=unroll)

        # MLP head on the top layer's final hidden state, per sub-tile
        # (independent matmuls, lane-dense 128-wide output stores).
        fc1_t = fc1_ref[...]
        fc2_t = fc2_ref[...]
        for s in range(nsub):
            z = jnp.maximum(
                jnp.dot(last_hs[s].astype(mxu_dtype), fc1_t,
                        preferred_element_type=jnp.float32), 0.0)
            out_ref[pl.ds(s * sub_b, sub_b), :] = jnp.dot(
                z.astype(mxu_dtype), fc2_t, preferred_element_type=jnp.float32)

    return kernel


def mnist_rnn_forward(x_btd, rnn_weights, w_fc1, w_fc2,
                      mxu_dtype=jnp.bfloat16, max_tile_b=256):
    """x_btd: (B, T, input_dim) float32, batch_first like the PyTorch module.

    rnn_weights: list of (w_ih: (H, Din), w_hh: (H, H)) in PyTorch convention.
    w_fc1: (fc_dim, H), w_fc2: (out_dim, fc_dim).
    mxu_dtype: dtype for MXU operands (bfloat16 default — native on all of
               v5e/v6e/v7x); accumulation and elementwise math stay float32.
    """
    B, T, D = x_btd.shape
    num_layers = len(rnn_weights)
    H = rnn_weights[0][0].shape[0]
    FC = w_fc1.shape[0]
    OUT = w_fc2.shape[0]

    # Padded, (8,128)-aligned working shapes.
    D_pad = _round_up(D, 128)
    H_pad = _round_up(H, 128)
    FC_pad = _round_up(FC, 128)
    OUT_pad = _round_up(OUT, 128)
    B_pad = _round_up(B, 8)
    tile_b = min(B_pad, max(8, _round_up(max_tile_b, 8)))   # batch tile per step
    B_pad = _round_up(B_pad, tile_b)
    n_tiles = B_pad // tile_b
    # TODO(synk): on v7x (2 TCs), when n_tiles == 1 and B_pad >= 16, halve
    # tile_b so the "parallel" grid axis can feed both TensorCores.

    # Interleave 2 independent batch sub-tiles when the tile is big enough.
    nsub = 2 if (tile_b >= 16 and tile_b % 16 == 0) else 1
    # Layer-0 projection chunk (timesteps per MXU call), ~512 rows per chunk.
    chunk_t = max(1, min(T, 8, 512 // tile_b))
    unroll = True if T <= 32 else 8

    # Time-major, zero-padded input built directly in the MXU dtype.
    x_tbd = jnp.transpose(x_btd, (1, 0, 2)).astype(mxu_dtype)
    x_p = jnp.zeros((T, B_pad, D_pad), mxu_dtype).at[:, :B, :D].set(x_tbd)

    # Pre-transposed, zero-padded weights (kernel never transposes anything).
    # Zero padding keeps padded lanes/rows exactly zero through relu/matmuls.
    weight_arrays = []
    for layer, (w_ih, w_hh) in enumerate(rnn_weights):
        din_pad = D_pad if layer == 0 else H_pad
        din = w_ih.shape[1]
        w_ih_t = (jnp.zeros((din_pad, H_pad), mxu_dtype)
                  .at[:din, :H].set(w_ih.T.astype(mxu_dtype)))
        w_hh_t = (jnp.zeros((H_pad, H_pad), mxu_dtype)
                  .at[:H, :H].set(w_hh.T.astype(mxu_dtype)))
        weight_arrays.extend([w_ih_t, w_hh_t])

    fc1_t = (jnp.zeros((H_pad, FC_pad), mxu_dtype)
             .at[:H, :FC].set(w_fc1.T.astype(mxu_dtype)))
    fc2_t = (jnp.zeros((FC_pad, OUT_pad), mxu_dtype)
             .at[:FC, :OUT].set(w_fc2.T.astype(mxu_dtype)))
    weight_arrays += [fc1_t, fc2_t]

    kernel = _make_kernel(num_layers, T, tile_b, H_pad, nsub, chunk_t,
                          unroll, mxu_dtype)

    # Batch-tiled x / out; weights resident (index_map always block 0).
    in_specs = [pl.BlockSpec((T, tile_b, D_pad), lambda b: (0, b, 0))]
    for w in weight_arrays:
        in_specs.append(pl.BlockSpec(w.shape, lambda b: (0, 0)))
    # TODO(synk): weights never change block index; single-buffering them
    # would halve their VMEM footprint at large H_pad (matters on v7x).

    # Explicit scoped-VMEM budget with headroom (v7x has only 64 MiB physical).
    itemsize = jnp.dtype(mxu_dtype).itemsize
    vmem_needed = (T * tile_b * H_pad * 4                       # seq scratch
                   + 2 * T * tile_b * D_pad * itemsize          # x (dbl-buf)
                   + 2 * sum(int(w.size) * itemsize for w in weight_arrays)
                   + 2 * tile_b * OUT_pad * 4)                  # out (dbl-buf)
    vmem_limit = int(min(max(2 * vmem_needed + (4 << 20), 32 << 20), 64 << 20))

    out = pl.pallas_call(
        kernel,
        out_shape=jax.ShapeDtypeStruct((B_pad, OUT_pad), jnp.float32),
        grid_spec=pltpu.PrefetchScalarGridSpec(
            num_scalar_prefetch=0,
            grid=(n_tiles,),
            in_specs=in_specs,
            out_specs=pl.BlockSpec((tile_b, OUT_pad), lambda b: (b, 0)),
            scratch_shapes=[pltpu.VMEM((T, tile_b, H_pad), jnp.float32)],
        ),
        compiler_params=pltpu.CompilerParams(
            dimension_semantics=("parallel",),   # batch tiles split across TCs
            vmem_limit_bytes=vmem_limit),
    )(x_p, *weight_arrays)

    return out[:B, :OUT]


def _reference_forward(x_btd, rnn_weights, w_fc1, w_fc2):
    """Pure-JAX f32 reference mirroring torch semantics (sanity check)."""
    B, T, _ = x_btd.shape
    seq = x_btd
    for (w_ih, w_hh) in rnn_weights:
        H = w_ih.shape[0]
        h = jnp.zeros((B, H), jnp.float32)
        outs = []
        for t in range(T):
            h = jnp.maximum(seq[:, t, :] @ w_ih.T + h @ w_hh.T, 0.0)
            outs.append(h)
        seq = jnp.stack(outs, axis=1)
    last = seq[:, -1, :]
    return jnp.maximum(last @ w_fc1.T, 0.0) @ w_fc2.T


if __name__ == "__main__":
    # Small shapes consistent with the module's forward.
    input_dim, fc_dim, rnn_hidden_dim, output_dim, num_layers = 16, 32, 32, 10, 2
    B, T = 32, 12   # exercises 2 interleaved sub-tiles + chunked projection

    key = jax.random.PRNGKey(0)
    keys = jax.random.split(key, 2 * num_layers + 3)

    # Deterministic init, matching PyTorch's U(-1/sqrt(H), 1/sqrt(H)) convention.
    k_rnn = 1.0 / jnp.sqrt(jnp.float32(rnn_hidden_dim))
    rnn_weights = []
    for layer in range(num_layers):
        din = input_dim if layer == 0 else rnn_hidden_dim
        w_ih = jax.random.uniform(keys[2 * layer], (rnn_hidden_dim, din),
                                  jnp.float32, -k_rnn, k_rnn)
        w_hh = jax.random.uniform(keys[2 * layer + 1],
                                  (rnn_hidden_dim, rnn_hidden_dim),
                                  jnp.float32, -k_rnn, k_rnn)
        rnn_weights.append((w_ih, w_hh))

    k1 = 1.0 / jnp.sqrt(jnp.float32(rnn_hidden_dim))
    k2 = 1.0 / jnp.sqrt(jnp.float32(fc_dim))
    w_fc1 = jax.random.uniform(keys[-3], (fc_dim, rnn_hidden_dim),
                               jnp.float32, -k1, k1)
    w_fc2 = jax.random.uniform(keys[-2], (output_dim, fc_dim),
                               jnp.float32, -k2, k2)

    x = jax.random.normal(keys[-1], (B, T, input_dim), jnp.float32)

    ref = _reference_forward(x, rnn_weights, w_fc1, w_fc2)

    # f32 MXU operands: tight check against the f32 torch-equivalent reference.
    logits_f32 = jax.block_until_ready(
        mnist_rnn_forward(x, rnn_weights, w_fc1, w_fc2,
                          mxu_dtype=jnp.float32))
    assert logits_f32.shape == (B, output_dim)
    assert jnp.allclose(logits_f32, ref, atol=1e-4, rtol=1e-4)

    # Default path: bf16 MXU operands, f32 accumulation — loose check.
    logits_bf16 = jax.block_until_ready(
        mnist_rnn_forward(x, rnn_weights, w_fc1, w_fc2))
    assert logits_bf16.shape == (B, output_dim)
    assert jnp.allclose(logits_bf16, ref, atol=7e-2, rtol=7e-2)

    # Multi-tile grid path (2 batch tiles), f32, tight check.
    logits_tiled = jax.block_until_ready(
        mnist_rnn_forward(x, rnn_weights, w_fc1, w_fc2,
                          mxu_dtype=jnp.float32, max_tile_b=16))
    assert logits_tiled.shape == (B, output_dim)
    assert jnp.allclose(logits_tiled, ref, atol=1e-4, rtol=1e-4)

    print("KERNEL_OK")
</pallas_src>

<mosaic_0001>
module attributes {stable_mosaic.version = 11 : i64} {
  func.func @kernel(%arg0: i32, %arg1: memref<12x32x128xf32, #tpu.memory_space<vmem>>, %arg2: memref<128x128xf32, #tpu.memory_space<vmem>>, %arg3: memref<128x128xf32, #tpu.memory_space<vmem>>, %arg4: memref<128x128xf32, #tpu.memory_space<vmem>>, %arg5: memref<128x128xf32, #tpu.memory_space<vmem>>, %arg6: memref<128x128xf32, #tpu.memory_space<vmem>>, %arg7: memref<128x128xf32, #tpu.memory_space<vmem>>, %arg8: memref<32x128xf32, #tpu.memory_space<vmem>>, %arg9: memref<12x32x128xf32, #tpu.memory_space<vmem>>) attributes {dimension_semantics = [#tpu.dimension_semantics<parallel>], iteration_bounds = array<i64: 1>, scalar_prefetch = 0 : i64, scratch_operands = 1 : i64, tpu.core_type = #tpu.core_type<tc>, window_params = [{transform_indices = @transform_0, window_bounds = array<i64: 12, 32, 128>}, {pipeline_mode = #tpu.pipeline_mode<synchronous>, transform_indices = @transform_1, window_bounds = array<i64: 128, 128>}, {pipeline_mode = #tpu.pipeline_mode<synchronous>, transform_indices = @transform_2, window_bounds = array<i64: 128, 128>}, {pipeline_mode = #tpu.pipeline_mode<synchronous>, transform_indices = @transform_3, window_bounds = array<i64: 128, 128>}, {pipeline_mode = #tpu.pipeline_mode<synchronous>, transform_indices = @transform_4, window_bounds = array<i64: 128, 128>}, {pipeline_mode = #tpu.pipeline_mode<synchronous>, transform_indices = @transform_5, window_bounds = array<i64: 128, 128>}, {pipeline_mode = #tpu.pipeline_mode<synchronous>, transform_indices = @transform_6, window_bounds = array<i64: 128, 128>}, {transform_indices = @transform_7, window_bounds = array<i64: 32, 128>}]} {
    %c0 = arith.constant 0 : index
    %c0_0 = arith.constant 0 : index
    %0 = vector.load %arg2[%c0, %c0_0] : memref<128x128xf32, #tpu.memory_space<vmem>>, vector<128x128xf32>
    %c0_1 = arith.constant 0 : index
    %c0_2 = arith.constant 0 : index
    %c0_3 = arith.constant 0 : index
    %1 = vector.load %arg1[%c0_1, %c0_2, %c0_3] : memref<12x32x128xf32, #tpu.memory_space<vmem>>, vector<8x32x128xf32>
    %2 = vector.shape_cast %1 : vector<8x32x128xf32> to vector<256x128xf32>
    %cst = arith.constant dense<0.000000e+00> : vector<256x128xf32>
    %3 = tpu.matmul %2, %0, %cst {dimension_numbers = #tpu.dot_dimension_numbers<[1], [0], [0], [1], [0, 0, 1, 1], [], []>} : vector<256x128xf32>, vector<128x128xf32>, vector<256x128xf32> -> vector<256x128xf32>
    %4 = vector.shape_cast %3 : vector<256x128xf32> to vector<8x32x128xf32>
    %c0_4 = arith.constant 0 : index
    %c0_5 = arith.constant 0 : index
    %c0_6 = arith.constant 0 : index
    %5 = vector.load %arg9[%c0_4, %c0_5, %c0_6] : memref<12x32x128xf32, #tpu.memory_space<vmem>>, vector<8x32x128xf32>
    tpu.vector_store %arg9[%c0_4, %c0_5, %c0_6], %4 {strides = array<i32>} : memref<12x32x128xf32, #tpu.memory_space<vmem>>, vector<8x32x128xf32>,
    %c8 = arith.constant 8 : index
    %c0_7 = arith.constant 0 : index
    %c0_8 = arith.constant 0 : index
    %6 = vector.load %arg1[%c8, %c0_7, %c0_8] : memref<12x32x128xf32, #tpu.memory_space<vmem>>, vector<4x32x128xf32>
    %7 = vector.shape_cast %6 : vector<4x32x128xf32> to vector<128x128xf32>
    %cst_9 = arith.constant dense<0.000000e+00> : vector<128x128xf32>
    %8 = tpu.matmul %7, %0, %cst_9 {dimension_numbers = #tpu.dot_dimension_numbers<[1], [0], [0], [1], [0, 0, 1, 1], [], []>} : vector<128x128xf32>, vector<128x128xf32>, vector<128x128xf32> -> vector<128x128xf32>
    %9 = vector.shape_cast %8 : vector<128x128xf32> to vector<4x32x128xf32>
    %c8_10 = arith.constant 8 : index
    %c0_11 = arith.constant 0 : index
    %c0_12 = arith.constant 0 : index
    %10 = vector.load %arg9[%c8_10, %c0_11, %c0_12] : memref<12x32x128xf32, #tpu.memory_space<vmem>>, vector<4x32x128xf32>
    tpu.vector_store %arg9[%c8_10, %c0_11, %c0_12], %9 {strides = array<i32>} : memref<12x32x128xf32, #tpu.memory_space<vmem>>, vector<4x32x128xf32>,
    %c0_13 = arith.constant 0 : index
    %c0_14 = arith.constant 0 : index
    %11 = vector.load %arg3[%c0_13, %c0_14] : memref<128x128xf32, #tpu.memory_space<vmem>>, vector<128x128xf32>
    %c0_15 = arith.constant 0 : index
    %c0_16 = arith.constant 0 : index
    %12 = vector.load %arg4[%c0_15, %c0_16] : memref<128x128xf32, #tpu.memory_space<vmem>>, vector<128x128xf32>
    %cst_17 = arith.constant 0.000000e+00 : f32
    %13 = vector.broadcast %cst_17 : f32 to vector<16x128xf32>
    %cst_18 = arith.constant 0.000000e+00 : f32
    %14 = vector.broadcast %cst_18 : f32 to vector<16x128xf32>
    %c0_i32 = arith.constant 0 : i32
    %15 = arith.index_cast %c0_i32 : i32 to index
    %c0_19 = arith.constant 0 : index
    %c0_20 = arith.constant 0 : index
    %16 = vector.load %arg9[%15, %c0_19, %c0_20] : memref<12x32x128xf32, #tpu.memory_space<vmem>>, vector<1x32x128xf32>
    %17 = vector.shape_cast %16 : vector<1x32x128xf32> to vector<32x128xf32>
    %18 = vector.extract_strided_slice %17 {offsets = [0, 0], sizes = [16, 128], strides = [1, 1]} : vector<32x128xf32> to vector<16x128xf32>
    %cst_21 = arith.constant dense<0.000000e+00> : vector<16x128xf32>
    %19 = tpu.matmul %13, %11, %cst_21 {dimension_numbers = #tpu.dot_dimension_numbers<[1], [0], [0], [1], [0, 0, 1, 1], [], []>} : vector<16x128xf32>, vector<128x128xf32>, vector<16x128xf32> -> vector<16x128xf32>
    %20 = arith.addf %18, %19 : vector<16x128xf32>
    %cst_22 = arith.constant 0.000000e+00 : f32
    %21 = vector.broadcast %cst_22 : f32 to vector<16x128xf32>
    %22 = arith.maximumf %20, %21 : vector<16x128xf32>
    %23 = vector.extract_strided_slice %17 {offsets = [16, 0], sizes = [16, 128], strides = [1, 1]} : vector<32x128xf32> to vector<16x128xf32>
    %cst_23 = arith.constant dense<0.000000e+00> : vector<16x128xf32>
    %24 = tpu.matmul %14, %11, %cst_23 {dimension_numbers = #tpu.dot_dimension_numbers<[1], [0], [0], [1], [0, 0, 1, 1], [], []>} : vector<16x128xf32>, vector<128x128xf32>, vector<16x128xf32> -> vector<16x128xf32>
    %25 = arith.addf %23, %24 : vector<16x128xf32>
    %cst_24 = arith.constant 0.000000e+00 : f32
    %26 = vector.broadcast %cst_24 : f32 to vector<16x128xf32>
    %27 = arith.maximumf %25, %26 : vector<16x128xf32>
    %cst_25 = arith.constant dense<0.000000e+00> : vector<16x128xf32>
    %28 = tpu.matmul %22, %12, %cst_25 {dimension_numbers = #tpu.dot_dimension_numbers<[1], [0], [0], [1], [0, 0, 1, 1], [], []>} : vector<16x128xf32>, vector<128x128xf32>, vector<16x128xf32> -> vector<16x128xf32>
    %cst_26 = arith.constant dense<0.000000e+00> : vector<16x128xf32>
    %29 = tpu.matmul %27, %12, %cst_26 {dimension_numbers = #tpu.dot_dimension_numbers<[1], [0], [0], [1], [0, 0, 1, 1], [], []>} : vector<16x128xf32>, vector<128x128xf32>, vector<16x128xf32> -> vector<16x128xf32>
    %30 = tpu.concatenate %28, %29 in 0 : vector<16x128xf32>, vector<16x128xf32> -> vector<32x128xf32>
    %31 = arith.index_cast %c0_i32 : i32 to index
    %c0_27 = arith.constant 0 : index
    %c0_28 = arith.constant 0 : index
    %32 = vector.load %arg9[%31, %c0_27, %c0_28] : memref<12x32x128xf32, #tpu.memory_space<vmem>>, vector<1x32x128xf32>
    %33 = vector.shape_cast %32 : vector<1x32x128xf32> to vector<32x128xf32>
    %34 = vector.shape_cast %30 : vector<32x128xf32> to vector<1x32x128xf32>
    tpu.vector_store %arg9[%31, %c0_27, %c0_28], %34 {strides = array<i32>} : memref<12x32x128xf32, #tpu.memory_space<vmem>>, vector<1x32x128xf32>,
    %c1_i32 = arith.constant 1 : i32
    %35 = arith.index_cast %c1_i32 : i32 to index
    %c0_29 = arith.constant 0 : index
    %c0_30 = arith.constant 0 : index
    %36 = vector.load %arg9[%35, %c0_29, %c0_30] : memref<12x32x128xf32, #tpu.memory_space<vmem>>, vector<1x32x128xf32>
    %37 = vector.shape_cast %36 : vector<1x32x128xf32> to vector<32x128xf32>
    %38 = vector.extract_strided_slice %37 {offsets = [0, 0], sizes = [16, 128], strides = [1, 1]} : vector<32x128xf32> to vector<16x128xf32>
    %cst_31 = arith.constant dense<0.000000e+00> : vector<16x128xf32>
    %39 = tpu.matmul %22, %11, %cst_31 {dimension_numbers = #tpu.dot_dimension_numbers<[1], [0], [0], [1], [0, 0, 1, 1], [], []>} : vector<16x128xf32>, vector<128x128xf32>, vector<16x128xf32> -> vector<16x128xf32>
    %40 = arith.addf %38, %39 : vector<16x128xf32>
    %cst_32 = arith.constant 0.000000e+00 : f32
    %41 = vector.broadcast %cst_32 : f32 to vector<16x128xf32>
    %42 = arith.maximumf %40, %41 : vector<16x128xf32>
    %43 = vector.extract_strided_slice %37 {offsets = [16, 0], sizes = [16, 128], strides = [1, 1]} : vector<32x128xf32> to vector<16x128xf32>
    %cst_33 = arith.constant dense<0.000000e+00> : vector<16x128xf32>
    %44 = tpu.matmul %27, %11, %cst_33 {dimension_numbers = #tpu.dot_dimension_numbers<[1], [0], [0], [1], [0, 0, 1, 1], [], []>} : vector<16x128xf32>, vector<128x128xf32>, vector<16x128xf32> -> vector<16x128xf32>
    %45 = arith.addf %43, %44 : vector<16x128xf32>
    %cst_34 = arith.constant 0.000000e+00 : f32
    %46 = vector.broadcast %cst_34 : f32 to vector<16x128xf32>
    %47 = arith.maximumf %45, %46 : vector<16x128xf32>
    %cst_35 = arith.constant dense<0.000000e+00> : vector<16x128xf32>
    %48 = tpu.matmul %42, %12, %cst_35 {dimension_numbers = #tpu.dot_dimension_numbers<[1], [0], [0], [1], [0, 0, 1, 1], [], []>} : vector<16x128xf32>, vector<128x128xf32>, vector<16x128xf32> -> vector<16x128xf32>
    %cst_36 = arith.constant dense<0.000000e+00> : vector<16x128xf32>
    %49 = tpu.matmul %47, %12, %cst_36 {dimension_numbers = #tpu.dot_dimension_numbers<[1], [0], [0], [1], [0, 0, 1, 1], [], []>} : vector<16x128xf32>, vector<128x128xf32>, vector<16x128xf32> -> vector<16x128xf32>
    %50 = tpu.concatenate %48, %49 in 0 : vector<16x128xf32>, vector<16x128xf32> -> vector<32x128xf32>
    %51 = arith.index_cast %c1_i32 : i32 to index
    %c0_37 = arith.constant 0 : index
    %c0_38 = arith.constant 0 : index
    %52 = vector.load %arg9[%51, %c0_37, %c0_38] : memref<12x32x128xf32, #tpu.memory_space<vmem>>, vector<1x32x128xf32>
    %53 = vector.shape_cast %52 : vector<1x32x128xf32> to vector<32x128xf32>
    %54 = vector.shape_cast %50 : vector<32x128xf32> to vector<1x32x128xf32>
    tpu.vector_store %arg9[%51, %c0_37, %c0_38], %54 {strides = array<i32>} : memref<12x32x128xf32, #tpu.memory_space<vmem>>, vector<1x32x128xf32>,
    %c2_i32 = arith.constant 2 : i32
    %55 = arith.index_cast %c2_i32 : i32 to index
    %c0_39 = arith.constant 0 : index
    %c0_40 = arith.constant 0 : index
    %56 = vector.load %arg9[%55, %c0_39, %c0_40] : memref<12x32x128xf32, #tpu.memory_space<vmem>>, vector<1x32x128xf32>
    %57 = vector.shape_cast %56 : vector<1x32x128xf32> to vector<32x128xf32>
    %58 = vector.extract_strided_slice %57 {offsets = [0, 0], sizes = [16, 128], strides = [1, 1]} : vector<32x128xf32> to vector<16x128xf32>
    %cst_41 = arith.constant dense<0.000000e+00> : vector<16x128xf32>
    %59 = tpu.matmul %42, %11, %cst_41 {dimension_numbers = #tpu.dot_dimension_numbers<[1], [0], [0], [1], [0, 0, 1, 1], [], []>} : vector<16x128xf32>, vector<128x128xf32>, vector<16x128xf32> -> vector<16x128xf32>
    %60 = arith.addf %58, %59 : vector<16x128xf32>
    %cst_42 = arith.constant 0.000000e+00 : f32
    %61 = vector.broadcast %cst_42 : f32 to vector<16x128xf32>
    %62 = arith.maximumf %60, %61 : vector<16x128xf32>
    %63 = vector.extract_strided_slice %57 {offsets = [16, 0], sizes = [16, 128], strides = [1, 1]} : vector<32x128xf32> to vector<16x128xf32>
    %cst_43 = arith.constant dense<0.000000e+00> : vector<16x128xf32>
    %64 = tpu.matmul %47, %11, %cst_43 {dimension_numbers = #tpu.dot_dimension_numbers<[1], [0], [0], [1], [0, 0, 1, 1], [], []>} : vector<16x128xf32>, vector<128x128xf32>, vector<16x128xf32> -> vector<16x128xf32>
    %65 = arith.addf %63, %64 : vector<16x128xf32>
    %cst_44 = arith.constant 0.000000e+00 : f32
    %66 = vector.broadcast %cst_44 : f32 to vector<16x128xf32>
    %67 = arith.maximumf %65, %66 : vector<16x128xf32>
    %cst_45 = arith.constant dense<0.000000e+00> : vector<16x128xf32>
    %68 = tpu.matmul %62, %12, %cst_45 {dimension_numbers = #tpu.dot_dimension_numbers<[1], [0], [0], [1], [0, 0, 1, 1], [], []>} : vector<16x128xf32>, vector<128x128xf32>, vector<16x128xf32> -> vector<16x128xf32>
    %cst_46 = arith.constant dense<0.000000e+00> : vector<16x128xf32>
    %69 = tpu.matmul %67, %12, %cst_46 {dimension_numbers = #tpu.dot_dimension_numbers<[1], [0], [0], [1], [0, 0, 1, 1], [], []>} : vector<16x128xf32>, vector<128x128xf32>, vector<16x128xf32> -> vector<16x128xf32>
    %70 = tpu.concatenate %68, %69 in 0 : vector<16x128xf32>, vector<16x128xf32> -> vector<32x128xf32>
    %71 = arith.index_cast %c2_i32 : i32 to index
    %c0_47 = arith.constant 0 : index
    %c0_48 = arith.constant 0 : index
    %72 = vector.load %arg9[%71, %c0_47, %c0_48] : memref<12x32x128xf32, #tpu.memory_space<vmem>>, vector<1x32x128xf32>
    %73 = vector.shape_cast %72 : vector<1x32x128xf32> to vector<32x128xf32>
    %74 = vector.shape_cast %70 : vector<32x128xf32> to vector<1x32x128xf32>
    tpu.vector_store %arg9[%71, %c0_47, %c0_48], %74 {strides = array<i32>} : memref<12x32x128xf32, #tpu.memory_space<vmem>>, vector<1x32x128xf32>,
    %c3_i32 = arith.constant 3 : i32
    %75 = arith.index_cast %c3_i32 : i32 to index
    %c0_49 = arith.constant 0 : index
    %c0_50 = arith.constant 0 : index
    %76 = vector.load %arg9[%75, %c0_49, %c0_50] : memref<12x32x128xf32, #tpu.memory_space<vmem>>, vector<1x32x128xf32>
    %77 = vector.shape_cast %76 : vector<1x32x128xf32> to vector<32x128xf32>
    %78 = vector.extract_strided_slice %77 {offsets = [0, 0], sizes = [16, 128], strides = [1, 1]} : vector<32x128xf32> to vector<16x128xf32>
    %cst_51 = arith.constant dense<0.000000e+00> : vector<16x128xf32>
    %79 = tpu.matmul %62, %11, %cst_51 {dimension_numbers = #tpu.dot_dimension_numbers<[1], [0], [0], [1], [0, 0, 1, 1], [], []>} : vector<16x128xf32>, vector<128x128xf32>, vector<16x128xf32> -> vector<16x128xf32>
    %80 = arith.addf %78, %79 : vector<16x128xf32>
    %cst_52 = arith.constant 0.000000e+00 : f32
    %81 = vector.broadcast %cst_52 : f32 to vector<16x128xf32>
    %82 = arith.maximumf %80, %81 : vector<16x128xf32>
    %83 = vector.extract_strided_slice %77 {offsets = [16, 0], sizes = [16, 128], strides = [1, 1]} : vector<32x128xf32> to vector<16x128xf32>
    %cst_53 = arith.constant dense<0.000000e+00> : vector<16x128xf32>
    %84 = tpu.matmul %67, %11, %cst_53 {dimension_numbers = #tpu.dot_dimension_numbers<[1], [0], [0], [1], [0, 0, 1, 1], [], []>} : vector<16x128xf32>, vector<128x128xf32>, vector<16x128xf32> -> vector<16x128xf32>
    %85 = arith.addf %83, %84 : vector<16x128xf32>
    %cst_54 = arith.constant 0.000000e+00 : f32
    %86 = vector.broadcast %cst_54 : f32 to vector<16x128xf32>
    %87 = arith.maximumf %85, %86 : vector<16x128xf32>
    %cst_55 = arith.constant dense<0.000000e+00> : vector<16x128xf32>
    %88 = tpu.matmul %82, %12, %cst_55 {dimension_numbers = #tpu.dot_dimension_numbers<[1], [0], [0], [1], [0, 0, 1, 1], [], []>} : vector<16x128xf32>, vector<128x128xf32>, vector<16x128xf32> -> vector<16x128xf32>
    %cst_56 = arith.constant dense<0.000000e+00> : vector<16x128xf32>
    %89 = tpu.matmul %87, %12, %cst_56 {dimension_numbers = #tpu.dot_dimension_numbers<[1], [0], [0], [1], [0, 0, 1, 1], [], []>} : vector<16x128xf32>, vector<128x128xf32>, vector<16x128xf32> -> vector<16x128xf32>
    %90 = tpu.concatenate %88, %89 in 0 : vector<16x128xf32>, vector<16x128xf32> -> vector<32x128xf32>
    %91 = arith.index_cast %c3_i32 : i32 to index
    %c0_57 = arith.constant 0 : index
    %c0_58 = arith.constant 0 : index
    %92 = vector.load %arg9[%91, %c0_57, %c0_58] : memref<12x32x128xf32, #tpu.memory_space<vmem>>, vector<1x32x128xf32>
    %93 = vector.shape_cast %92 : vector<1x32x128xf32> to vector<32x128xf32>
    %94 = vector.shape_cast %90 : vector<32x128xf32> to vector<1x32x128xf32>
    tpu.vector_store %arg9[%91, %c0_57, %c0_58], %94 {strides = array<i32>} : memref<12x32x128xf32, #tpu.memory_space<vmem>>, vector<1x32x128xf32>,
    %c4_i32 = arith.constant 4 : i32
    %95 = arith.index_cast %c4_i32 : i32 to index
    %c0_59 = arith.constant 0 : index
    %c0_60 = arith.constant 0 : index
    %96 = vector.load %arg9[%95, %c0_59, %c0_60] : memref<12x32x128xf32, #tpu.memory_space<vmem>>, vector<1x32x128xf32>
    %97 = vector.shape_cast %96 : vector<1x32x128xf32> to vector<32x128xf32>
    %98 = vector.extract_strided_slice %97 {offsets = [0, 0], sizes = [16, 128], strides = [1, 1]} : vector<32x128xf32> to vector<16x128xf32>
    %cst_61 = arith.constant dense<0.000000e+00> : vector<16x128xf32>
    %99 = tpu.matmul %82, %11, %cst_61 {dimension_numbers = #tpu.dot_dimension_numbers<[1], [0], [0], [1], [0, 0, 1, 1], [], []>} : vector<16x128xf32>, vector<128x128xf32>, vector<16x128xf32> -> vector<16x128xf32>
    %100 = arith.addf %98, %99 : vector<16x128xf32>
    %cst_62 = arith.constant 0.000000e+00 : f32
    %101 = vector.broadcast %cst_62 : f32 to vector<16x128xf32>
    %102 = arith.maximumf %100, %101 : vector<16x128xf32>
    %103 = vector.extract_strided_slice %97 {offsets = [16, 0], sizes = [16, 128], strides = [1, 1]} : vector<32x128xf32> to vector<16x128xf32>
    %cst_63 = arith.constant dense<0.000000e+00> : vector<16x128xf32>
    %104 = tpu.matmul %87, %11, %cst_63 {dimension_numbers = #tpu.dot_dimension_numbers<[1], [0], [0], [1], [0, 0, 1, 1], [], []>} : vector<16x128xf32>, vector<128x128xf32>, vector<16x128xf32> -> vector<16x128xf32>
    %105 = arith.addf %103, %104 : vector<16x128xf32>
    %cst_64 = arith.constant 0.000000e+00 : f32
    %106 = vector.broadcast %cst_64 : f32 to vector<16x128xf32>
    %107 = arith.maximumf %105, %106 : vector<16x128xf32>
    %cst_65 = arith.constant dense<0.000000e+00> : vector<16x128xf32>
    %108 = tpu.matmul %102, %12, %cst_65 {dimension_numbers = #tpu.dot_dimension_numbers<[1], [0], [0], [1], [0, 0, 1, 1], [], []>} : vector<16x128xf32>, vector<128x128xf32>, vector<16x128xf32> -> vector<16x128xf32>
    %cst_66 = arith.constant dense<0.000000e+00> : vector<16x128xf32>
    %109 = tpu.matmul %107, %12, %cst_66 {dimension_numbers = #tpu.dot_dimension_numbers<[1], [0], [0], [1], [0, 0, 1, 1], [], []>} : vector<16x128xf32>, vector<128x128xf32>, vector<16x128xf32> -> vector<16x128xf32>
    %110 = tpu.concatenate %108, %109 in 0 : vector<16x128xf32>, vector<16x128xf32> -> vector<32x128xf32>
    %111 = arith.index_cast %c4_i32 : i32 to index
    %c0_67 = arith.constant 0 : index
    %c0_68 = arith.constant 0 : index
    %112 = vector.load %arg9[%111, %c0_67, %c0_68] : memref<12x32x128xf32, #tpu.memory_space<vmem>>, vector<1x32x128xf32>
    %113 = vector.shape_cast %112 : vector<1x32x128xf32> to vector<32x128xf32>
    %114 = vector.shape_cast %110 : vector<32x128xf32> to vector<1x32x128xf32>
    tpu.vector_store %arg9[%111, %c0_67, %c0_68], %114 {strides = array<i32>} : memref<12x32x128xf32, #tpu.memory_space<vmem>>, vector<1x32x128xf32>,
    %c5_i32 = arith.constant 5 : i32
    %115 = arith.index_cast %c5_i32 : i32 to index
    %c0_69 = arith.constant 0 : index
    %c0_70 = arith.constant 0 : index
    %116 = vector.load %arg9[%115, %c0_69, %c0_70] : memref<12x32x128xf32, #tpu.memory_space<vmem>>, vector<1x32x128xf32>
    %117 = vector.shape_cast %116 : vector<1x32x128xf32> to vector<32x128xf32>
    %118 = vector.extract_strided_slice %117 {offsets = [0, 0], sizes = [16, 128], strides = [1, 1]} : vector<32x128xf32> to vector<16x128xf32>
    %cst_71 = arith.constant dense<0.000000e+00> : vector<16x128xf32>
    %119 = tpu.matmul %102, %11, %cst_71 {dimension_numbers = #tpu.dot_dimension_numbers<[1], [0], [0], [1], [0, 0, 1, 1], [], []>} : vector<16x128xf32>, vector<128x128xf32>, vector<16x128xf32> -> vector<16x128xf32>
    %120 = arith.addf %118, %119 : vector<16x128xf32>
    %cst_72 = arith.constant 0.000000e+00 : f32
    %121 = vector.broadcast %cst_72 : f32 to vector<16x128xf32>
    %122 = arith.maximumf %120, %121 : vector<16x128xf32>
    %123 = vector.extract_strided_slice %117 {offsets = [16, 0], sizes = [16, 128], strides = [1, 1]} : vector<32x128xf32> to vector<16x128xf32>
    %cst_73 = arith.constant dense<0.000000e+00> : vector<16x128xf32>
    %124 = tpu.matmul %107, %11, %cst_73 {dimension_numbers = #tpu.dot_dimension_numbers<[1], [0], [0], [1], [0, 0, 1, 1], [], []>} : vector<16x128xf32>, vector<128x128xf32>, vector<16x128xf32> -> vector<16x128xf32>
    %125 = arith.addf %123, %124 : vector<16x128xf32>
    %cst_74 = arith.constant 0.000000e+00 : f32
    %126 = vector.broadcast %cst_74 : f32 to vector<16x128xf32>
    %127 = arith.maximumf %125, %126 : vector<16x128xf32>
    %cst_75 = arith.constant dense<0.000000e+00> : vector<16x128xf32>
    %128 = tpu.matmul %122, %12, %cst_75 {dimension_numbers = #tpu.dot_dimension_numbers<[1], [0], [0], [1], [0, 0, 1, 1], [], []>} : vector<16x128xf32>, vector<128x128xf32>, vector<16x128xf32> -> vector<16x128xf32>
    %cst_76 = arith.constant dense<0.000000e+00> : vector<16x128xf32>
    %129 = tpu.matmul %127, %12, %cst_76 {dimension_numbers = #tpu.dot_dimension_numbers<[1], [0], [0], [1], [0, 0, 1, 1], [], []>} : vector<16x128xf32>, vector<128x128xf32>, vector<16x128xf32> -> vector<16x128xf32>
    %130 = tpu.concatenate %128, %129 in 0 : vector<16x128xf32>, vector<16x128xf32> -> vector<32x128xf32>
    %131 = arith.index_cast %c5_i32 : i32 to index
    %c0_77 = arith.constant 0 : index
    %c0_78 = arith.constant 0 : index
    %132 = vector.load %arg9[%131, %c0_77, %c0_78] : memref<12x32x128xf32, #tpu.memory_space<vmem>>, vector<1x32x128xf32>
    %133 = vector.shape_cast %132 : vector<1x32x128xf32> to vector<32x128xf32>
    %134 = vector.shape_cast %130 : vector<32x128xf32> to vector<1x32x128xf32>
    tpu.vector_store %arg9[%131, %c0_77, %c0_78], %134 {strides = array<i32>} : memref<12x32x128xf32, #tpu.memory_space<vmem>>, vector<1x32x128xf32>,
    %c6_i32 = arith.constant 6 : i32
    %135 = arith.index_cast %c6_i32 : i32 to index
    %c0_79 = arith.constant 0 : index
    %c0_80 = arith.constant 0 : index
    %136 = vector.load %arg9[%135, %c0_79, %c0_80] : memref<12x32x128xf32, #tpu.memory_space<vmem>>, vector<1x32x128xf32>
    %137 = vector.shape_cast %136 : vector<1x32x128xf32> to vector<32x128xf32>
    %138 = vector.extract_strided_slice %137 {offsets = [0, 0], sizes = [16, 128], strides = [1, 1]} : vector<32x128xf32> to vector<16x128xf32>
    %cst_81 = arith.constant dense<0.000000e+00> : vector<16x128xf32>
    %139 = tpu.matmul %122, %11, %cst_81 {dimension_numbers = #tpu.dot_dimension_numbers<[1], [0], [0], [1], [0, 0, 1, 1], [], []>} : vector<16x128xf32>, vector<128x128xf32>, vector<16x128xf32> -> vector<16x128xf32>
    %140 = arith.addf %138, %139 : vector<16x128xf32>
    %cst_82 = arith.constant 0.000000e+00 : f32
    %141 = vector.broadcast %cst_82 : f32 to vector<16x128xf32>
    %142 = arith.maximumf %140, %141 : vector<16x128xf32>
    %143 = vector.extract_strided_slice %137 {offsets = [16, 0], sizes = [16, 128], strides = [1, 1]} : vector<32x128xf32> to vector<16x128xf32>
    %cst_83 = arith.constant dense<0.000000e+00> : vector<16x128xf32>
    %144 = tpu.matmul %127, %11, %cst_83 {dimension_numbers = #tpu.dot_dimension_numbers<[1], [0], [0], [1], [0, 0, 1, 1], [], []>} : vector<16x128xf32>, vector<128x128xf32>, vector<16x128xf32> -> vector<16x128xf32>
    %145 = arith.addf %143, %144 : vector<16x128xf32>
    %cst_84 = arith.constant 0.000000e+00 : f32
    %146 = vector.broadcast %cst_84 : f32 to vector<16x128xf32>
    %147 = arith.maximumf %145, %146 : vector<16x128xf32>
    %cst_85 = arith.constant dense<0.000000e+00> : vector<16x128xf32>
    %148 = tpu.matmul %142, %12, %cst_85 {dimension_numbers = #tpu.dot_dimension_numbers<[1], [0], [0], [1], [0, 0, 1, 1], [], []>} : vector<16x128xf32>, vector<128x128xf32>, vector<16x128xf32> -> vector<16x128xf32>
    %cst_86 = arith.constant dense<0.000000e+00> : vector<16x128xf32>
    %149 = tpu.matmul %147, %12, %cst_86 {dimension_numbers = #tpu.dot_dimension_numbers<[1], [0], [0], [1], [0, 0, 1, 1], [], []>} : vector<16x128xf32>, vector<128x128xf32>, vector<16x128xf32> -> vector<16x128xf32>
    %150 = tpu.concatenate %148, %149 in 0 : vector<16x128xf32>, vector<16x128xf32> -> vector<32x128xf32>
    %151 = arith.index_cast %c6_i32 : i32 to index
    %c0_87 = arith.constant 0 : index
    %c0_88 = arith.constant 0 : index
    %152 = vector.load %arg9[%151, %c0_87, %c0_88] : memref<12x32x128xf32, #tpu.memory_space<vmem>>, vector<1x32x128xf32>
    %153 = vector.shape_cast %152 : vector<1x32x128xf32> to vector<32x128xf32>
    %154 = vector.shape_cast %150 : vector<32x128xf32> to vector<1x32x128xf32>
    tpu.vector_store %arg9[%151, %c0_87, %c0_88], %154 {strides = array<i32>} : memref<12x32x128xf32, #tpu.memory_space<vmem>>, vector<1x32x128xf32>,
    %c7_i32 = arith.constant 7 : i32
    %155 = arith.index_cast %c7_i32 : i32 to index
    %c0_89 = arith.constant 0 : index
    %c0_90 = arith.constant 0 : index
    %156 = vector.load %arg9[%155, %c0_89, %c0_90] : memref<12x32x128xf32, #tpu.memory_space<vmem>>, vector<1x32x128xf32>
    %157 = vector.shape_cast %156 : vector<1x32x128xf32> to vector<32x128xf32>
    %158 = vector.extract_strided_slice %157 {offsets = [0, 0], sizes = [16, 128], strides = [1, 1]} : vector<32x128xf32> to vector<16x128xf32>
    %cst_91 = arith.constant dense<0.000000e+00> : vector<16x128xf32>
    %159 = tpu.matmul %142, %11, %cst_91 {dimension_numbers = #tpu.dot_dimension_numbers<[1], [0], [0], [1], [0, 0, 1, 1], [], []>} : vector<16x128xf32>, vector<128x128xf32>, vector<16x128xf32> -> vector<16x128xf32>
    %160 = arith.addf %158, %159 : vector<16x128xf32>
    %cst_92 = arith.constant 0.000000e+00 : f32
    %161 = vector.broadcast %cst_92 : f32 to vector<16x128xf32>
    %162 = arith.maximumf %160, %161 : vector<16x128xf32>
    %163 = vector.extract_strided_slice %157 {offsets = [16, 0], sizes = [16, 128], strides = [1, 1]} : vector<32x128xf32> to vector<16x128xf32>
    %cst_93 = arith.constant dense<0.000000e+00> : vector<16x128xf32>
    %164 = tpu.matmul %147, %11, %cst_93 {dimension_numbers = #tpu.dot_dimension_numbers<[1], [0], [0], [1], [0, 0, 1, 1], [], []>} : vector<16x128xf32>, vector<128x128xf32>, vector<16x128xf32> -> vector<16x128xf32>
    %165 = arith.addf %163, %164 : vector<16x128xf32>
    %cst_94 = arith.constant 0.000000e+00 : f32
    %166 = vector.broadcast %cst_94 : f32 to vector<16x128xf32>
    %167 = arith.maximumf %165, %166 : vector<16x128xf32>
    %cst_95 = arith.constant dense<0.000000e+00> : vector<16x128xf32>
    %168 = tpu.matmul %162, %12, %cst_95 {dimension_numbers = #tpu.dot_dimension_numbers<[1], [0], [0], [1], [0, 0, 1, 1], [], []>} : vector<16x128xf32>, vector<128x128xf32>, vector<16x128xf32> -> vector<16x128xf32>
    %cst_96 = arith.constant dense<0.000000e+00> : vector<16x128xf32>
    %169 = tpu.matmul %167, %12, %cst_96 {dimension_numbers = #tpu.dot_dimension_numbers<[1], [0], [0], [1], [0, 0, 1, 1], [], []>} : vector<16x128xf32>, vector<128x128xf32>, vector<16x128xf32> -> vector<16x128xf32>
    %170 = tpu.concatenate %168, %169 in 0 : vector<16x128xf32>, vector<16x128xf32> -> vector<32x128xf32>
    %171 = arith.index_cast %c7_i32 : i32 to index
    %c0_97 = arith.constant 0 : index
    %c0_98 = arith.constant 0 : index
    %172 = vector.load %arg9[%171, %c0_97, %c0_98] : memref<12x32x128xf32, #tpu.memory_space<vmem>>, vector<1x32x128xf32>
    %173 = vector.shape_cast %172 : vector<1x32x128xf32> to vector<32x128xf32>
    %174 = vector.shape_cast %170 : vector<32x128xf32> to vector<1x32x128xf32>
    tpu.vector_store %arg9[%171, %c0_97, %c0_98], %174 {strides = array<i32>} : memref<12x32x128xf32, #tpu.memory_space<vmem>>, vector<1x32x128xf32>,
    %c8_i32 = arith.constant 8 : i32
    %175 = arith.index_cast %c8_i32 : i32 to index
    %c0_99 = arith.constant 0 : index
    %c0_100 = arith.constant 0 : index
    %176 = vector.load %arg9[%175, %c0_99, %c0_100] : memref<12x32x128xf32, #tpu.memory_space<vmem>>, vector<1x32x128xf32>
    %177 = vector.shape_cast %176 : vector<1x32x128xf32> to vector<32x128xf32>
    %178 = vector.extract_strided_slice %177 {offsets = [0, 0], sizes = [16, 128], strides = [1, 1]} : vector<32x128xf32> to vector<16x128xf32>
    %cst_101 = arith.constant dense<0.000000e+00> : vector<16x128xf32>
    %179 = tpu.matmul %162, %11, %cst_101 {dimension_numbers = #tpu.dot_dimension_numbers<[1], [0], [0], [1], [0, 0, 1, 1], [], []>} : vector<16x128xf32>, vector<128x128xf32>, vector<16x128xf32> -> vector<16x128xf32>
    %180 = arith.addf %178, %179 : vector<16x128xf32>
    %cst_102 = arith.constant 0.000000e+00 : f32
    %181 = vector.broadcast %cst_102 : f32 to vector<16x128xf32>
    %182 = arith.maximumf %180, %181 : vector<16x128xf32>
    %183 = vector.extract_strided_slice %177 {offsets = [16, 0], sizes = [16, 128], strides = [1, 1]} : vector<32x128xf32> to vector<16x128xf32>
    %cst_103 = arith.constant dense<0.000000e+00> : vector<16x128xf32>
    %184 = tpu.matmul %167, %11, %cst_103 {dimension_numbers = #tpu.dot_dimension_numbers<[1], [0], [0], [1], [0, 0, 1, 1], [], []>} : vector<16x128xf32>, vector<128x128xf32>, vector<16x128xf32> -> vector<16x128xf32>
    %185 = arith.addf %183, %184 : vector<16x128xf32>
    %cst_104 = arith.constant 0.000000e+00 : f32
    %186 = vector.broadcast %cst_104 : f32 to vector<16x128xf32>
    %187 = arith.maximumf %185, %186 : vector<16x128xf32>
    %cst_105 = arith.constant dense<0.000000e+00> : vector<16x128xf32>
    %188 = tpu.matmul %182, %12, %cst_105 {dimension_numbers = #tpu.dot_dimension_numbers<[1], [0], [0], [1], [0, 0, 1, 1], [], []>} : vector<16x128xf32>, vector<128x128xf32>, vector<16x128xf32> -> vector<16x128xf32>
    %cst_106 = arith.constant dense<0.000000e+00> : vector<16x128xf32>
    %189 = tpu.matmul %187, %12, %cst_106 {dimension_numbers = #tpu.dot_dimension_numbers<[1], [0], [0], [1], [0, 0, 1, 1], [], []>} : vector<16x128xf32>, vector<128x128xf32>, vector<16x128xf32> -> vector<16x128xf32>
    %190 = tpu.concatenate %188, %189 in 0 : vector<16x128xf32>, vector<16x128xf32> -> vector<32x128xf32>
    %191 = arith.index_cast %c8_i32 : i32 to index
    %c0_107 = arith.constant 0 : index
    %c0_108 = arith.constant 0 : index
    %192 = vector.load %arg9[%191, %c0_107, %c0_108] : memref<12x32x128xf32, #tpu.memory_space<vmem>>, vector<1x32x128xf32>
    %193 = vector.shape_cast %192 : vector<1x32x128xf32> to vector<32x128xf32>
    %194 = vector.shape_cast %190 : vector<32x128xf32> to vector<1x32x128xf32>
    tpu.vector_store %arg9[%191, %c0_107, %c0_108], %194 {strides = array<i32>} : memref<12x32x128xf32, #tpu.memory_space<vmem>>, vector<1x32x128xf32>,
    %c9_i32 = arith.constant 9 : i32
    %195 = arith.index_cast %c9_i32 : i32 to index
    %c0_109 = arith.constant 0 : index
    %c0_110 = arith.constant 0 : index
    %196 = vector.load %arg9[%195, %c0_109, %c0_110] : memref<12x32x128xf32, #tpu.memory_space<vmem>>, vector<1x32x128xf32>
    %197 = vector.shape_cast %196 : vector<1x32x128xf32> to vector<32x128xf32>
    %198 = vector.extract_strided_slice %197 {offsets = [0, 0], sizes = [16, 128], strides = [1, 1]} : vector<32x128xf32> to vector<16x128xf32>
    %cst_111 = arith.constant dense<0.000000e+00> : vector<16x128xf32>
    %199 = tpu.matmul %182, %11, %cst_111 {dimension_numbers = #tpu.dot_dimension_numbers<[1], [0], [0], [1], [0, 0, 1, 1], [], []>} : vector<16x128xf32>, vector<128x128xf32>, vector<16x128xf32> -> vector<16x128xf32>
    %200 = arith.addf %198, %199 : vector<16x128xf32>
    %cst_112 = arith.constant 0.000000e+00 : f32
    %201 = vector.broadcast %cst_112 : f32 to vector<16x128xf32>
    %202 = arith.maximumf %200, %201 : vector<16x128xf32>
    %203 = vector.extract_strided_slice %197 {offsets = [16, 0], sizes = [16, 128], strides = [1, 1]} : vector<32x128xf32> to vector<16x128xf32>
    %cst_113 = arith.constant dense<0.000000e+00> : vector<16x128xf32>
    %204 = tpu.matmul %187, %11, %cst_113 {dimension_numbers = #tpu.dot_dimension_numbers<[1], [0], [0], [1], [0, 0, 1, 1], [], []>} : vector<16x128xf32>, vector<128x128xf32>, vector<16x128xf32> -> vector<16x128xf32>
    %205 = arith.addf %203, %204 : vector<16x128xf32>
    %cst_114 = arith.constant 0.000000e+00 : f32
    %206 = vector.broadcast %cst_114 : f32 to vector<16x128xf32>
    %207 = arith.maximumf %205, %206 : vector<16x128xf32>
    %cst_115 = arith.constant dense<0.000000e+00> : vector<16x128xf32>
    %208 = tpu.matmul %202, %12, %cst_115 {dimension_numbers = #tpu.dot_dimension_numbers<[1], [0], [0], [1], [0, 0, 1, 1], [], []>} : vector<16x128xf32>, vector<128x128xf32>, vector<16x128xf32> -> vector<16x128xf32>
    %cst_116 = arith.constant dense<0.000000e+00> : vector<16x128xf32>
    %209 = tpu.matmul %207, %12, %cst_116 {dimension_numbers = #tpu.dot_dimension_numbers<[1], [0], [0], [1], [0, 0, 1, 1], [], []>} : vector<16x128xf32>, vector<128x128xf32>, vector<16x128xf32> -> vector<16x128xf32>
    %210 = tpu.concatenate %208, %209 in 0 : vector<16x128xf32>, vector<16x128xf32> -> vector<32x128xf32>
    %211 = arith.index_cast %c9_i32 : i32 to index
    %c0_117 = arith.constant 0 : index
    %c0_118 = arith.constant 0 : index
    %212 = vector.load %arg9[%211, %c0_117, %c0_118] : memref<12x32x128xf32, #tpu.memory_space<vmem>>, vector<1x32x128xf32>
    %213 = vector.shape_cast %212 : vector<1x32x128xf32> to vector<32x128xf32>
    %214 = vector.shape_cast %210 : vector<32x128xf32> to vector<1x32x128xf32>
    tpu.vector_store %arg9[%211, %c0_117, %c0_118], %214 {strides = array<i32>} : memref<12x32x128xf32, #tpu.memory_space<vmem>>, vector<1x32x128xf32>,
    %c10_i32 = arith.constant 10 : i32
    %215 = arith.index_cast %c10_i32 : i32 to index
    %c0_119 = arith.constant 0 : index
    %c0_120 = arith.constant 0 : index
    %216 = vector.load %arg9[%215, %c0_119, %c0_120] : memref<12x32x128xf32, #tpu.memory_space<vmem>>, vector<1x32x128xf32>
    %217 = vector.shape_cast %216 : vector<1x32x128xf32> to vector<32x128xf32>
    %218 = vector.extract_strided_slice %217 {offsets = [0, 0], sizes = [16, 128], strides = [1, 1]} : vector<32x128xf32> to vector<16x128xf32>
    %cst_121 = arith.constant dense<0.000000e+00> : vector<16x128xf32>
    %219 = tpu.matmul %202, %11, %cst_121 {dimension_numbers = #tpu.dot_dimension_numbers<[1], [0], [0], [1], [0, 0, 1, 1], [], []>} : vector<16x128xf32>, vector<128x128xf32>, vector<16x128xf32> -> vector<16x128xf32>
    %220 = arith.addf %218, %219 : vector<16x128xf32>
    %cst_122 = arith.constant 0.000000e+00 : f32
    %221 = vector.broadcast %cst_122 : f32 to vector<16x128xf32>
    %222 = arith.maximumf %220, %221 : vector<16x128xf32>
    %223 = vector.extract_strided_slice %217 {offsets = [16, 0], sizes = [16, 128], strides = [1, 1]} : vector<32x128xf32> to vector<16x128xf32>
    %cst_123 = arith.constant dense<0.000000e+00> : vector<16x128xf32>
    %224 = tpu.matmul %207, %11, %cst_123 {dimension_numbers = #tpu.dot_dimension_numbers<[1], [0], [0], [1], [0, 0, 1, 1], [], []>} : vector<16x128xf32>, vector<128x128xf32>, vector<16x128xf32> -> vector<16x128xf32>
    %225 = arith.addf %223, %224 : vector<16x128xf32>
    %cst_124 = arith.constant 0.000000e+00 : f32
    %226 = vector.broadcast %cst_124 : f32 to vector<16x128xf32>
    %227 = arith.maximumf %225, %226 : vector<16x128xf32>
    %cst_125 = arith.constant dense<0.000000e+00> : vector<16x128xf32>
    %228 = tpu.matmul %222, %12, %cst_125 {dimension_numbers = #tpu.dot_dimension_numbers<[1], [0], [0], [1], [0, 0, 1, 1], [], []>} : vector<16x128xf32>, vector<128x128xf32>, vector<16x128xf32> -> vector<16x128xf32>
    %cst_126 = arith.constant dense<0.000000e+00> : vector<16x128xf32>
    %229 = tpu.matmul %227, %12, %cst_126 {dimension_numbers = #tpu.dot_dimension_numbers<[1], [0], [0], [1], [0, 0, 1, 1], [], []>} : vector<16x128xf32>, vector<128x128xf32>, vector<16x128xf32> -> vector<16x128xf32>
    %230 = tpu.concatenate %228, %229 in 0 : vector<16x128xf32>, vector<16x128xf32> -> vector<32x128xf32>
    %231 = arith.index_cast %c10_i32 : i32 to index
    %c0_127 = arith.constant 0 : index
    %c0_128 = arith.constant 0 : index
    %232 = vector.load %arg9[%231, %c0_127, %c0_128] : memref<12x32x128xf32, #tpu.memory_space<vmem>>, vector<1x32x128xf32>
    %233 = vector.shape_cast %232 : vector<1x32x128xf32> to vector<32x128xf32>
    %234 = vector.shape_cast %230 : vector<32x128xf32> to vector<1x32x128xf32>
    tpu.vector_store %arg9[%231, %c0_127, %c0_128], %234 {strides = array<i32>} : memref<12x32x128xf32, #tpu.memory_space<vmem>>, vector<1x32x128xf32>,
    %c11_i32 = arith.constant 11 : i32
    %235 = arith.index_cast %c11_i32 : i32 to index
    %c0_129 = arith.constant 0 : index
    %c0_130 = arith.constant 0 : index
    %236 = vector.load %arg9[%235, %c0_129, %c0_130] : memref<12x32x128xf32, #tpu.memory_space<vmem>>, vector<1x32x128xf32>
    %237 = vector.shape_cast %236 : vector<1x32x128xf32> to vector<32x128xf32>
    %238 = vector.extract_strided_slice %237 {offsets = [0, 0], sizes = [16, 128], strides = [1, 1]} : vector<32x128xf32> to vector<16x128xf32>
    %cst_131 = arith.constant dense<0.000000e+00> : vector<16x128xf32>
    %239 = tpu.matmul %222, %11, %cst_131 {dimension_numbers = #tpu.dot_dimension_numbers<[1], [0], [0], [1], [0, 0, 1, 1], [], []>} : vector<16x128xf32>, vector<128x128xf32>, vector<16x128xf32> -> vector<16x128xf32>
    %240 = arith.addf %238, %239 : vector<16x128xf32>
    %cst_132 = arith.constant 0.000000e+00 : f32
    %241 = vector.broadcast %cst_132 : f32 to vector<16x128xf32>
    %242 = arith.maximumf %240, %241 : vector<16x128xf32>
    %243 = vector.extract_strided_slice %237 {offsets = [16, 0], sizes = [16, 128], strides = [1, 1]} : vector<32x128xf32> to vector<16x128xf32>
    %cst_133 = arith.constant dense<0.000000e+00> : vector<16x128xf32>
    %244 = tpu.matmul %227, %11, %cst_133 {dimension_numbers = #tpu.dot_dimension_numbers<[1], [0], [0], [1], [0, 0, 1, 1], [], []>} : vector<16x128xf32>, vector<128x128xf32>, vector<16x128xf32> -> vector<16x128xf32>
    %245 = arith.addf %243, %244 : vector<16x128xf32>
    %cst_134 = arith.constant 0.000000e+00 : f32
    %246 = vector.broadcast %cst_134 : f32 to vector<16x128xf32>
    %247 = arith.maximumf %245, %246 : vector<16x128xf32>
    %cst_135 = arith.constant dense<0.000000e+00> : vector<16x128xf32>
    %248 = tpu.matmul %242, %12, %cst_135 {dimension_numbers = #tpu.dot_dimension_numbers<[1], [0], [0], [1], [0, 0, 1, 1], [], []>} : vector<16x128xf32>, vector<128x128xf32>, vector<16x128xf32> -> vector<16x128xf32>
    %cst_136 = arith.constant dense<0.000000e+00> : vector<16x128xf32>
    %249 = tpu.matmul %247, %12, %cst_136 {dimension_numbers = #tpu.dot_dimension_numbers<[1], [0], [0], [1], [0, 0, 1, 1], [], []>} : vector<16x128xf32>, vector<128x128xf32>, vector<16x128xf32> -> vector<16x128xf32>
    %250 = tpu.concatenate %248, %249 in 0 : vector<16x128xf32>, vector<16x128xf32> -> vector<32x128xf32>
    %251 = arith.index_cast %c11_i32 : i32 to index
    %c0_137 = arith.constant 0 : index
    %c0_138 = arith.constant 0 : index
    %252 = vector.load %arg9[%251, %c0_137, %c0_138] : memref<12x32x128xf32, #tpu.memory_space<vmem>>, vector<1x32x128xf32>
    %253 = vector.shape_cast %252 : vector<1x32x128xf32> to vector<32x128xf32>
    %254 = vector.shape_cast %250 : vector<32x128xf32> to vector<1x32x128xf32>
    tpu.vector_store %arg9[%251, %c0_137, %c0_138], %254 {strides = array<i32>} : memref<12x32x128xf32, #tpu.memory_space<vmem>>, vector<1x32x128xf32>,
    %c12_i32 = arith.constant 12 : i32
    %c0_139 = arith.constant 0 : index
    %c0_140 = arith.constant 0 : index
    %255 = vector.load %arg5[%c0_139, %c0_140] : memref<128x128xf32, #tpu.memory_space<vmem>>, vector<128x128xf32>
    %cst_141 = arith.constant 0.000000e+00 : f32
    %256 = vector.broadcast %cst_141 : f32 to vector<16x128xf32>
    %cst_142 = arith.constant 0.000000e+00 : f32
    %257 = vector.broadcast %cst_142 : f32 to vector<16x128xf32>
    %c0_i32_143 = arith.constant 0 : i32
    %258 = arith.index_cast %c0_i32_143 : i32 to index
    %c0_144 = arith.constant 0 : index
    %c0_145 = arith.constant 0 : index
    %259 = vector.load %arg9[%258, %c0_144, %c0_145] : memref<12x32x128xf32, #tpu.memory_space<vmem>>, vector<1x32x128xf32>
    %260 = vector.shape_cast %259 : vector<1x32x128xf32> to vector<32x128xf32>
    %261 = vector.extract_strided_slice %260 {offsets = [0, 0], sizes = [16, 128], strides = [1, 1]} : vector<32x128xf32> to vector<16x128xf32>
    %cst_146 = arith.constant dense<0.000000e+00> : vector<16x128xf32>
    %262 = tpu.matmul %256, %255, %cst_146 {dimension_numbers = #tpu.dot_dimension_numbers<[1], [0], [0], [1], [0, 0, 1, 1], [], []>} : vector<16x128xf32>, vector<128x128xf32>, vector<16x128xf32> -> vector<16x128xf32>
    %263 = arith.addf %261, %262 : vector<16x128xf32>
    %cst_147 = arith.constant 0.000000e+00 : f32
    %264 = vector.broadcast %cst_147 : f32 to vector<16x128xf32>
    %265 = arith.maximumf %263, %264 : vector<16x128xf32>
    %266 = vector.extract_strided_slice %260 {offsets = [16, 0], sizes = [16, 128], strides = [1, 1]} : vector<32x128xf32> to vector<16x128xf32>
    %cst_148 = arith.constant dense<0.000000e+00> : vector<16x128xf32>
    %267 = tpu.matmul %257, %255, %cst_148 {dimension_numbers = #tpu.dot_dimension_numbers<[1], [0], [0], [1], [0, 0, 1, 1], [], []>} : vector<16x128xf32>, vector<128x128xf32>, vector<16x128xf32> -> vector<16x128xf32>
    %268 = arith.addf %266, %267 : vector<16x128xf32>
    %cst_149 = arith.constant 0.000000e+00 : f32
    %269 = vector.broadcast %cst_149 : f32 to vector<16x128xf32>
    %270 = arith.maximumf %268, %269 : vector<16x128xf32>
    %c1_i32_150 = arith.constant 1 : i32
    %271 = arith.index_cast %c1_i32_150 : i32 to index
    %c0_151 = arith.constant 0 : index
    %c0_152 = arith.constant 0 : index
    %272 = vector.load %arg9[%271, %c0_151, %c0_152] : memref<12x32x128xf32, #tpu.memory_space<vmem>>, vector<1x32x128xf32>
    %273 = vector.shape_cast %272 : vector<1x32x128xf32> to vector<32x128xf32>
    %274 = vector.extract_strided_slice %273 {offsets = [0, 0], sizes = [16, 128], strides = [1, 1]} : vector<32x128xf32> to vector<16x128xf32>
    %cst_153 = arith.constant dense<0.000000e+00> : vector<16x128xf32>
    %275 = tpu.matmul %265, %255, %cst_153 {dimension_numbers = #tpu.dot_dimension_numbers<[1], [0], [0], [1], [0, 0, 1, 1], [], []>} : vector<16x128xf32>, vector<128x128xf32>, vector<16x128xf32> -> vector<16x128xf32>
    %276 = arith.addf %274, %275 : vector<16x128xf32>
    %cst_154 = arith.constant 0.000000e+00 : f32
    %277 = vector.broadcast %cst_154 : f32 to vector<16x128xf32>
    %278 = arith.maximumf %276, %277 : vector<16x128xf32>
    %279 = vector.extract_strided_slice %273 {offsets = [16, 0], sizes = [16, 128], strides = [1, 1]} : vector<32x128xf32> to vector<16x128xf32>
    %cst_155 = arith.constant dense<0.000000e+00> : vector<16x128xf32>
    %280 = tpu.matmul %270, %255, %cst_155 {dimension_numbers = #tpu.dot_dimension_numbers<[1], [0], [0], [1], [0, 0, 1, 1], [], []>} : vector<16x128xf32>, vector<128x128xf32>, vector<16x128xf32> -> vector<16x128xf32>
    %281 = arith.addf %279, %280 : vector<16x128xf32>
    %cst_156 = arith.constant 0.000000e+00 : f32
    %282 = vector.broadcast %cst_156 : f32 to vector<16x128xf32>
    %283 = arith.maximumf %281, %282 : vector<16x128xf32>
    %c2_i32_157 = arith.constant 2 : i32
    %284 = arith.index_cast %c2_i32_157 : i32 to index
    %c0_158 = arith.constant 0 : index
    %c0_159 = arith.constant 0 : index
    %285 = vector.load %arg9[%284, %c0_158, %c0_159] : memref<12x32x128xf32, #tpu.memory_space<vmem>>, vector<1x32x128xf32>
    %286 = vector.shape_cast %285 : vector<1x32x128xf32> to vector<32x128xf32>
    %287 = vector.extract_strided_slice %286 {offsets = [0, 0], sizes = [16, 128], strides = [1, 1]} : vector<32x128xf32> to vector<16x128xf32>
    %cst_160 = arith.constant dense<0.000000e+00> : vector<16x128xf32>
    %288 = tpu.matmul %278, %255, %cst_160 {dimension_numbers = #tpu.dot_dimension_numbers<[1], [0], [0], [1], [0, 0, 1, 1], [], []>} : vector<16x128xf32>, vector<128x128xf32>, vector<16x128xf32> -> vector<16x128xf32>
    %289 = arith.addf %287, %288 : vector<16x128xf32>
    %cst_161 = arith.constant 0.000000e+00 : f32
    %290 = vector.broadcast %cst_161 : f32 to vector<16x128xf32>
    %291 = arith.maximumf %289, %290 : vector<16x128xf32>
    %292 = vector.extract_strided_slice %286 {offsets = [16, 0], sizes = [16, 128], strides = [1, 1]} : vector<32x128xf32> to vector<16x128xf32>
    %cst_162 = arith.constant dense<0.000000e+00> : vector<16x128xf32>
    %293 = tpu.matmul %283, %255, %cst_162 {dimension_numbers = #tpu.dot_dimension_numbers<[1], [0], [0], [1], [0, 0, 1, 1], [], []>} : vector<16x128xf32>, vector<128x128xf32>, vector<16x128xf32> -> vector<16x128xf32>
    %294 = arith.addf %292, %293 : vector<16x128xf32>
    %cst_163 = arith.constant 0.000000e+00 : f32
    %295 = vector.broadcast %cst_163 : f32 to vector<16x128xf32>
    %296 = arith.maximumf %294, %295 : vector<16x128xf32>
    %c3_i32_164 = arith.constant 3 : i32
    %297 = arith.index_cast %c3_i32_164 : i32 to index
    %c0_165 = arith.constant 0 : index
    %c0_166 = arith.constant 0 : index
    %298 = vector.load %arg9[%297, %c0_165, %c0_166] : memref<12x32x128xf32, #tpu.memory_space<vmem>>, vector<1x32x128xf32>
    %299 = vector.shape_cast %298 : vector<1x32x128xf32> to vector<32x128xf32>
    %300 = vector.extract_strided_slice %299 {offsets = [0, 0], sizes = [16, 128], strides = [1, 1]} : vector<32x128xf32> to vector<16x128xf32>
    %cst_167 = arith.constant dense<0.000000e+00> : vector<16x128xf32>
    %301 = tpu.matmul %291, %255, %cst_167 {dimension_numbers = #tpu.dot_dimension_numbers<[1], [0], [0], [1], [0, 0, 1, 1], [], []>} : vector<16x128xf32>, vector<128x128xf32>, vector<16x128xf32> -> vector<16x128xf32>
    %302 = arith.addf %300, %301 : vector<16x128xf32>
    %cst_168 = arith.constant 0.000000e+00 : f32
    %303 = vector.broadcast %cst_168 : f32 to vector<16x128xf32>
    %304 = arith.maximumf %302, %303 : vector<16x128xf32>
    %305 = vector.extract_strided_slice %299 {offsets = [16, 0], sizes = [16, 128], strides = [1, 1]} : vector<32x128xf32> to vector<16x128xf32>
    %cst_169 = arith.constant dense<0.000000e+00> : vector<16x128xf32>
    %306 = tpu.matmul %296, %255, %cst_169 {dimension_numbers = #tpu.dot_dimension_numbers<[1], [0], [0], [1], [0, 0, 1, 1], [], []>} : vector<16x128xf32>, vector<128x128xf32>, vector<16x128xf32> -> vector<16x128xf32>
    %307 = arith.addf %305, %306 : vector<16x128xf32>
    %cst_170 = arith.constant 0.000000e+00 : f32
    %308 = vector.broadcast %cst_170 : f32 to vector<16x128xf32>
    %309 = arith.maximumf %307, %308 : vector<16x128xf32>
    %c4_i32_171 = arith.constant 4 : i32
    %310 = arith.index_cast %c4_i32_171 : i32 to index
    %c0_172 = arith.constant 0 : index
    %c0_173 = arith.constant 0 : index
    %311 = vector.load %arg9[%310, %c0_172, %c0_173] : memref<12x32x128xf32, #tpu.memory_space<vmem>>, vector<1x32x128xf32>
    %312 = vector.shape_cast %311 : vector<1x32x128xf32> to vector<32x128xf32>
    %313 = vector.extract_strided_slice %312 {offsets = [0, 0], sizes = [16, 128], strides = [1, 1]} : vector<32x128xf32> to vector<16x128xf32>
    %cst_174 = arith.constant dense<0.000000e+00> : vector<16x128xf32>
    %314 = tpu.matmul %304, %255, %cst_174 {dimension_numbers = #tpu.dot_dimension_numbers<[1], [0], [0], [1], [0, 0, 1, 1], [], []>} : vector<16x128xf32>, vector<128x128xf32>, vector<16x128xf32> -> vector<16x128xf32>
    %315 = arith.addf %313, %314 : vector<16x128xf32>
    %cst_175 = arith.constant 0.000000e+00 : f32
    %316 = vector.broadcast %cst_175 : f32 to vector<16x128xf32>
    %317 = arith.maximumf %315, %316 : vector<16x128xf32>
    %318 = vector.extract_strided_slice %312 {offsets = [16, 0], sizes = [16, 128], strides = [1, 1]} : vector<32x128xf32> to vector<16x128xf32>
    %cst_176 = arith.constant dense<0.000000e+00> : vector<16x128xf32>
    %319 = tpu.matmul %309, %255, %cst_176 {dimension_numbers = #tpu.dot_dimension_numbers<[1], [0], [0], [1], [0, 0, 1, 1], [], []>} : vector<16x128xf32>, vector<128x128xf32>, vector<16x128xf32> -> vector<16x128xf32>
    %320 = arith.addf %318, %319 : vector<16x128xf32>
    %cst_177 = arith.constant 0.000000e+00 : f32
    %321 = vector.broadcast %cst_177 : f32 to vector<16x128xf32>
    %322 = arith.maximumf %320, %321 : vector<16x128xf32>
    %c5_i32_178 = arith.constant 5 : i32
    %323 = arith.index_cast %c5_i32_178 : i32 to index
    %c0_179 = arith.constant 0 : index
    %c0_180 = arith.constant 0 : index
    %324 = vector.load %arg9[%323, %c0_179, %c0_180] : memref<12x32x128xf32, #tpu.memory_space<vmem>>, vector<1x32x128xf32>
    %325 = vector.shape_cast %324 : vector<1x32x128xf32> to vector<32x128xf32>
    %326 = vector.extract_strided_slice %325 {offsets = [0, 0], sizes = [16, 128], strides = [1, 1]} : vector<32x128xf32> to vector<16x128xf32>
    %cst_181 = arith.constant dense<0.000000e+00> : vector<16x128xf32>
    %327 = tpu.matmul %317, %255, %cst_181 {dimension_numbers = #tpu.dot_dimension_numbers<[1], [0], [0], [1], [0, 0, 1, 1], [], []>} : vector<16x128xf32>, vector<128x128xf32>, vector<16x128xf32> -> vector<16x128xf32>
    %328 = arith.addf %326, %327 : vector<16x128xf32>
    %cst_182 = arith.constant 0.000000e+00 : f32
    %329 = vector.broadcast %cst_182 : f32 to vector<16x128xf32>
    %330 = arith.maximumf %328, %329 : vector<16x128xf32>
    %331 = vector.extract_strided_slice %325 {offsets = [16, 0], sizes = [16, 128], strides = [1, 1]} : vector<32x128xf32> to vector<16x128xf32>
    %cst_183 = arith.constant dense<0.000000e+00> : vector<16x128xf32>
    %332 = tpu.matmul %322, %255, %cst_183 {dimension_numbers = #tpu.dot_dimension_numbers<[1], [0], [0], [1], [0, 0, 1, 1], [], []>} : vector<16x128xf32>, vector<128x128xf32>, vector<16x128xf32> -> vector<16x128xf32>
    %333 = arith.addf %331, %332 : vector<16x128xf32>
    %cst_184 = arith.constant 0.000000e+00 : f32
    %334 = vector.broadcast %cst_184 : f32 to vector<16x128xf32>
    %335 = arith.maximumf %333, %334 : vector<16x128xf32>
    %c6_i32_185 = arith.constant 6 : i32
    %336 = arith.index_cast %c6_i32_185 : i32 to index
    %c0_186 = arith.constant 0 : index
    %c0_187 = arith.constant 0 : index
    %337 = vector.load %arg9[%336, %c0_186, %c0_187] : memref<12x32x128xf32, #tpu.memory_space<vmem>>, vector<1x32x128xf32>
    %338 = vector.shape_cast %337 : vector<1x32x128xf32> to vector<32x128xf32>
    %339 = vector.extract_strided_slice %338 {offsets = [0, 0], sizes = [16, 128], strides = [1, 1]} : vector<32x128xf32> to vector<16x128xf32>
    %cst_188 = arith.constant dense<0.000000e+00> : vector<16x128xf32>
    %340 = tpu.matmul %330, %255, %cst_188 {dimension_numbers = #tpu.dot_dimension_numbers<[1], [0], [0], [1], [0, 0, 1, 1], [], []>} : vector<16x128xf32>, vector<128x128xf32>, vector<16x128xf32> -> vector<16x128xf32>
    %341 = arith.addf %339, %340 : vector<16x128xf32>
    %cst_189 = arith.constant 0.000000e+00 : f32
    %342 = vector.broadcast %cst_189 : f32 to vector<16x128xf32>
    %343 = arith.maximumf %341, %342 : vector<16x128xf32>
    %344 = vector.extract_strided_slice %338 {offsets = [16, 0], sizes = [16, 128], strides = [1, 1]} : vector<32x128xf32> to vector<16x128xf32>
    %cst_190 = arith.constant dense<0.000000e+00> : vector<16x128xf32>
    %345 = tpu.matmul %335, %255, %cst_190 {dimension_numbers = #tpu.dot_dimension_numbers<[1], [0], [0], [1], [0, 0, 1, 1], [], []>} : vector<16x128xf32>, vector<128x128xf32>, vector<16x128xf32> -> vector<16x128xf32>
    %346 = arith.addf %344, %345 : vector<16x128xf32>
    %cst_191 = arith.constant 0.000000e+00 : f32
    %347 = vector.broadcast %cst_191 : f32 to vector<16x128xf32>
    %348 = arith.maximumf %346, %347 : vector<16x128xf32>
    %c7_i32_192 = arith.constant 7 : i32
    %349 = arith.index_cast %c7_i32_192 : i32 to index
    %c0_193 = arith.constant 0 : index
    %c0_194 = arith.constant 0 : index
    %350 = vector.load %arg9[%349, %c0_193, %c0_194] : memref<12x32x128xf32, #tpu.memory_space<vmem>>, vector<1x32x128xf32>
    %351 = vector.shape_cast %350 : vector<1x32x128xf32> to vector<32x128xf32>
    %352 = vector.extract_strided_slice %351 {offsets = [0, 0], sizes = [16, 128], strides = [1, 1]} : vector<32x128xf32> to vector<16x128xf32>
    %cst_195 = arith.constant dense<0.000000e+00> : vector<16x128xf32>
    %353 = tpu.matmul %343, %255, %cst_195 {dimension_numbers = #tpu.dot_dimension_numbers<[1], [0], [0], [1], [0, 0, 1, 1], [], []>} : vector<16x128xf32>, vector<128x128xf32>, vector<16x128xf32> -> vector<16x128xf32>
    %354 = arith.addf %352, %353 : vector<16x128xf32>
    %cst_196 = arith.constant 0.000000e+00 : f32
    %355 = vector.broadcast %cst_196 : f32 to vector<16x128xf32>
    %356 = arith.maximumf %354, %355 : vector<16x128xf32>
    %357 = vector.extract_strided_slice %351 {offsets = [16, 0], sizes = [16, 128], strides = [1, 1]} : vector<32x128xf32> to vector<16x128xf32>
    %cst_197 = arith.constant dense<0.000000e+00> : vector<16x128xf32>
    %358 = tpu.matmul %348, %255, %cst_197 {dimension_numbers = #tpu.dot_dimension_numbers<[1], [0], [0], [1], [0, 0, 1, 1], [], []>} : vector<16x128xf32>, vector<128x128xf32>, vector<16x128xf32> -> vector<16x128xf32>
    %359 = arith.addf %357, %358 : vector<16x128xf32>
    %cst_198 = arith.constant 0.000000e+00 : f32
    %360 = vector.broadcast %cst_198 : f32 to vector<16x128xf32>
    %361 = arith.maximumf %359, %360 : vector<16x128xf32>
    %c8_i32_199 = arith.constant 8 : i32
    %362 = arith.index_cast %c8_i32_199 : i32 to index
    %c0_200 = arith.constant 0 : index
    %c0_201 = arith.constant 0 : index
    %363 = vector.load %arg9[%362, %c0_200, %c0_201] : memref<12x32x128xf32, #tpu.memory_space<vmem>>, vector<1x32x128xf32>
    %364 = vector.shape_cast %363 : vector<1x32x128xf32> to vector<32x128xf32>
    %365 = vector.extract_strided_slice %364 {offsets = [0, 0], sizes = [16, 128], strides = [1, 1]} : vector<32x128xf32> to vector<16x128xf32>
    %cst_202 = arith.constant dense<0.000000e+00> : vector<16x128xf32>
    %366 = tpu.matmul %356, %255, %cst_202 {dimension_numbers = #tpu.dot_dimension_numbers<[1], [0], [0], [1], [0, 0, 1, 1], [], []>} : vector<16x128xf32>, vector<128x128xf32>, vector<16x128xf32> -> vector<16x128xf32>
    %367 = arith.addf %365, %366 : vector<16x128xf32>
    %cst_203 = arith.constant 0.000000e+00 : f32
    %368 = vector.broadcast %cst_203 : f32 to vector<16x128xf32>
    %369 = arith.maximumf %367, %368 : vector<16x128xf32>
    %370 = vector.extract_strided_slice %364 {offsets = [16, 0], sizes = [16, 128], strides = [1, 1]} : vector<32x128xf32> to vector<16x128xf32>
    %cst_204 = arith.constant dense<0.000000e+00> : vector<16x128xf32>
    %371 = tpu.matmul %361, %255, %cst_204 {dimension_numbers = #tpu.dot_dimension_numbers<[1], [0], [0], [1], [0, 0, 1, 1], [], []>} : vector<16x128xf32>, vector<128x128xf32>, vector<16x128xf32> -> vector<16x128xf32>
    %372 = arith.addf %370, %371 : vector<16x128xf32>
    %cst_205 = arith.constant 0.000000e+00 : f32
    %373 = vector.broadcast %cst_205 : f32 to vector<16x128xf32>
    %374 = arith.maximumf %372, %373 : vector<16x128xf32>
    %c9_i32_206 = arith.constant 9 : i32
    %375 = arith.index_cast %c9_i32_206 : i32 to index
    %c0_207 = arith.constant 0 : index
    %c0_208 = arith.constant 0 : index
    %376 = vector.load %arg9[%375, %c0_207, %c0_208] : memref<12x32x128xf32, #tpu.memory_space<vmem>>, vector<1x32x128xf32>
    %377 = vector.shape_cast %376 : vector<1x32x128xf32> to vector<32x128xf32>
    %378 = vector.extract_strided_slice %377 {offsets = [0, 0], sizes = [16, 128], strides = [1, 1]} : vector<32x128xf32> to vector<16x128xf32>
    %cst_209 = arith.constant dense<0.000000e+00> : vector<16x128xf32>
    %379 = tpu.matmul %369, %255, %cst_209 {dimension_numbers = #tpu.dot_dimension_numbers<[1], [0], [0], [1], [0, 0, 1, 1], [], []>} : vector<16x128xf32>, vector<128x128xf32>, vector<16x128xf32> -> vector<16x128xf32>
    %380 = arith.addf %378, %379 : vector<16x128xf32>
    %cst_210 = arith.constant 0.000000e+00 : f32
    %381 = vector.broadcast %cst_210 : f32 to vector<16x128xf32>
    %382 = arith.maximumf %380, %381 : vector<16x128xf32>
    %383 = vector.extract_strided_slice %377 {offsets = [16, 0], sizes = [16, 128], strides = [1, 1]} : vector<32x128xf32> to vector<16x128xf32>
    %cst_211 = arith.constant dense<0.000000e+00> : vector<16x128xf32>
    %384 = tpu.matmul %374, %255, %cst_211 {dimension_numbers = #tpu.dot_dimension_numbers<[1], [0], [0], [1], [0, 0, 1, 1], [], []>} : vector<16x128xf32>, vector<128x128xf32>, vector<16x128xf32> -> vector<16x128xf32>
    %385 = arith.addf %383, %384 : vector<16x128xf32>
    %cst_212 = arith.constant 0.000000e+00 : f32
    %386 = vector.broadcast %cst_212 : f32 to vector<16x128xf32>
    %387 = arith.maximumf %385, %386 : vector<16x128xf32>
    %c10_i32_213 = arith.constant 10 : i32
    %388 = arith.index_cast %c10_i32_213 : i32 to index
    %c0_214 = arith.constant 0 : index
    %c0_215 = arith.constant 0 : index
    %389 = vector.load %arg9[%388, %c0_214, %c0_215] : memref<12x32x128xf32, #tpu.memory_space<vmem>>, vector<1x32x128xf32>
    %390 = vector.shape_cast %389 : vector<1x32x128xf32> to vector<32x128xf32>
    %391 = vector.extract_strided_slice %390 {offsets = [0, 0], sizes = [16, 128], strides = [1, 1]} : vector<32x128xf32> to vector<16x128xf32>
    %cst_216 = arith.constant dense<0.000000e+00> : vector<16x128xf32>
    %392 = tpu.matmul %382, %255, %cst_216 {dimension_numbers = #tpu.dot_dimension_numbers<[1], [0], [0], [1], [0, 0, 1, 1], [], []>} : vector<16x128xf32>, vector<128x128xf32>, vector<16x128xf32> -> vector<16x128xf32>
    %393 = arith.addf %391, %392 : vector<16x128xf32>
    %cst_217 = arith.constant 0.000000e+00 : f32
    %394 = vector.broadcast %cst_217 : f32 to vector<16x128xf32>
    %395 = arith.maximumf %393, %394 : vector<16x128xf32>
    %396 = vector.extract_strided_slice %390 {offsets = [16, 0], sizes = [16, 128], strides = [1, 1]} : vector<32x128xf32> to vector<16x128xf32>
    %cst_218 = arith.constant dense<0.000000e+00> : vector<16x128xf32>
    %397 = tpu.matmul %387, %255, %cst_218 {dimension_numbers = #tpu.dot_dimension_numbers<[1], [0], [0], [1], [0, 0, 1, 1], [], []>} : vector<16x128xf32>, vector<128x128xf32>, vector<16x128xf32> -> vector<16x128xf32>
    %398 = arith.addf %396, %397 : vector<16x128xf32>
    %cst_219 = arith.constant 0.000000e+00 : f32
    %399 = vector.broadcast %cst_219 : f32 to vector<16x128xf32>
    %400 = arith.maximumf %398, %399 : vector<16x128xf32>
    %c11_i32_220 = arith.constant 11 : i32
    %401 = arith.index_cast %c11_i32_220 : i32 to index
    %c0_221 = arith.constant 0 : index
    %c0_222 = arith.constant 0 : index
    %402 = vector.load %arg9[%401, %c0_221, %c0_222] : memref<12x32x128xf32, #tpu.memory_space<vmem>>, vector<1x32x128xf32>
    %403 = vector.shape_cast %402 : vector<1x32x128xf32> to vector<32x128xf32>
    %404 = vector.extract_strided_slice %403 {offsets = [0, 0], sizes = [16, 128], strides = [1, 1]} : vector<32x128xf32> to vector<16x128xf32>
    %cst_223 = arith.constant dense<0.000000e+00> : vector<16x128xf32>
    %405 = tpu.matmul %395, %255, %cst_223 {dimension_numbers = #tpu.dot_dimension_numbers<[1], [0], [0], [1], [0, 0, 1, 1], [], []>} : vector<16x128xf32>, vector<128x128xf32>, vector<16x128xf32> -> vector<16x128xf32>
    %406 = arith.addf %404, %405 : vector<16x128xf32>
    %cst_224 = arith.constant 0.000000e+00 : f32
    %407 = vector.broadcast %cst_224 : f32 to vector<16x128xf32>
    %408 = arith.maximumf %406, %407 : vector<16x128xf32>
    %409 = vector.extract_strided_slice %403 {offsets = [16, 0], sizes = [16, 128], strides = [1, 1]} : vector<32x128xf32> to vector<16x128xf32>
    %cst_225 = arith.constant dense<0.000000e+00> : vector<16x128xf32>
    %410 = tpu.matmul %400, %255, %cst_225 {dimension_numbers = #tpu.dot_dimension_numbers<[1], [0], [0], [1], [0, 0, 1, 1], [], []>} : vector<16x128xf32>, vector<128x128xf32>, vector<16x128xf32> -> vector<16x128xf32>
    %411 = arith.addf %409, %410 : vector<16x128xf32>
    %cst_226 = arith.constant 0.000000e+00 : f32
    %412 = vector.broadcast %cst_226 : f32 to vector<16x128xf32>
    %413 = arith.maximumf %411, %412 : vector<16x128xf32>
    %c12_i32_227 = arith.constant 12 : i32
    %c0_228 = arith.constant 0 : index
    %c0_229 = arith.constant 0 : index
    %414 = vector.load %arg6[%c0_228, %c0_229] : memref<128x128xf32, #tpu.memory_space<vmem>>, vector<128x128xf32>
    %c0_230 = arith.constant 0 : index
    %c0_231 = arith.constant 0 : index
    %415 = vector.load %arg7[%c0_230, %c0_231] : memref<128x128xf32, #tpu.memory_space<vmem>>, vector<128x128xf32>
    %cst_232 = arith.constant dense<0.000000e+00> : vector<16x128xf32>
    %416 = tpu.matmul %408, %414, %cst_232 {dimension_numbers = #tpu.dot_dimension_numbers<[1], [0], [0], [1], [0, 0, 1, 1], [], []>} : vector<16x128xf32>, vector<128x128xf32>, vector<16x128xf32> -> vector<16x128xf32>
    %cst_233 = arith.constant 0.000000e+00 : f32
    %417 = vector.broadcast %cst_233 : f32 to vector<16x128xf32>
    %418 = arith.maximumf %416, %417 : vector<16x128xf32>
    %cst_234 = arith.constant dense<0.000000e+00> : vector<16x128xf32>
    %419 = tpu.matmul %418, %415, %cst_234 {dimension_numbers = #tpu.dot_dimension_numbers<[1], [0], [0], [1], [0, 0, 1, 1], [], []>} : vector<16x128xf32>, vector<128x128xf32>, vector<16x128xf32> -> vector<16x128xf32>
    %c0_235 = arith.constant 0 : index
    %c0_236 = arith.constant 0 : index
    %420 = vector.load %arg8[%c0_235, %c0_236] : memref<32x128xf32, #tpu.memory_space<vmem>>, vector<16x128xf32>
    tpu.vector_store %arg8[%c0_235, %c0_236], %419 {strides = array<i32>} : memref<32x128xf32, #tpu.memory_space<vmem>>, vector<16x128xf32>,
    %cst_237 = arith.constant dense<0.000000e+00> : vector<16x128xf32>
    %421 = tpu.matmul %413, %414, %cst_237 {dimension_numbers = #tpu.dot_dimension_numbers<[1], [0], [0], [1], [0, 0, 1, 1], [], []>} : vector<16x128xf32>, vector<128x128xf32>, vector<16x128xf32> -> vector<16x128xf32>
    %cst_238 = arith.constant 0.000000e+00 : f32
    %422 = vector.broadcast %cst_238 : f32 to vector<16x128xf32>
    %423 = arith.maximumf %421, %422 : vector<16x128xf32>
    %cst_239 = arith.constant dense<0.000000e+00> : vector<16x128xf32>
    %424 = tpu.matmul %423, %415, %cst_239 {dimension_numbers = #tpu.dot_dimension_numbers<[1], [0], [0], [1], [0, 0, 1, 1], [], []>} : vector<16x128xf32>, vector<128x128xf32>, vector<16x128xf32> -> vector<16x128xf32>
    %c16 = arith.constant 16 : index
    %c0_240 = arith.constant 0 : index
    %425 = vector.load %arg8[%c16, %c0_240] : memref<32x128xf32, #tpu.memory_space<vmem>>, vector<16x128xf32>
    tpu.vector_store %arg8[%c16, %c0_240], %424 {strides = array<i32>} : memref<32x128xf32, #tpu.memory_space<vmem>>, vector<16x128xf32>,
    return
  }
  func.func @transform_0(%arg0: i32) -> (i32, i32, i32) {
    %c0_i32 = arith.constant 0 : i32
    %c0_i32_0 = arith.constant 0 : i32
    %c0_i32_1 = arith.constant 0 : i32
    return %c0_i32, %arg0, %c0_i32_0 : i32, i32, i32
  }
  func.func @transform_1(%arg0: i32) -> (i32, i32) {
    %c0_i32 = arith.constant 0 : i32
    %c0_i32_0 = arith.constant 0 : i32
    %c0_i32_1 = arith.constant 0 : i32
    return %c0_i32, %c0_i32_0 : i32, i32
  }
  func.func @transform_2(%arg0: i32) -> (i32, i32) {
    %c0_i32 = arith.constant 0 : i32
    %c0_i32_0 = arith.constant 0 : i32
    %c0_i32_1 = arith.constant 0 : i32
    return %c0_i32, %c0_i32_0 : i32, i32
  }
  func.func @transform_3(%arg0: i32) -> (i32, i32) {
    %c0_i32 = arith.constant 0 : i32
    %c0_i32_0 = arith.constant 0 : i32
    %c0_i32_1 = arith.constant 0 : i32
    return %c0_i32, %c0_i32_0 : i32, i32
  }
  func.func @transform_4(%arg0: i32) -> (i32, i32) {
    %c0_i32 = arith.constant 0 : i32
    %c0_i32_0 = arith.constant 0 : i32
    %c0_i32_1 = arith.constant 0 : i32
    return %c0_i32, %c0_i32_0 : i32, i32
  }
  func.func @transform_5(%arg0: i32) -> (i32, i32) {
    %c0_i32 = arith.constant 0 : i32
    %c0_i32_0 = arith.constant 0 : i32
    %c0_i32_1 = arith.constant 0 : i32
    return %c0_i32, %c0_i32_0 : i32, i32
  }
  func.func @transform_6(%arg0: i32) -> (i32, i32) {
    %c0_i32 = arith.constant 0 : i32
    %c0_i32_0 = arith.constant 0 : i32
    %c0_i32_1 = arith.constant 0 : i32
    return %c0_i32, %c0_i32_0 : i32, i32
  }
  func.func @transform_7(%arg0: i32) -> (i32, i32) {
    %c0_i32 = arith.constant 0 : i32
    %c0_i32_0 = arith.constant 0 : i32
    return %arg0, %c0_i32 : i32, i32
  }
}

</mosaic_0001>

<bundles_post_ra>
// kernel: tpu_custom_call.1
= control target key start
LH: loop header
LB: loop body
LE: loop exit
PB: predicated region body
PF: predicated region fallthrough
CT: control target
= control target key end

     0   :  { %12 = vsyncpa [#allocation4], 0  ;;  %s14904_s0 = inlined_call_operand.hbm [shape: f32[12,32,128], index: 0, kind: input, shape index: {}]   ;;  %s14905_s1 = inlined_call_operand.hbm [shape: f32[128,128], index: 1, kind: input, shape index: {}]   ;;  %s14906_s2 = inlined_call_operand.hbm [shape: f32[128,128], index: 2, kind: input, shape index: {}]   ;;  %s14907_s3 = inlined_call_operand.hbm [shape: f32[128,128], index: 3, kind: input, shape index: {}]   ;;  %s14908_s4 = inlined_call_operand.hbm [shape: f32[128,128], index: 4, kind: input, shape index: {}]   ;;  %s14909_s5 = inlined_call_operand.hbm [shape: f32[128,128], index: 5, kind: input, shape index: {}]   ;;  %s14910_s6 = inlined_call_operand.hbm [shape: f32[128,128], index: 6, kind: input, shape index: {}]   ;;  %s14911_s7 = inlined_call_operand.hbm [shape: f32[32,128], index: 7, kind: output, shape index: {}]  }
   0x1   :  { %13 = vsyncpa [#allocation7], 0 }
   0x2   :  { %14 = vsyncpa [#allocation10], 0 }
   0x3   :  { %15 = vsyncpa [#allocation13], 0 }
   0x4   :  { %16 = vsyncpa [#allocation5], 0  ;;  %s13465_s24 = smov [#allocation6]   ;;  %s13466_s26 = smov [#allocation9]  }
   0x5   :  { %s34_s25 = sshll.u32 %s13465_s24, 4  ;;  %s58_s27 = sshll.u32 %s13466_s26, 4  ;;  %s35_s25 = int_to_ptr.vmem [resolvable:$true] %s34_s25  ;;  %s13516_s27 = int_to_ptr.vmem [resolvable:$true] %s58_s27 }
   0x6   :  { %s13279_s30 = scalar_lea.hbm %s14905_s1, 2048 }
   0x7   :  { %p13280_p0 = scmp.ne.s32.totalorder %s14905_s1, %s13279_s30  ;;  %p13283_p1 = scmp.lt.u32.totalorder %s13279_s30, %s14905_s1 }
   0x9   :  { %p13285_p2 = pnand %p13283_p1, %p13280_p0 }
   0xb   :  { %13288 = shalt.err (!%p13285_p2)
}
   0xc   :  { %s13289_s12 = scalar_lea.vmem %s35_s25, 2048  ;;  %p13294_p4 = scmp.lt.s32.totalorder %s35_s25, %s35_s25 }
   0xd   :  { %p13290_p3 = scmp.ne.s32.totalorder %s35_s25, %s13289_s12  ;;  %p13295_p5 = scmp.lt.s32.totalorder %s13289_s12, %s13289_s12 }
   0xf   :  { %p13296_p6 = por %p13295_p5, %p13294_p4 }
  0x11   :  { %p13297_p7 = pnand %p13296_p6, %p13290_p3 }
  0x13   :  { %13300 = shalt.err (!%p13297_p7)
}
  0x14   :  { %s13467_s13 = smov 128   ;;  %s13468_s14 = smov 8  }
  0x15   :  { %40 = dma.hbm_to_vmem [thread:$0]  %s14905_s1, 2048, %s35_s25, [#allocation7], %s13467_s13, %s13467_s13, %s13468_s14  }
  0x16   :  { %s13301_s19 = scalar_lea.hbm %s14907_s3, 2048 }
  0x17   :  { %p13302_p8 = scmp.ne.s32.totalorder %s14907_s3, %s13301_s19  ;;  %p13305_p9 = scmp.lt.u32.totalorder %s13301_s19, %s14907_s3 }
  0x19   :  { %p13307_p10 = pnand %p13305_p9, %p13302_p8 }
  0x1b   :  { %13310 = shalt.err (!%p13307_p10)
}
  0x1c   :  { %s13311_s24 = scalar_lea.vmem %s13516_s27, 2048  ;;  %p13316_p12 = scmp.lt.s32.totalorder %s13516_s27, %s13516_s27 }
  0x1d   :  { %p13312_p11 = scmp.ne.s32.totalorder %s13516_s27, %s13311_s24  ;;  %p13317_p13 = scmp.lt.s32.totalorder %s13311_s24, %s13311_s24 }
  0x1f   :  { %p13318_p0 = por %p13317_p13, %p13316_p12 }
  0x21   :  { %p13319_p1 = pnand %p13318_p0, %p13312_p11 }
  0x23   :  { %13322 = shalt.err (!%p13319_p1)
}
  0x24   :  { %64 = dma.hbm_to_vmem [thread:$0]  %s14907_s3, 2048, %s13516_s27, [#allocation10], %s13467_s13, %s13467_s13, %s13468_s14  }
  0x25   :  { %s13469_s26 = smov [#allocation12]   ;;  %s13470_s29 = smov [#allocation3]  }
  0x26   :  { %s82_s28 = sshll.u32 %s13469_s26, 4  ;;  %s22_s30 = sshll.u32 %s13470_s29, 4  ;;  %s83_s28 = int_to_ptr.vmem [resolvable:$true] %s82_s28  ;;  %s13553_s30 = int_to_ptr.vmem [resolvable:$true] %s22_s30 }
  0x27   :  { %s13323_s10 = scalar_lea.hbm %s14909_s5, 2048 }
  0x28   :  { %p13324_p2 = scmp.ne.s32.totalorder %s14909_s5, %s13323_s10  ;;  %p13327_p3 = scmp.lt.u32.totalorder %s13323_s10, %s14909_s5 }
  0x2a   :  { %p13329_p4 = pnand %p13327_p3, %p13324_p2 }
  0x2c   :  { %13332 = shalt.err (!%p13329_p4)
}
  0x2d   :  { %s13333_s3 = scalar_lea.vmem %s83_s28, 2048  ;;  %p13338_p6 = scmp.lt.s32.totalorder %s83_s28, %s83_s28 }
  0x2e   :  { %p13334_p5 = scmp.ne.s32.totalorder %s83_s28, %s13333_s3  ;;  %p13339_p7 = scmp.lt.s32.totalorder %s13333_s3, %s13333_s3 }
  0x30   :  { %p13340_p8 = por %p13339_p7, %p13338_p6 }
  0x32   :  { %p13341_p9 = pnand %p13340_p8, %p13334_p5 }
  0x34   :  { %13344 = shalt.err (!%p13341_p9)
}
  0x35   :  { %88 = dma.hbm_to_vmem [thread:$0]  %s14909_s5, 2048, %s83_s28, [#allocation13], %s13467_s13, %s13467_s13, %s13468_s14  }
  0x36   :  { %s13345_s20 = scalar_lea.hbm %s14904_s0, 6144 }
  0x37   :  { %p13346_p10 = scmp.ne.s32.totalorder %s14904_s0, %s13345_s20  ;;  %p13349_p11 = scmp.lt.u32.totalorder %s13345_s20, %s14904_s0 }
  0x39   :  { %p13351_p12 = pnand %p13349_p11, %p13346_p10 }
  0x3b   :  { %13354 = shalt.err (!%p13351_p12)
}
  0x3c   :  { %s13355_s1 = scalar_lea.vmem %s13553_s30, 6144  ;;  %p13360_p0 = scmp.lt.s32.totalorder %s13553_s30, %s13553_s30 }
  0x3d   :  { %p13356_p13 = scmp.ne.s32.totalorder %s13553_s30, %s13355_s1  ;;  %p13361_p1 = scmp.lt.s32.totalorder %s13355_s1, %s13355_s1 }
  0x3f   :  { %p13362_p2 = por %p13361_p1, %p13360_p0 }
  0x41   :  { %p13363_p3 = pnand %p13362_p2, %p13356_p13 }
  0x43   :  { %13366 = shalt.err (!%p13363_p3)
}
  0x44   :  { %28 = dma.hbm_to_vmem [thread:$0]  %s14904_s0, 6144, %s13553_s30, [#allocation4], %s13467_s13, %s13467_s13, %s13468_s14  }
  0x45   :  { %s13471_s26 = smov [#allocation8]   ;;  %s13472_s29 = smov [#allocation11]  }
  0x46   :  { %s46_s28 = sshll.u32 %s13471_s26, 4  ;;  %s70_s8 = sshll.u32 %s13472_s29, 4  ;;  %s47_s28 = int_to_ptr.vmem [resolvable:$true] %s46_s28  ;;  %s13590_s8 = int_to_ptr.vmem [resolvable:$true] %s70_s8 }
  0x47   :  { %s13367_s11 = scalar_lea.hbm %s14906_s2, 2048 }
  0x48   :  { %p13368_p4 = scmp.ne.s32.totalorder %s14906_s2, %s13367_s11  ;;  %p13371_p5 = scmp.lt.u32.totalorder %s13367_s11, %s14906_s2 }
  0x4a   :  { %p13373_p6 = pnand %p13371_p5, %p13368_p4 }
  0x4c   :  { %13376 = shalt.err (!%p13373_p6)
}
  0x4d   :  { %s13377_s0 = scalar_lea.vmem %s47_s28, 2048  ;;  %p13382_p8 = scmp.lt.s32.totalorder %s47_s28, %s47_s28 }
  0x4e   :  { %p13378_p7 = scmp.ne.s32.totalorder %s47_s28, %s13377_s0  ;;  %p13383_p9 = scmp.lt.s32.totalorder %s13377_s0, %s13377_s0 }
  0x50   :  { %p13384_p10 = por %p13383_p9, %p13382_p8 }
  0x52   :  { %p13385_p11 = pnand %p13384_p10, %p13378_p7 }
  0x54   :  { %13388 = shalt.err (!%p13385_p11)
}
  0x55   :  { %52 = dma.hbm_to_vmem [thread:$0]  %s14906_s2, 2048, %s47_s28, [#allocation7], %s13467_s13, %s13467_s13, %s13468_s14  }
  0x56   :  { %s13389_s19 = scalar_lea.hbm %s14908_s4, 2048 }
  0x57   :  { %p13390_p12 = scmp.ne.s32.totalorder %s14908_s4, %s13389_s19  ;;  %p13393_p13 = scmp.lt.u32.totalorder %s13389_s19, %s14908_s4 }
  0x59   :  { %p13395_p0 = pnand %p13393_p13, %p13390_p12 }
  0x5b   :  { %13398 = shalt.err (!%p13395_p0)
}
  0x5c   :  { %s13399_s24 = scalar_lea.vmem %s13590_s8, 2048  ;;  %p13404_p2 = scmp.lt.s32.totalorder %s13590_s8, %s13590_s8 }
  0x5d   :  { %p13400_p1 = scmp.ne.s32.totalorder %s13590_s8, %s13399_s24  ;;  %p13405_p3 = scmp.lt.s32.totalorder %s13399_s24, %s13399_s24 }
  0x5f   :  { %p13406_p4 = por %p13405_p3, %p13404_p2 }
  0x61   :  { %p13407_p5 = pnand %p13406_p4, %p13400_p1 }
  0x63   :  { %13410 = shalt.err (!%p13407_p5)
}
  0x64   :  { %76 = dma.hbm_to_vmem [thread:$0]  %s14908_s4, 2048, %s13590_s8, [#allocation10], %s13467_s13, %s13467_s13, %s13468_s14  }
  0x65   :  { %s13473_s5 = smov [#allocation14]   ;;  %s13411_s29 = scalar_lea.hbm %s14910_s6, 2048 }
  0x66   :  { %s94_s25 = sshll.u32 %s13473_s5, 4  ;;  %p13412_p6 = scmp.ne.s32.totalorder %s14910_s6, %s13411_s29  ;;  %s95_s25 = int_to_ptr.vmem [resolvable:$true] %s94_s25 }
  0x67   :  { %p13415_p7 = scmp.lt.u32.totalorder %s13411_s29, %s14910_s6 }
  0x69   :  { %p13417_p8 = pnand %p13415_p7, %p13412_p6 }
  0x6b   :  { %13420 = shalt.err (!%p13417_p8)
}
  0x6c   :  { %s13421_s15 = scalar_lea.vmem %s95_s25, 2048  ;;  %p13426_p10 = scmp.lt.s32.totalorder %s95_s25, %s95_s25 }
  0x6d   :  { %p13422_p9 = scmp.ne.s32.totalorder %s95_s25, %s13421_s15  ;;  %p13427_p11 = scmp.lt.s32.totalorder %s13421_s15, %s13421_s15 }
  0x6f   :  { %p13428_p12 = por %p13427_p11, %p13426_p10 }
  0x71   :  { %p13429_p13 = pnand %p13428_p12, %p13422_p9 }
  0x73   :  { %13432 = shalt.err (!%p13429_p13)
}
  0x74   :  { %100 = dma.hbm_to_vmem [thread:$0]  %s14910_s6, 2048, %s95_s25, [#allocation13], %s13467_s13, %s13467_s13, %s13468_s14  }
  0x75   :  { %13455 = dma.done.wait [#allocation4], 6144  }
  0x76   :  { %13456 = vsyncadd [#allocation4], 4294961152 }
  0x77   :  { %13457 = dma.done.wait [#allocation7], 4096  }
  0x78   :  { %13458 = vsyncadd [#allocation7], 4294963200 }
  0x79   :  { %13459 = dma.done.wait [#allocation10], 4096  }
  0x7a   :  { %13460 = vsyncadd [#allocation10], 4294963200 }
  0x7b   :  { %13461 = dma.done.wait [#allocation13], 4096  }
  0x7c   :  { %13462 = vsyncadd [#allocation13], 4294963200  ;;  %v122_v0 = vld [vmem:[#allocation6] sm:$0xff]  ;;  %v123_v1 = vld [vmem:[#allocation6 + $0x8] sm:$0xff]  ;;  %s13475_s6 = smov [#allocation15]  }
  0x7d   :  { %v124_v2 = vld [vmem:[#allocation6 + $0x10] sm:$0xff]  ;;  %v10748_v3 = vpack.c.bf16 %v123_v1, %v122_v0  ;;  %v125_v4 = vld [vmem:[#allocation6 + $0x18] sm:$0xff]  ;;  %v126_v6 = vld [vmem:[#allocation6 + $0x20] sm:$0xff]  ;;  %s6595_s16 = sshll.u32 %s13475_s6, 4  ;;  %s6596_s16 = int_to_ptr.vmem [resolvable:$true] %s6595_s16 }
  0x7e   :  { %v10752_v5 = vpack.c.bf16 %v125_v4, %v124_v2  ;;  %v127_v7 = vld [vmem:[#allocation6 + $0x28] sm:$0xff]  ;;  %v428_v9 = vld [vmem:[#allocation3 + $0x100] sm:$0xff]  ;;  %v128_v10 = vld [vmem:[#allocation6 + $0x30] sm:$0xff]  ;;  %s13433_s3 = scalar_lea.vmem %s6596_s16, 512  ;;  %p13438_p1 = scmp.lt.s32.totalorder %s6596_s16, %s6596_s16 }
  0x7f   :  { %10781 = vmatprep.subr.bf16.mxu1 %v10748_v3  ;;  %10749 = vmatprep.subr.bf16.mxu0 %v10748_v3  ;;  %v10756_v8 = vpack.c.bf16 %v127_v7, %v126_v6  ;;  %v129_v11 = vld [vmem:[#allocation6 + $0x38] sm:$0xff]  ;;  %v130_v13 = vld [vmem:[#allocation6 + $0x40] sm:$0xff]  ;;  %v131_v14 = vld [vmem:[#allocation6 + $0x48] sm:$0xff]  ;;  %p13434_p0 = scmp.ne.s32.totalorder %s6596_s16, %s13433_s3  ;;  %p13439_p2 = scmp.lt.s32.totalorder %s13433_s3, %s13433_s3 }
  0x80   :  { %10783 = vmatpush3.bf16.msra.mxu1 %v10748_v3  ;;  %10751 = vmatpush3.bf16.msra.mxu0 %v10748_v3  ;;  %v10760_v12 = vpack.c.bf16 %v129_v11, %v128_v10  ;;  %v10764_v15 = vpack.c.bf16 %v131_v14, %v130_v13  ;;  %v132_v16 = vld [vmem:[#allocation6 + $0x50] sm:$0xff]  ;;  %v133_v17 = vld [vmem:[#allocation6 + $0x58] sm:$0xff]  ;;  %v138_v18 = vld [vmem:[#allocation3] sm:$0xff] }
  0x81   :  { %10785 = vmatprep.subr.bf16.mxu1 %v10752_v5  ;;  %10753 = vmatprep.subr.bf16.mxu0 %v10752_v5  ;;  %v10768_v19 = vpack.c.bf16 %v133_v17, %v132_v16  ;;  %v134_v20 = vld [vmem:[#allocation6 + $0x60] sm:$0xff]  ;;  %v135_v21 = vld [vmem:[#allocation6 + $0x68] sm:$0xff]  ;;  %v136_v23 = vld [vmem:[#allocation6 + $0x70] sm:$0xff]  ;;  %p13440_p3 = por %p13439_p2, %p13438_p1 }
  0x82   :  { %8134 = vmatprep.mubr.f32.mxu1 %v428_v9  ;;  %8054 = vmatprep.mubr.f32.mxu0 %v138_v18  ;;  %v10772_v22 = vpack.c.bf16 %v135_v21, %v134_v20  ;;  %v137_v24 = vld [vmem:[#allocation6 + $0x78] sm:$0xff]  ;;  %v606_v26 = vld [vmem:[#allocation8] sm:$0xff]  ;;  %v607_v27 = vld [vmem:[#allocation8 + $0x8] sm:$0xff] }
  0x83   :  { %v10776_v25 = vpack.c.bf16 %v137_v24, %v136_v23  ;;  %v622_v28 = vld [vmem:[#allocation9] sm:$0xff]  ;;  %v623_v29 = vld [vmem:[#allocation9 + $0x8] sm:$0xff]  ;;  %v13642_v30 = vpack.c.bf16 %v607_v27, %v606_v26  ;;  %v608_v32 = vld [vmem:[#allocation8 + $0x10] sm:$0xff]  ;;  %p13441_p4 = pnand %p13440_p3, %p13434_p0 }
  0x84   :  { %10787 = vmatpush3.bf16.msra.mxu1 %v10752_v5  ;;  %10755 = vmatpush3.bf16.msra.mxu0 %v10752_v5  ;;  %v13644_v31 = vpack.c.bf16 %v623_v29, %v622_v28  ;;  %v609_v33 = vld [vmem:[#allocation8 + $0x18] sm:$0xff]  ;;  %v429_v34 = vld [vmem:[#allocation3 + $0x108] sm:$0xff]  ;;  %v430_v36 = vld [vmem:[#allocation3 + $0x110] sm:$0xff] }
  0x85   :  { %10789 = vmatprep.subr.bf16.mxu1 %v10756_v8  ;;  %10757 = vmatprep.subr.bf16.mxu0 %v10756_v8  ;;  %v139_v35 = vld [vmem:[#allocation3 + $0x8] sm:$0xff]  ;;  %v13647_v37 = vpack.c.bf16 %v609_v33, %v608_v32  ;;  %v610_v38 = vld [vmem:[#allocation8 + $0x20] sm:$0xff]  ;;  %v140_v40 = vld [vmem:[#allocation3 + $0x10] sm:$0xff] }
  0x86   :  { %v611_v39 = vld [vmem:[#allocation8 + $0x28] sm:$0xff]  ;;  %v624_v41 = vld [vmem:[#allocation9 + $0x10] sm:$0xff]  ;;  %v625_v42 = vld [vmem:[#allocation9 + $0x18] sm:$0xff] }
  0x87   :  { %v431_v43 = vld [vmem:[#allocation3 + $0x118] sm:$0xff]  ;;  %v432_v45 = vld [vmem:[#allocation3 + $0x120] sm:$0xff]  ;;  %v13652_v46 = vpack.c.bf16 %v611_v39, %v610_v38  ;;  %v612_v47 = vld [vmem:[#allocation8 + $0x30] sm:$0xff]  ;;  %v13655_v50 = vpack.c.bf16 %v625_v42, %v624_v41 }
  0x88   :  { %10791 = vmatpush3.bf16.msra.mxu1 %v10756_v8  ;;  %10759 = vmatpush3.bf16.msra.mxu0 %v10756_v8  ;;  %v141_v44 = vld [vmem:[#allocation3 + $0x18] sm:$0xff]  ;;  %v142_v49 = vld [vmem:[#allocation3 + $0x20] sm:$0xff]  ;;  %v627_v52 = vld [vmem:[#allocation9 + $0x28] sm:$0xff] }
  0x89   :  { %10793 = vmatprep.subr.bf16.mxu1 %v10760_v12  ;;  %10761 = vmatprep.subr.bf16.mxu0 %v10760_v12  ;;  %v613_v48 = vld [vmem:[#allocation8 + $0x38] sm:$0xff]  ;;  %v626_v51 = vld [vmem:[#allocation9 + $0x20] sm:$0xff]  ;;  %v433_v53 = vld [vmem:[#allocation3 + $0x128] sm:$0xff] }
  0x8a   :  { %v143_v54 = vld [vmem:[#allocation3 + $0x28] sm:$0xff]  ;;  %v434_v55 = vld [vmem:[#allocation3 + $0x130] sm:$0xff]  ;;  %v13659_v56 = vpack.c.bf16 %v613_v48, %v612_v47  ;;  %v614_v57 = vld [vmem:[#allocation8 + $0x40] sm:$0xff]  ;;  %v13662_v59 = vpack.c.bf16 %v627_v52, %v626_v51 }
  0x8b   :  { %v615_v58 = vld [vmem:[#allocation8 + $0x48] sm:$0xff]  ;;  %v144_v60 = vld [vmem:[#allocation3 + $0x30] sm:$0xff]  ;;  %v435_v61 = vld [vmem:[#allocation3 + $0x138] sm:$0xff] }
  0x8c   :  { %10795 = vmatpush3.bf16.msra.mxu1 %v10760_v12  ;;  %10763 = vmatpush3.bf16.msra.mxu0 %v10760_v12  ;;  %v145_v62 = vld [vmem:[#allocation3 + $0x38] sm:$0xff]  ;;  %v436_v63 = vld [vmem:[#allocation3 + $0x140] sm:$0xff]  ;;  %v13666_v0 = vpack.c.bf16 %v615_v58, %v614_v57  ;;  %v616_v1 = vld [vmem:[#allocation8 + $0x50] sm:$0xff] }
  0x8d   :  { %10797 = vmatprep.subr.bf16.mxu1 %v10764_v15  ;;  %10765 = vmatprep.subr.bf16.mxu0 %v10764_v15  ;;  %v617_v2 = vld [vmem:[#allocation8 + $0x58] sm:$0xff]  ;;  %v146_v3 = vld [vmem:[#allocation3 + $0x40] sm:$0xff]  ;;  %v628_v4 = vld [vmem:[#allocation9 + $0x30] sm:$0xff] }
  0x8e   :  { %v629_v5 = vld [vmem:[#allocation9 + $0x38] sm:$0xff]  ;;  %v437_v6 = vld [vmem:[#allocation3 + $0x148] sm:$0xff]  ;;  %v438_v8 = vld [vmem:[#allocation3 + $0x150] sm:$0xff]  ;;  %v13672_v9 = vpack.c.bf16 %v617_v2, %v616_v1 }
  0x8f   :  { %v147_v7 = vld [vmem:[#allocation3 + $0x48] sm:$0xff]  ;;  %v618_v10 = vld [vmem:[#allocation8 + $0x60] sm:$0xff]  ;;  %v148_v12 = vld [vmem:[#allocation3 + $0x50] sm:$0xff]  ;;  %v13675_v13 = vpack.c.bf16 %v629_v5, %v628_v4 }
  0x90   :  { %10799 = vmatpush3.bf16.msra.mxu1 %v10764_v15  ;;  %10767 = vmatpush3.bf16.msra.mxu0 %v10764_v15  ;;  %v619_v11 = vld [vmem:[#allocation8 + $0x68] sm:$0xff]  ;;  %v439_v14 = vld [vmem:[#allocation3 + $0x158] sm:$0xff]  ;;  %v440_v16 = vld [vmem:[#allocation3 + $0x160] sm:$0xff] }
  0x91   :  { %10801 = vmatprep.subr.bf16.mxu1 %v10768_v19  ;;  %10769 = vmatprep.subr.bf16.mxu0 %v10768_v19  ;;  %v149_v15 = vld [vmem:[#allocation3 + $0x58] sm:$0xff]  ;;  %v13679_v17 = vpack.c.bf16 %v619_v11, %v618_v10  ;;  %v620_v18 = vld [vmem:[#allocation8 + $0x70] sm:$0xff]  ;;  %v150_v20 = vld [vmem:[#allocation3 + $0x60] sm:$0xff] }
  0x92   :  { %v630_v21 = vld [vmem:[#allocation9 + $0x40] sm:$0xff]  ;;  %v441_v23 = vld [vmem:[#allocation3 + $0x168] sm:$0xff]  ;;  %v152_v27 = vld [vmem:[#allocation3 + $0x70] sm:$0xff] }
  0x93   :  { %v151_v24 = vld [vmem:[#allocation3 + $0x68] sm:$0xff]  ;;  %v443_v29 = vld [vmem:[#allocation3 + $0x178] sm:$0xff]  ;;  %v154_v33 = vld [vmem:[#allocation3 + $0x80] sm:$0xff] }
  0x94   :  { %10803 = vmatpush3.bf16.msra.mxu1 %v10768_v19  ;;  %10771 = vmatpush3.bf16.msra.mxu0 %v10768_v19  ;;  %v621_v19 = vld [vmem:[#allocation8 + $0x78] sm:$0xff]  ;;  %v155_v38 = vld [vmem:[#allocation3 + $0x88] sm:$0xff]  ;;  %v634_v39 = vld [vmem:[#allocation9 + $0x60] sm:$0xff] }
  0x95   :  { %10805 = vmatprep.subr.bf16.mxu1 %v10772_v22  ;;  %10773 = vmatprep.subr.bf16.mxu0 %v10772_v22  ;;  %v13684_v26 = vpack.c.bf16 %v621_v19, %v620_v18  ;;  %v153_v32 = vld [vmem:[#allocation3 + $0x78] sm:$0xff]  ;;  %v156_v41 = vld [vmem:[#allocation3 + $0x90] sm:$0xff]  ;;  %v159_v47 = vld [vmem:[#allocation3 + $0xa8] sm:$0xff] }
  0x96   :  { %v160_v48 = vld [vmem:[#allocation3 + $0xb0] sm:$0xff]  ;;  %v162_v51 = vld [vmem:[#allocation3 + $0xc0] sm:$0xff]  ;;  %v163_v52 = vld [vmem:[#allocation3 + $0xc8] sm:$0xff] }
  0x97   :  { %v167_v57 = vld [vmem:[#allocation3 + $0xe8] sm:$0xff]  ;;  %v636_v58 = vld [vmem:[#allocation9 + $0x70] sm:$0xff] }
  0x98   :  { %10807 = vmatpush3.bf16.msra.mxu1 %v10772_v22  ;;  %10775 = vmatpush3.bf16.msra.mxu0 %v10772_v22  ;;  %v631_v22 = vld [vmem:[#allocation9 + $0x48] sm:$0xff] }
  0x99   :  { %10809 = vmatprep.subr.bf16.mxu1 %v10776_v25  ;;  %10777 = vmatprep.subr.bf16.mxu0 %v10776_v25  ;;  %v13687_v28 = vpack.c.bf16 %v631_v22, %v630_v21 }
  0x9c   :  { %10811 = vmatpush3.bf16.msra.mxu1 %v10776_v25  ;;  %10779 = vmatpush3.bf16.msra.mxu0 %v10776_v25  ;;  %v442_v25 = vld [vmem:[#allocation3 + $0x170] sm:$0xff] }
  0x9d   :  { %10813 = vmatprep.subr.bf16.mxu1 %v13642_v30  ;;  %10845 = vmatprep.subr.bf16.mxu0 %v13644_v31 }
  0x9f   :  { %8135 = vmatmul.mubr.f32.vlgmr.msra.gmra.mrb[0].mxu1 %v429_v34  ;;  %8055 = vmatmul.mubr.f32.vlgmr.msra.gmra.mrb[0].mxu0 %v139_v35  ;;  %v632_v34 = vld [vmem:[#allocation9 + $0x50] sm:$0xff]  ;;  %v633_v35 = vld [vmem:[#allocation9 + $0x58] sm:$0xff] }
  0xa0   :  { %10815 = vmatpush3.bf16.msra.mxu1 %v13642_v30  ;;  %8137 = vmatprep.mubr.f32.mxu1 %v430_v36  ;;  %v13474_v36 = vmov 0.0   ;;  %v13695_v42 = vpack.c.bf16 %v633_v35, %v632_v34 }
  0xa1   :  { %10817 = vmatprep.subr.bf16.mxu1 %v13647_v37  ;;  %8057 = vmatprep.mubr.f32.mxu0 %v140_v40  ;;  %v635_v40 = vld [vmem:[#allocation9 + $0x68] sm:$0xff] }
  0xa2   :  { %10847 = vmatpush3.bf16.msra.mxu0 %v13644_v31 }
  0xa3   :  { %8138 = vmatmul.mubr.f32.gmra.mrb[2].mxu1 %v431_v43  ;;  %8058 = vmatmul.mubr.f32.gmra.mrb[2].mxu0 %v141_v44  ;;  %v13699_v43 = vpack.c.bf16 %v635_v40, %v634_v39  ;;  %v157_v44 = vld [vmem:[#allocation3 + $0x98] sm:$0xff] }
  0xa4   :  { %10819 = vmatpush3.bf16.msra.mxu1 %v13647_v37  ;;  %8140 = vmatprep.mubr.f32.mxu1 %v432_v45  ;;  %v158_v45 = vld [vmem:[#allocation3 + $0xa0] sm:$0xff] }
  0xa5   :  { %10821 = vmatprep.subr.bf16.mxu1 %v13652_v46  ;;  %8060 = vmatprep.mubr.f32.mxu0 %v142_v49  ;;  %v161_v49 = vld [vmem:[#allocation3 + $0xb8] sm:$0xff] }
  0xa6   :  { %10849 = vmatprep.subr.bf16.mxu0 %v13655_v50 }
  0xa7   :  { %8141 = vmatmul.mubr.f32.gmra.mrb[4].mxu1 %v433_v53  ;;  %8061 = vmatmul.mubr.f32.gmra.mrb[4].mxu0 %v143_v54  ;;  %v164_v53 = vld [vmem:[#allocation3 + $0xd0] sm:$0xff]  ;;  %v165_v54 = vld [vmem:[#allocation3 + $0xd8] sm:$0xff] }
  0xa8   :  { %10823 = vmatpush3.bf16.msra.mxu1 %v13652_v46  ;;  %8143 = vmatprep.mubr.f32.mxu1 %v434_v55  ;;  %v166_v55 = vld [vmem:[#allocation3 + $0xe0] sm:$0xff] }
  0xa9   :  { %10825 = vmatprep.subr.bf16.mxu1 %v13659_v56  ;;  %10851 = vmatpush3.bf16.msra.mxu0 %v13655_v50 }
  0xaa   :  { %8063 = vmatprep.mubr.f32.mxu0 %v144_v60  ;;  %10853 = vmatprep.subr.bf16.mxu0 %v13662_v59  ;;  %v637_v60 = vld [vmem:[#allocation9 + $0x78] sm:$0xff] }
  0xab   :  { %8144 = vmatmul.mubr.f32.gmra.mrb[6].mxu1 %v435_v61  ;;  %8064 = vmatmul.mubr.f32.gmra.mrb[6].mxu0 %v145_v62  ;;  %v13718_v61 = vpack.c.bf16 %v637_v60, %v636_v58  ;;  %v168_v62 = vld [vmem:[#allocation3 + $0xf0] sm:$0xff] }
  0xac   :  { %10827 = vmatpush3.bf16.msra.mxu1 %v13659_v56  ;;  %8146 = vmatprep.mubr.f32.mxu1 %v436_v63  ;;  %v169_v63 = vld [vmem:[#allocation3 + $0xf8] sm:$0xff] }
  0xad   :  { %10829 = vmatprep.subr.bf16.mxu1 %v13666_v0  ;;  %8066 = vmatprep.mubr.f32.mxu0 %v146_v3 }
  0xae   :  { %10855 = vmatpush3.bf16.msra.mxu0 %v13662_v59 }
  0xaf   :  { %8147 = vmatmul.mubr.f32.gmra.mrb[8].mxu1 %v437_v6  ;;  %8067 = vmatmul.mubr.f32.gmra.mrb[8].mxu0 %v147_v7 }
  0xb0   :  { %10831 = vmatpush3.bf16.msra.mxu1 %v13666_v0  ;;  %8149 = vmatprep.mubr.f32.mxu1 %v438_v8 }
  0xb1   :  { %10833 = vmatprep.subr.bf16.mxu1 %v13672_v9  ;;  %8069 = vmatprep.mubr.f32.mxu0 %v148_v12 }
  0xb2   :  { %10857 = vmatprep.subr.bf16.mxu0 %v13675_v13 }
  0xb3   :  { %8150 = vmatmul.mubr.f32.gmra.mrb[10].mxu1 %v439_v14  ;;  %8070 = vmatmul.mubr.f32.gmra.mrb[10].mxu0 %v149_v15 }
  0xb4   :  { %10835 = vmatpush3.bf16.msra.mxu1 %v13672_v9  ;;  %8152 = vmatprep.mubr.f32.mxu1 %v440_v16 }
  0xb5   :  { %10837 = vmatprep.subr.bf16.mxu1 %v13679_v17  ;;  %8072 = vmatprep.mubr.f32.mxu0 %v150_v20 }
  0xb6   :  { %10859 = vmatpush3.bf16.msra.mxu0 %v13675_v13 }
  0xb7   :  { %8153 = vmatmul.mubr.f32.gmra.mrb[12].mxu1 %v441_v23  ;;  %8073 = vmatmul.mubr.f32.gmra.mrb[12].mxu0 %v151_v24 }
  0xb8   :  { %10839 = vmatpush3.bf16.msra.mxu1 %v13679_v17  ;;  %8155 = vmatprep.mubr.f32.mxu1 %v442_v25 }
  0xb9   :  { %10841 = vmatprep.subr.bf16.mxu1 %v13684_v26  ;;  %8075 = vmatprep.mubr.f32.mxu0 %v152_v27 }
  0xba   :  { %10861 = vmatprep.subr.bf16.mxu0 %v13687_v28 }
  0xbb   :  { %8156 = vmatmul.mubr.f32.gmra.mrb[14].mxu1 %v443_v29  ;;  %8076 = vmatmul.mubr.f32.gmra.mrb[14].mxu0 %v153_v32 }
  0xbc   :  { %10843 = vmatpush3.bf16.msra.mxu1 %v13684_v26  ;;  %8190 = vmatprep.mubr.f32.mxu1 %v13474_v36 }
  0xbd   :  { %8078 = vmatprep.mubr.f32.mxu0 %v154_v33  ;;  %10877 = vmatprep.subr.bf16.mxu1 %v13644_v31 }
  0xbe   :  { %10863 = vmatpush3.bf16.msra.mxu0 %v13687_v28 }
  0xbf   :  { %8191 = vmatmul.mubr.f32.vlgmr.msra.gmra.mrb[16].mxu1 %v13474_v36  ;;  %8079 = vmatmul.mubr.f32.gmra.mrb[16].mxu0 %v155_v38 }
  0xc0   :  { %10879 = vmatpush3.bf16.msra.mxu1 %v13644_v31  ;;  %8081 = vmatprep.mubr.f32.mxu0 %v156_v41 }
  0xc1   :  { %10881 = vmatprep.subr.bf16.mxu1 %v13655_v50  ;;  %10865 = vmatprep.subr.bf16.mxu0 %v13695_v42 }
  0xc2   :  { %10867 = vmatpush3.bf16.msra.mxu0 %v13695_v42 }
  0xc3   :  { %8082 = vmatmul.mubr.f32.gmra.mrb[18].mxu0 %v157_v44  ;;  %10869 = vmatprep.subr.bf16.mxu0 %v13699_v43 }
  0xc4   :  { %10883 = vmatpush3.bf16.msra.mxu1 %v13655_v50  ;;  %8084 = vmatprep.mubr.f32.mxu0 %v158_v45 }
  0xc5   :  { %10885 = vmatprep.subr.bf16.mxu1 %v13662_v59 }
  0xc6   :  { %10871 = vmatpush3.bf16.msra.mxu0 %v13699_v43 }
  0xc7   :  { %8085 = vmatmul.mubr.f32.gmra.mrb[20].mxu0 %v159_v47  ;;  %10873 = vmatprep.subr.bf16.mxu0 %v13718_v61 }
  0xc8   :  { %10887 = vmatpush3.bf16.msra.mxu1 %v13662_v59  ;;  %8087 = vmatprep.mubr.f32.mxu0 %v160_v48 }
  0xc9   :  { %10889 = vmatprep.subr.bf16.mxu1 %v13675_v13 }
  0xca   :  { %10875 = vmatpush3.bf16.msra.mxu0 %v13718_v61 }
  0xcb   :  { %8088 = vmatmul.mubr.f32.gmra.mrb[22].mxu0 %v161_v49  ;;  %10909 = vmatprep.subr.bf16.mxu0 %v13642_v30 }
  0xcc   :  { %10891 = vmatpush3.bf16.msra.mxu1 %v13675_v13  ;;  %8090 = vmatprep.mubr.f32.mxu0 %v162_v51 }
  0xcd   :  { %10893 = vmatprep.subr.bf16.mxu1 %v13687_v28 }
  0xcf   :  { %8091 = vmatmul.mubr.f32.gmra.mrb[24].mxu0 %v163_v52 }
  0xd0   :  { %10895 = vmatpush3.bf16.msra.mxu1 %v13687_v28  ;;  %8093 = vmatprep.mubr.f32.mxu0 %v164_v53 }
  0xd1   :  { %10897 = vmatprep.subr.bf16.mxu1 %v13695_v42 }
  0xd3   :  { %8094 = vmatmul.mubr.f32.gmra.mrb[26].mxu0 %v165_v54 }
  0xd4   :  { %10899 = vmatpush3.bf16.msra.mxu1 %v13695_v42  ;;  %8096 = vmatprep.mubr.f32.mxu0 %v166_v55 }
  0xd5   :  { %10901 = vmatprep.subr.bf16.mxu1 %v13699_v43 }
  0xd7   :  { %8097 = vmatmul.mubr.f32.gmra.mrb[28].mxu0 %v167_v57 }
  0xd8   :  { %10903 = vmatpush3.bf16.msra.mxu1 %v13699_v43  ;;  %8099 = vmatprep.mubr.f32.mxu0 %v168_v62 }
  0xd9   :  { %10905 = vmatprep.subr.bf16.mxu1 %v13718_v61 }
  0xdb   :  { %8100 = vmatmul.mubr.f32.gmra.mrb[30].mxu0 %v169_v63 }
  0xdc   :  { %10907 = vmatpush3.bf16.msra.mxu1 %v13718_v61 }
  0xdd   :  { %10973 = vmatprep.subr.bf16.mxu1 %v13644_v31 }
 0x172   :  { %v8056_v1 = vpop.f32.mrb[0].mxu0 }
 0x173   :  { %v236_v2 = vpop.f32.mrb[1].mxu0 }
 0x176   :  { %v8059_v3 = vpop.f32.mrb[2].mxu0 }
 0x177   :  { %v246_v4 = vpop.f32.mrb[3].mxu0 }
 0x192   :  { %v8192_v5 = vpop.f32.mrb[16].mxu1 }
 0x193   :  { %v718_v6 = vadd.f32 %v8192_v5, %v8056_v1  ;;  %v13726_v7 = vadd.f32 %v8192_v5, %v8059_v3  ;;  %v708_v8 = vpop.f32.mrb[17].mxu1 }
 0x194   :  { %v717_v10 = vadd.f32 %v708_v8, %v236_v2  ;;  %v721_v11 = vadd.f32 %v708_v8, %v246_v4 }
 0x195   :  { %v720_v15 = vmax.f32 %v718_v6, 0.0  ;;  %v724_v16 = vmax.f32 %v13726_v7, 0.0 }
 0x196   :  { %v719_v12 = vmax.f32 %v717_v10, 0.0  ;;  %v723_v14 = vmax.f32 %v721_v11, 0.0 }
 0x198   :  { %8225 = vmatprep.mubr.f32.mxu0 %v719_v12  ;;  %8260 = vmatprep.mubr.f32.mxu1 %v723_v14 }
 0x199   :  { %8226 = vmatmul.mubr.f32.vlgmr.msra.gmra.mrb[32].mxu0 %v720_v15  ;;  %8261 = vmatmul.mubr.f32.vlgmr.msra.gmra.mrb[18].mxu1 %v724_v16 }
 0x19a   :  { %10911 = vmatpush3.bf16.msra.mxu0 %v13642_v30  ;;  %8295 = vmatprep.mubr.f32.mxu0 %v719_v12 }
 0x19b   :  { %10913 = vmatprep.subr.bf16.mxu0 %v13647_v37  ;;  %10975 = vmatpush3.bf16.msra.mxu1 %v13644_v31 }
 0x19c   :  { %10977 = vmatprep.subr.bf16.mxu1 %v13655_v50 }
 0x19e   :  { %10915 = vmatpush3.bf16.msra.mxu0 %v13647_v37 }
 0x19f   :  { %10917 = vmatprep.subr.bf16.mxu0 %v13652_v46  ;;  %10979 = vmatpush3.bf16.msra.mxu1 %v13655_v50 }
 0x1a0   :  { %10981 = vmatprep.subr.bf16.mxu1 %v13662_v59 }
 0x1a2   :  { %10919 = vmatpush3.bf16.msra.mxu0 %v13652_v46 }
 0x1a3   :  { %10921 = vmatprep.subr.bf16.mxu0 %v13659_v56  ;;  %10983 = vmatpush3.bf16.msra.mxu1 %v13662_v59 }
 0x1a4   :  { %10985 = vmatprep.subr.bf16.mxu1 %v13675_v13 }
 0x1a6   :  { %10923 = vmatpush3.bf16.msra.mxu0 %v13659_v56 }
 0x1a7   :  { %10925 = vmatprep.subr.bf16.mxu0 %v13666_v0  ;;  %10987 = vmatpush3.bf16.msra.mxu1 %v13675_v13 }
 0x1a8   :  { %10989 = vmatprep.subr.bf16.mxu1 %v13687_v28 }
 0x1aa   :  { %10927 = vmatpush3.bf16.msra.mxu0 %v13666_v0 }
 0x1ab   :  { %10929 = vmatprep.subr.bf16.mxu0 %v13672_v9  ;;  %10991 = vmatpush3.bf16.msra.mxu1 %v13687_v28 }
 0x1ac   :  { %10993 = vmatprep.subr.bf16.mxu1 %v13695_v42 }
 0x1ae   :  { %10931 = vmatpush3.bf16.msra.mxu0 %v13672_v9 }
 0x1af   :  { %10933 = vmatprep.subr.bf16.mxu0 %v13679_v17  ;;  %10995 = vmatpush3.bf16.msra.mxu1 %v13695_v42 }
 0x1b0   :  { %10997 = vmatprep.subr.bf16.mxu1 %v13699_v43 }
 0x1b2   :  { %10935 = vmatpush3.bf16.msra.mxu0 %v13679_v17 }
 0x1b3   :  { %10937 = vmatprep.subr.bf16.mxu0 %v13684_v26  ;;  %10999 = vmatpush3.bf16.msra.mxu1 %v13699_v43 }
 0x1b4   :  { %11001 = vmatprep.subr.bf16.mxu1 %v13718_v61 }
 0x1b6   :  { %10939 = vmatpush3.bf16.msra.mxu0 %v13684_v26 }
 0x1b7   :  { %10941 = vmatprep.subr.bf16.mxu0 %v13642_v30  ;;  %11003 = vmatpush3.bf16.msra.mxu1 %v13718_v61 }
 0x1b8   :  { %11005 = vmatprep.subr.bf16.mxu1 %v13644_v31 }
 0x1b9   :  { %8296 = vmatmul.mubr.f32.vlgmr.msra.gmra.mrb[4].mxu0 %v720_v15 }
 0x1ba   :  { %10943 = vmatpush3.bf16.msra.mxu0 %v13642_v30  ;;  %8330 = vmatprep.mubr.f32.mxu0 %v723_v14 }
 0x1bb   :  { %10945 = vmatprep.subr.bf16.mxu0 %v13647_v37 }
 0x1be   :  { %10947 = vmatpush3.bf16.msra.mxu0 %v13647_v37 }
 0x1bf   :  { %10949 = vmatprep.subr.bf16.mxu0 %v13652_v46 }
 0x1c2   :  { %10951 = vmatpush3.bf16.msra.mxu0 %v13652_v46 }
 0x1c3   :  { %10953 = vmatprep.subr.bf16.mxu0 %v13659_v56 }
 0x1c6   :  { %10955 = vmatpush3.bf16.msra.mxu0 %v13659_v56 }
 0x1c7   :  { %10957 = vmatprep.subr.bf16.mxu0 %v13666_v0 }
 0x1ca   :  { %10959 = vmatpush3.bf16.msra.mxu0 %v13666_v0 }
 0x1cb   :  { %10961 = vmatprep.subr.bf16.mxu0 %v13672_v9 }
 0x1ce   :  { %10963 = vmatpush3.bf16.msra.mxu0 %v13672_v9 }
 0x1cf   :  { %10965 = vmatprep.subr.bf16.mxu0 %v13679_v17 }
 0x1d2   :  { %10967 = vmatpush3.bf16.msra.mxu0 %v13679_v17 }
 0x1d3   :  { %10969 = vmatprep.subr.bf16.mxu0 %v13684_v26 }
 0x1d6   :  { %10971 = vmatpush3.bf16.msra.mxu0 %v13684_v26 }
 0x1d7   :  { %11037 = vmatprep.subr.bf16.mxu0 %v13642_v30 }
 0x1d9   :  { %8331 = vmatmul.mubr.f32.vlgmr.msra.gmra.mrb[6].mxu0 %v724_v16 }
 0x1da   :  { %11039 = vmatpush3.bf16.msra.mxu0 %v13642_v30 }
 0x1db   :  { %11041 = vmatprep.subr.bf16.mxu0 %v13647_v37 }
 0x1de   :  { %11043 = vmatpush3.bf16.msra.mxu0 %v13647_v37 }
 0x1df   :  { %11045 = vmatprep.subr.bf16.mxu0 %v13652_v46 }
 0x1e2   :  { %11047 = vmatpush3.bf16.msra.mxu0 %v13652_v46 }
 0x1e3   :  { %11049 = vmatprep.subr.bf16.mxu0 %v13659_v56 }
 0x1e6   :  { %11051 = vmatpush3.bf16.msra.mxu0 %v13659_v56 }
 0x1e7   :  { %11053 = vmatprep.subr.bf16.mxu0 %v13666_v0 }
 0x1ea   :  { %11055 = vmatpush3.bf16.msra.mxu0 %v13666_v0 }
 0x1eb   :  { %11057 = vmatprep.subr.bf16.mxu0 %v13672_v9 }
 0x1ee   :  { %11059 = vmatpush3.bf16.msra.mxu0 %v13672_v9 }
 0x1ef   :  { %11061 = vmatprep.subr.bf16.mxu0 %v13679_v17 }
 0x1f2   :  { %11063 = vmatpush3.bf16.msra.mxu0 %v13679_v17 }
 0x1f3   :  { %11065 = vmatprep.subr.bf16.mxu0 %v13684_v26 }
 0x1f6   :  { %11067 = vmatpush3.bf16.msra.mxu0 %v13684_v26 }
 0x1f7   :  { %11069 = vmatprep.subr.bf16.mxu0 %v13642_v30 }
 0x26c   :  { %v13793_v18 = vpop.f32.mrb[32].mxu0  ;;  %v13795_v19 = vpop.f32.mrb[18].mxu1 }
 0x26d   :  { %v13797_v20 = vpop.f32.mrb[33].mxu0  ;;  %v13799_v21 = vpop.f32.mrb[19].mxu1 }
 0x28c   :  { %v8297_v22 = vpop.f32.mrb[4].mxu0 }
 0x28d   :  { %v950_v23 = vpop.f32.mrb[5].mxu0  ;;  %v962_v25 = vmax.f32 %v8297_v22, 0.0 }
 0x28e   :  { %v961_v24 = vmax.f32 %v950_v23, 0.0 }
 0x290   :  { %8365 = vmatprep.mubr.f32.mxu1 %v961_v24  ;;  %8435 = vmatprep.mubr.f32.mxu0 %v961_v24 }
 0x291   :  { %8366 = vmatmul.mubr.f32.vlgmr.msra.gmra.mrb[20].mxu1 %v962_v25  ;;  %8436 = vmatmul.mubr.f32.vlgmr.msra.gmra.mrb[8].mxu0 %v962_v25 }
 0x292   :  { %11007 = vmatpush3.bf16.msra.mxu1 %v13644_v31  ;;  %11071 = vmatpush3.bf16.msra.mxu0 %v13642_v30 }
 0x293   :  { %11009 = vmatprep.subr.bf16.mxu1 %v13655_v50  ;;  %11073 = vmatprep.subr.bf16.mxu0 %v13647_v37 }
 0x296   :  { %11011 = vmatpush3.bf16.msra.mxu1 %v13655_v50  ;;  %11075 = vmatpush3.bf16.msra.mxu0 %v13647_v37 }
 0x297   :  { %11013 = vmatprep.subr.bf16.mxu1 %v13662_v59  ;;  %11077 = vmatprep.subr.bf16.mxu0 %v13652_v46 }
 0x29a   :  { %11015 = vmatpush3.bf16.msra.mxu1 %v13662_v59  ;;  %11079 = vmatpush3.bf16.msra.mxu0 %v13652_v46 }
 0x29b   :  { %11017 = vmatprep.subr.bf16.mxu1 %v13675_v13  ;;  %11081 = vmatprep.subr.bf16.mxu0 %v13659_v56 }
 0x29e   :  { %11019 = vmatpush3.bf16.msra.mxu1 %v13675_v13  ;;  %11083 = vmatpush3.bf16.msra.mxu0 %v13659_v56 }
 0x29f   :  { %11021 = vmatprep.subr.bf16.mxu1 %v13687_v28  ;;  %11085 = vmatprep.subr.bf16.mxu0 %v13666_v0 }
 0x2a2   :  { %11023 = vmatpush3.bf16.msra.mxu1 %v13687_v28  ;;  %11087 = vmatpush3.bf16.msra.mxu0 %v13666_v0 }
 0x2a3   :  { %11025 = vmatprep.subr.bf16.mxu1 %v13695_v42  ;;  %11089 = vmatprep.subr.bf16.mxu0 %v13672_v9 }
 0x2a6   :  { %11027 = vmatpush3.bf16.msra.mxu1 %v13695_v42  ;;  %11091 = vmatpush3.bf16.msra.mxu0 %v13672_v9 }
 0x2a7   :  { %11029 = vmatprep.subr.bf16.mxu1 %v13699_v43  ;;  %11093 = vmatprep.subr.bf16.mxu0 %v13679_v17 }
 0x2aa   :  { %11031 = vmatpush3.bf16.msra.mxu1 %v13699_v43  ;;  %11095 = vmatpush3.bf16.msra.mxu0 %v13679_v17 }
 0x2ab   :  { %11033 = vmatprep.subr.bf16.mxu1 %v13718_v61  ;;  %11097 = vmatprep.subr.bf16.mxu0 %v13684_v26 }
 0x2ac   :  { %v8332_v27 = vpop.f32.mrb[6].mxu0 }
 0x2ad   :  { %v1029_v29 = vpop.f32.mrb[7].mxu0  ;;  %v1041_v33 = vmax.f32 %v8332_v27, 0.0 }
 0x2ae   :  { %v1040_v32 = vmax.f32 %v1029_v29, 0.0  ;;  %11035 = vmatpush3.bf16.msra.mxu1 %v13718_v61  ;;  %11099 = vmatpush3.bf16.msra.mxu0 %v13684_v26 }
 0x2af   :  { %11101 = vmatprep.subr.bf16.mxu1 %v13644_v31  ;;  %11165 = vmatprep.subr.bf16.mxu0 %v13642_v30 }
 0x2b0   :  { %8400 = vmatprep.mubr.f32.mxu1 %v1040_v32  ;;  %8470 = vmatprep.mubr.f32.mxu0 %v1040_v32 }
 0x2b1   :  { %8401 = vmatmul.mubr.f32.vlgmr.msra.gmra.mrb[22].mxu1 %v1041_v33  ;;  %8471 = vmatmul.mubr.f32.vlgmr.msra.gmra.mrb[10].mxu0 %v1041_v33 }
 0x2b2   :  { %11103 = vmatpush3.bf16.msra.mxu1 %v13644_v31  ;;  %11167 = vmatpush3.bf16.msra.mxu0 %v13642_v30 }
 0x2b3   :  { %11105 = vmatprep.subr.bf16.mxu1 %v13655_v50  ;;  %11169 = vmatprep.subr.bf16.mxu0 %v13647_v37 }
 0x2b6   :  { %11107 = vmatpush3.bf16.msra.mxu1 %v13655_v50  ;;  %11171 = vmatpush3.bf16.msra.mxu0 %v13647_v37 }
 0x2b7   :  { %11109 = vmatprep.subr.bf16.mxu1 %v13662_v59  ;;  %11173 = vmatprep.subr.bf16.mxu0 %v13652_v46 }
 0x2ba   :  { %11111 = vmatpush3.bf16.msra.mxu1 %v13662_v59  ;;  %11175 = vmatpush3.bf16.msra.mxu0 %v13652_v46 }
 0x2bb   :  { %11113 = vmatprep.subr.bf16.mxu1 %v13675_v13  ;;  %11177 = vmatprep.subr.bf16.mxu0 %v13659_v56 }
 0x2be   :  { %11115 = vmatpush3.bf16.msra.mxu1 %v13675_v13  ;;  %11179 = vmatpush3.bf16.msra.mxu0 %v13659_v56 }
 0x2bf   :  { %11117 = vmatprep.subr.bf16.mxu1 %v13687_v28  ;;  %11181 = vmatprep.subr.bf16.mxu0 %v13666_v0 }
 0x2c2   :  { %11119 = vmatpush3.bf16.msra.mxu1 %v13687_v28  ;;  %11183 = vmatpush3.bf16.msra.mxu0 %v13666_v0 }
 0x2c3   :  { %11121 = vmatprep.subr.bf16.mxu1 %v13695_v42  ;;  %11185 = vmatprep.subr.bf16.mxu0 %v13672_v9 }
 0x2c6   :  { %11123 = vmatpush3.bf16.msra.mxu1 %v13695_v42  ;;  %11187 = vmatpush3.bf16.msra.mxu0 %v13672_v9 }
 0x2c7   :  { %11125 = vmatprep.subr.bf16.mxu1 %v13699_v43  ;;  %11189 = vmatprep.subr.bf16.mxu0 %v13679_v17 }
 0x2ca   :  { %11127 = vmatpush3.bf16.msra.mxu1 %v13699_v43  ;;  %11191 = vmatpush3.bf16.msra.mxu0 %v13679_v17 }
 0x2cb   :  { %11129 = vmatprep.subr.bf16.mxu1 %v13718_v61  ;;  %11193 = vmatprep.subr.bf16.mxu0 %v13684_v26 }
 0x2ce   :  { %11131 = vmatpush3.bf16.msra.mxu1 %v13718_v61  ;;  %11195 = vmatpush3.bf16.msra.mxu0 %v13684_v26 }
 0x2cf   :  { %11133 = vmatprep.subr.bf16.mxu1 %v13644_v31  ;;  %11197 = vmatprep.subr.bf16.mxu0 %v13642_v30 }
 0x364   :  { %v8437_v34 = vpop.f32.mrb[8].mxu0 }
 0x365   :  { %v1267_v35 = vpop.f32.mrb[9].mxu0  ;;  %v1279_v39 = vmax.f32 %v8437_v34, 0.0 }
 0x366   :  { %v1278_v38 = vmax.f32 %v1267_v35, 0.0 }
 0x368   :  { %8505 = vmatprep.mubr.f32.mxu1 %v1278_v38  ;;  %8575 = vmatprep.mubr.f32.mxu0 %v1278_v38 }
 0x369   :  { %8506 = vmatmul.mubr.f32.vlgmr.msra.gmra.mrb[24].mxu1 %v1279_v39  ;;  %8576 = vmatmul.mubr.f32.vlgmr.msra.gmra.mrb[12].mxu0 %v1279_v39 }
 0x36a   :  { %11135 = vmatpush3.bf16.msra.mxu1 %v13644_v31  ;;  %11199 = vmatpush3.bf16.msra.mxu0 %v13642_v30 }
 0x36b   :  { %11137 = vmatprep.subr.bf16.mxu1 %v13655_v50  ;;  %11201 = vmatprep.subr.bf16.mxu0 %v13647_v37 }
 0x36e   :  { %11139 = vmatpush3.bf16.msra.mxu1 %v13655_v50  ;;  %11203 = vmatpush3.bf16.msra.mxu0 %v13647_v37 }
 0x36f   :  { %11141 = vmatprep.subr.bf16.mxu1 %v13662_v59  ;;  %11205 = vmatprep.subr.bf16.mxu0 %v13652_v46 }
 0x372   :  { %11143 = vmatpush3.bf16.msra.mxu1 %v13662_v59  ;;  %11207 = vmatpush3.bf16.msra.mxu0 %v13652_v46 }
 0x373   :  { %11145 = vmatprep.subr.bf16.mxu1 %v13675_v13  ;;  %11209 = vmatprep.subr.bf16.mxu0 %v13659_v56 }
 0x376   :  { %11147 = vmatpush3.bf16.msra.mxu1 %v13675_v13  ;;  %11211 = vmatpush3.bf16.msra.mxu0 %v13659_v56 }
 0x377   :  { %11149 = vmatprep.subr.bf16.mxu1 %v13687_v28  ;;  %11213 = vmatprep.subr.bf16.mxu0 %v13666_v0 }
 0x37a   :  { %11151 = vmatpush3.bf16.msra.mxu1 %v13687_v28  ;;  %11215 = vmatpush3.bf16.msra.mxu0 %v13666_v0 }
 0x37b   :  { %11153 = vmatprep.subr.bf16.mxu1 %v13695_v42  ;;  %11217 = vmatprep.subr.bf16.mxu0 %v13672_v9 }
 0x37e   :  { %11155 = vmatpush3.bf16.msra.mxu1 %v13695_v42  ;;  %11219 = vmatpush3.bf16.msra.mxu0 %v13672_v9 }
 0x37f   :  { %11157 = vmatprep.subr.bf16.mxu1 %v13699_v43  ;;  %11221 = vmatprep.subr.bf16.mxu0 %v13679_v17 }
 0x382   :  { %11159 = vmatpush3.bf16.msra.mxu1 %v13699_v43  ;;  %11223 = vmatpush3.bf16.msra.mxu0 %v13679_v17 }
 0x383   :  { %11161 = vmatprep.subr.bf16.mxu1 %v13718_v61  ;;  %11225 = vmatprep.subr.bf16.mxu0 %v13684_v26 }
 0x384   :  { %v8472_v40 = vpop.f32.mrb[10].mxu0 }
 0x385   :  { %v1346_v41 = vpop.f32.mrb[11].mxu0  ;;  %v1358_v45 = vmax.f32 %v8472_v40, 0.0 }
 0x386   :  { %v1357_v44 = vmax.f32 %v1346_v41, 0.0  ;;  %11163 = vmatpush3.bf16.msra.mxu1 %v13718_v61  ;;  %11227 = vmatpush3.bf16.msra.mxu0 %v13684_v26 }
 0x387   :  { %11229 = vmatprep.subr.bf16.mxu1 %v13644_v31  ;;  %11293 = vmatprep.subr.bf16.mxu0 %v13642_v30 }
 0x388   :  { %8540 = vmatprep.mubr.f32.mxu1 %v1357_v44  ;;  %8610 = vmatprep.mubr.f32.mxu0 %v1357_v44 }
 0x389   :  { %8541 = vmatmul.mubr.f32.vlgmr.msra.gmra.mrb[26].mxu1 %v1358_v45  ;;  %8611 = vmatmul.mubr.f32.vlgmr.msra.gmra.mrb[14].mxu0 %v1358_v45 }
 0x38a   :  { %11231 = vmatpush3.bf16.msra.mxu1 %v13644_v31  ;;  %11295 = vmatpush3.bf16.msra.mxu0 %v13642_v30 }
 0x38b   :  { %11233 = vmatprep.subr.bf16.mxu1 %v13655_v50  ;;  %11297 = vmatprep.subr.bf16.mxu0 %v13647_v37 }
 0x38e   :  { %11235 = vmatpush3.bf16.msra.mxu1 %v13655_v50  ;;  %11299 = vmatpush3.bf16.msra.mxu0 %v13647_v37 }
 0x38f   :  { %11237 = vmatprep.subr.bf16.mxu1 %v13662_v59  ;;  %11301 = vmatprep.subr.bf16.mxu0 %v13652_v46 }
 0x392   :  { %11239 = vmatpush3.bf16.msra.mxu1 %v13662_v59  ;;  %11303 = vmatpush3.bf16.msra.mxu0 %v13652_v46 }
 0x393   :  { %11241 = vmatprep.subr.bf16.mxu1 %v13675_v13  ;;  %11305 = vmatprep.subr.bf16.mxu0 %v13659_v56 }
 0x396   :  { %11243 = vmatpush3.bf16.msra.mxu1 %v13675_v13  ;;  %11307 = vmatpush3.bf16.msra.mxu0 %v13659_v56 }
 0x397   :  { %11245 = vmatprep.subr.bf16.mxu1 %v13687_v28  ;;  %11309 = vmatprep.subr.bf16.mxu0 %v13666_v0 }
 0x39a   :  { %11247 = vmatpush3.bf16.msra.mxu1 %v13687_v28  ;;  %11311 = vmatpush3.bf16.msra.mxu0 %v13666_v0 }
 0x39b   :  { %11249 = vmatprep.subr.bf16.mxu1 %v13695_v42  ;;  %11313 = vmatprep.subr.bf16.mxu0 %v13672_v9 }
 0x39e   :  { %11251 = vmatpush3.bf16.msra.mxu1 %v13695_v42  ;;  %11315 = vmatpush3.bf16.msra.mxu0 %v13672_v9 }
 0x39f   :  { %11253 = vmatprep.subr.bf16.mxu1 %v13699_v43  ;;  %11317 = vmatprep.subr.bf16.mxu0 %v13679_v17 }
 0x3a2   :  { %11255 = vmatpush3.bf16.msra.mxu1 %v13699_v43  ;;  %11319 = vmatpush3.bf16.msra.mxu0 %v13679_v17 }
 0x3a3   :  { %11257 = vmatprep.subr.bf16.mxu1 %v13718_v61  ;;  %11321 = vmatprep.subr.bf16.mxu0 %v13684_v26 }
 0x3a6   :  { %11259 = vmatpush3.bf16.msra.mxu1 %v13718_v61  ;;  %11323 = vmatpush3.bf16.msra.mxu0 %v13684_v26 }
 0x3a7   :  { %11261 = vmatprep.subr.bf16.mxu1 %v13644_v31  ;;  %11325 = vmatprep.subr.bf16.mxu0 %v13642_v30 }
 0x43c   :  { %v8577_v47 = vpop.f32.mrb[12].mxu0 }
 0x43d   :  { %v1584_v48 = vpop.f32.mrb[13].mxu0  ;;  %v1596_v51 = vmax.f32 %v8577_v47, 0.0 }
 0x43e   :  { %v1595_v49 = vmax.f32 %v1584_v48, 0.0 }
 0x440   :  { %8645 = vmatprep.mubr.f32.mxu1 %v1595_v49  ;;  %8715 = vmatprep.mubr.f32.mxu0 %v1595_v49 }
 0x441   :  { %8646 = vmatmul.mubr.f32.vlgmr.msra.gmra.mrb[28].mxu1 %v1596_v51  ;;  %8716 = vmatmul.mubr.f32.vlgmr.msra.gmra.mrb[16].mxu0 %v1596_v51 }
 0x442   :  { %11263 = vmatpush3.bf16.msra.mxu1 %v13644_v31  ;;  %11327 = vmatpush3.bf16.msra.mxu0 %v13642_v30 }
 0x443   :  { %11265 = vmatprep.subr.bf16.mxu1 %v13655_v50  ;;  %11329 = vmatprep.subr.bf16.mxu0 %v13647_v37 }
 0x446   :  { %11267 = vmatpush3.bf16.msra.mxu1 %v13655_v50  ;;  %11331 = vmatpush3.bf16.msra.mxu0 %v13647_v37 }
 0x447   :  { %11269 = vmatprep.subr.bf16.mxu1 %v13662_v59  ;;  %11333 = vmatprep.subr.bf16.mxu0 %v13652_v46 }
 0x44a   :  { %11271 = vmatpush3.bf16.msra.mxu1 %v13662_v59  ;;  %11335 = vmatpush3.bf16.msra.mxu0 %v13652_v46 }
 0x44b   :  { %11273 = vmatprep.subr.bf16.mxu1 %v13675_v13  ;;  %11337 = vmatprep.subr.bf16.mxu0 %v13659_v56 }
 0x44e   :  { %11275 = vmatpush3.bf16.msra.mxu1 %v13675_v13  ;;  %11339 = vmatpush3.bf16.msra.mxu0 %v13659_v56 }
 0x44f   :  { %11277 = vmatprep.subr.bf16.mxu1 %v13687_v28  ;;  %11341 = vmatprep.subr.bf16.mxu0 %v13666_v0 }
 0x452   :  { %11279 = vmatpush3.bf16.msra.mxu1 %v13687_v28  ;;  %11343 = vmatpush3.bf16.msra.mxu0 %v13666_v0 }
 0x453   :  { %11281 = vmatprep.subr.bf16.mxu1 %v13695_v42  ;;  %11345 = vmatprep.subr.bf16.mxu0 %v13672_v9 }
 0x456   :  { %11283 = vmatpush3.bf16.msra.mxu1 %v13695_v42  ;;  %11347 = vmatpush3.bf16.msra.mxu0 %v13672_v9 }
 0x457   :  { %11285 = vmatprep.subr.bf16.mxu1 %v13699_v43  ;;  %11349 = vmatprep.subr.bf16.mxu0 %v13679_v17 }
 0x45a   :  { %11287 = vmatpush3.bf16.msra.mxu1 %v13699_v43  ;;  %11351 = vmatpush3.bf16.msra.mxu0 %v13679_v17 }
 0x45b   :  { %11289 = vmatprep.subr.bf16.mxu1 %v13718_v61  ;;  %11353 = vmatprep.subr.bf16.mxu0 %v13684_v26 }
 0x45c   :  { %v8612_v52 = vpop.f32.mrb[14].mxu0 }
 0x45d   :  { %v1663_v53 = vpop.f32.mrb[15].mxu0  ;;  %v1675_v55 = vmax.f32 %v8612_v52, 0.0 }
 0x45e   :  { %v1674_v54 = vmax.f32 %v1663_v53, 0.0  ;;  %11291 = vmatpush3.bf16.msra.mxu1 %v13718_v61  ;;  %11355 = vmatpush3.bf16.msra.mxu0 %v13684_v26 }
 0x45f   :  { %11357 = vmatprep.subr.bf16.mxu1 %v13644_v31  ;;  %11421 = vmatprep.subr.bf16.mxu0 %v13642_v30 }
 0x460   :  { %8680 = vmatprep.mubr.f32.mxu1 %v1674_v54  ;;  %8750 = vmatprep.mubr.f32.mxu0 %v1674_v54 }
 0x461   :  { %8681 = vmatmul.mubr.f32.vlgmr.msra.gmra.mrb[30].mxu1 %v1675_v55  ;;  %8751 = vmatmul.mubr.f32.vlgmr.msra.gmra.mrb[18].mxu0 %v1675_v55 }
 0x462   :  { %11359 = vmatpush3.bf16.msra.mxu1 %v13644_v31  ;;  %11423 = vmatpush3.bf16.msra.mxu0 %v13642_v30 }
 0x463   :  { %11361 = vmatprep.subr.bf16.mxu1 %v13655_v50  ;;  %11425 = vmatprep.subr.bf16.mxu0 %v13647_v37 }
 0x466   :  { %11363 = vmatpush3.bf16.msra.mxu1 %v13655_v50  ;;  %11427 = vmatpush3.bf16.msra.mxu0 %v13647_v37 }
 0x467   :  { %11365 = vmatprep.subr.bf16.mxu1 %v13662_v59  ;;  %11429 = vmatprep.subr.bf16.mxu0 %v13652_v46 }
 0x46a   :  { %11367 = vmatpush3.bf16.msra.mxu1 %v13662_v59  ;;  %11431 = vmatpush3.bf16.msra.mxu0 %v13652_v46 }
 0x46b   :  { %11369 = vmatprep.subr.bf16.mxu1 %v13675_v13  ;;  %11433 = vmatprep.subr.bf16.mxu0 %v13659_v56 }
 0x46e   :  { %11371 = vmatpush3.bf16.msra.mxu1 %v13675_v13  ;;  %11435 = vmatpush3.bf16.msra.mxu0 %v13659_v56 }
 0x46f   :  { %11373 = vmatprep.subr.bf16.mxu1 %v13687_v28  ;;  %11437 = vmatprep.subr.bf16.mxu0 %v13666_v0 }
 0x472   :  { %11375 = vmatpush3.bf16.msra.mxu1 %v13687_v28  ;;  %11439 = vmatpush3.bf16.msra.mxu0 %v13666_v0 }
 0x473   :  { %11377 = vmatprep.subr.bf16.mxu1 %v13695_v42  ;;  %11441 = vmatprep.subr.bf16.mxu0 %v13672_v9 }
 0x476   :  { %11379 = vmatpush3.bf16.msra.mxu1 %v13695_v42  ;;  %11443 = vmatpush3.bf16.msra.mxu0 %v13672_v9 }
 0x477   :  { %11381 = vmatprep.subr.bf16.mxu1 %v13699_v43  ;;  %11445 = vmatprep.subr.bf16.mxu0 %v13679_v17 }
 0x47a   :  { %11383 = vmatpush3.bf16.msra.mxu1 %v13699_v43  ;;  %11447 = vmatpush3.bf16.msra.mxu0 %v13679_v17 }
 0x47b   :  { %11385 = vmatprep.subr.bf16.mxu1 %v13718_v61  ;;  %11449 = vmatprep.subr.bf16.mxu0 %v13684_v26 }
 0x47e   :  { %11387 = vmatpush3.bf16.msra.mxu1 %v13718_v61  ;;  %11451 = vmatpush3.bf16.msra.mxu0 %v13684_v26 }
 0x47f   :  { %11389 = vmatprep.subr.bf16.mxu1 %v13644_v31  ;;  %11453 = vmatprep.subr.bf16.mxu0 %v13642_v30 }
 0x514   :  { %v8717_v57 = vpop.f32.mrb[16].mxu0 }
 0x515   :  { %v1901_v58 = vpop.f32.mrb[17].mxu0  ;;  %v1913_v62 = vmax.f32 %v8717_v57, 0.0 }
 0x516   :  { %v1912_v60 = vmax.f32 %v1901_v58, 0.0 }
 0x518   :  { %8785 = vmatprep.mubr.f32.mxu1 %v1912_v60  ;;  %8855 = vmatprep.mubr.f32.mxu0 %v1912_v60 }
 0x519   :  { %8786 = vmatmul.mubr.f32.vlgmr.msra.gmra.mrb[32].mxu1 %v1913_v62  ;;  %8856 = vmatmul.mubr.f32.vlgmr.msra.gmra.mrb[20].mxu0 %v1913_v62 }
 0x51a   :  { %11391 = vmatpush3.bf16.msra.mxu1 %v13644_v31  ;;  %11455 = vmatpush3.bf16.msra.mxu0 %v13642_v30 }
 0x51b   :  { %11393 = vmatprep.subr.bf16.mxu1 %v13655_v50  ;;  %11457 = vmatprep.subr.bf16.mxu0 %v13647_v37 }
 0x51e   :  { %11395 = vmatpush3.bf16.msra.mxu1 %v13655_v50  ;;  %11459 = vmatpush3.bf16.msra.mxu0 %v13647_v37 }
 0x51f   :  { %11397 = vmatprep.subr.bf16.mxu1 %v13662_v59  ;;  %11461 = vmatprep.subr.bf16.mxu0 %v13652_v46 }
 0x522   :  { %11399 = vmatpush3.bf16.msra.mxu1 %v13662_v59  ;;  %11463 = vmatpush3.bf16.msra.mxu0 %v13652_v46 }
 0x523   :  { %11401 = vmatprep.subr.bf16.mxu1 %v13675_v13  ;;  %11465 = vmatprep.subr.bf16.mxu0 %v13659_v56 }
 0x526   :  { %11403 = vmatpush3.bf16.msra.mxu1 %v13675_v13  ;;  %11467 = vmatpush3.bf16.msra.mxu0 %v13659_v56 }
 0x527   :  { %11405 = vmatprep.subr.bf16.mxu1 %v13687_v28  ;;  %11469 = vmatprep.subr.bf16.mxu0 %v13666_v0 }
 0x52a   :  { %11407 = vmatpush3.bf16.msra.mxu1 %v13687_v28  ;;  %11471 = vmatpush3.bf16.msra.mxu0 %v13666_v0 }
 0x52b   :  { %11409 = vmatprep.subr.bf16.mxu1 %v13695_v42  ;;  %11473 = vmatprep.subr.bf16.mxu0 %v13672_v9 }
 0x52e   :  { %11411 = vmatpush3.bf16.msra.mxu1 %v13695_v42  ;;  %11475 = vmatpush3.bf16.msra.mxu0 %v13672_v9 }
 0x52f   :  { %11413 = vmatprep.subr.bf16.mxu1 %v13699_v43  ;;  %11477 = vmatprep.subr.bf16.mxu0 %v13679_v17 }
 0x532   :  { %11415 = vmatpush3.bf16.msra.mxu1 %v13699_v43  ;;  %11479 = vmatpush3.bf16.msra.mxu0 %v13679_v17 }
 0x533   :  { %11417 = vmatprep.subr.bf16.mxu1 %v13718_v61  ;;  %11481 = vmatprep.subr.bf16.mxu0 %v13684_v26 }
 0x534   :  { %v8752_v63 = vpop.f32.mrb[18].mxu0 }
 0x535   :  { %v1980_v1 = vpop.f32.mrb[19].mxu0  ;;  %v1992_v3 = vmax.f32 %v8752_v63, 0.0 }
 0x536   :  { %v1991_v2 = vmax.f32 %v1980_v1, 0.0  ;;  %11419 = vmatpush3.bf16.msra.mxu1 %v13718_v61  ;;  %11483 = vmatpush3.bf16.msra.mxu0 %v13684_v26 }
 0x537   :  { %11485 = vmatprep.subr.bf16.mxu1 %v13644_v31  ;;  %11549 = vmatprep.subr.bf16.mxu0 %v13642_v30 }
 0x538   :  { %8820 = vmatprep.mubr.f32.mxu1 %v1991_v2  ;;  %8890 = vmatprep.mubr.f32.mxu0 %v1991_v2 }
 0x539   :  { %8821 = vmatmul.mubr.f32.vlgmr.msra.gmra.mrb[34].mxu1 %v1992_v3  ;;  %8891 = vmatmul.mubr.f32.vlgmr.msra.gmra.mrb[22].mxu0 %v1992_v3 }
 0x53a   :  { %11487 = vmatpush3.bf16.msra.mxu1 %v13644_v31  ;;  %11551 = vmatpush3.bf16.msra.mxu0 %v13642_v30 }
 0x53b   :  { %11489 = vmatprep.subr.bf16.mxu1 %v13655_v50  ;;  %11553 = vmatprep.subr.bf16.mxu0 %v13647_v37 }
 0x53e   :  { %11491 = vmatpush3.bf16.msra.mxu1 %v13655_v50  ;;  %11555 = vmatpush3.bf16.msra.mxu0 %v13647_v37 }
 0x53f   :  { %11493 = vmatprep.subr.bf16.mxu1 %v13662_v59  ;;  %11557 = vmatprep.subr.bf16.mxu0 %v13652_v46 }
 0x542   :  { %11495 = vmatpush3.bf16.msra.mxu1 %v13662_v59  ;;  %11559 = vmatpush3.bf16.msra.mxu0 %v13652_v46 }
 0x543   :  { %11497 = vmatprep.subr.bf16.mxu1 %v13675_v13  ;;  %11561 = vmatprep.subr.bf16.mxu0 %v13659_v56 }
 0x546   :  { %11499 = vmatpush3.bf16.msra.mxu1 %v13675_v13  ;;  %11563 = vmatpush3.bf16.msra.mxu0 %v13659_v56 }
 0x547   :  { %11501 = vmatprep.subr.bf16.mxu1 %v13687_v28  ;;  %11565 = vmatprep.subr.bf16.mxu0 %v13666_v0 }
 0x54a   :  { %11503 = vmatpush3.bf16.msra.mxu1 %v13687_v28  ;;  %11567 = vmatpush3.bf16.msra.mxu0 %v13666_v0 }
 0x54b   :  { %11505 = vmatprep.subr.bf16.mxu1 %v13695_v42  ;;  %11569 = vmatprep.subr.bf16.mxu0 %v13672_v9 }
 0x54e   :  { %11507 = vmatpush3.bf16.msra.mxu1 %v13695_v42  ;;  %11571 = vmatpush3.bf16.msra.mxu0 %v13672_v9 }
 0x54f   :  { %11509 = vmatprep.subr.bf16.mxu1 %v13699_v43  ;;  %11573 = vmatprep.subr.bf16.mxu0 %v13679_v17 }
 0x552   :  { %11511 = vmatpush3.bf16.msra.mxu1 %v13699_v43  ;;  %11575 = vmatpush3.bf16.msra.mxu0 %v13679_v17 }
 0x553   :  { %11513 = vmatprep.subr.bf16.mxu1 %v13718_v61  ;;  %11577 = vmatprep.subr.bf16.mxu0 %v13684_v26 }
 0x556   :  { %11515 = vmatpush3.bf16.msra.mxu1 %v13718_v61  ;;  %11579 = vmatpush3.bf16.msra.mxu0 %v13684_v26 }
 0x557   :  { %11517 = vmatprep.subr.bf16.mxu1 %v13644_v31  ;;  %11581 = vmatprep.subr.bf16.mxu0 %v13642_v30 }
 0x5ec   :  { %v8857_v4 = vpop.f32.mrb[20].mxu0 }
 0x5ed   :  { %v2218_v5 = vpop.f32.mrb[21].mxu0  ;;  %v2230_v7 = vmax.f32 %v8857_v4, 0.0 }
 0x5ee   :  { %v2229_v6 = vmax.f32 %v2218_v5, 0.0  ;;  %v4368_v5 = vld [vmem:[#allocation11 + $0x18] sm:$0xff] }
 0x5f0   :  { %8925 = vmatprep.mubr.f32.mxu1 %v2229_v6  ;;  %8995 = vmatprep.mubr.f32.mxu0 %v2229_v6 }
 0x5f1   :  { %8926 = vmatmul.mubr.f32.vlgmr.msra.gmra.mrb[36].mxu1 %v2230_v7  ;;  %8996 = vmatmul.mubr.f32.vlgmr.msra.gmra.mrb[24].mxu0 %v2230_v7  ;;  %v4369_v7 = vld [vmem:[#allocation11 + $0x20] sm:$0xff] }
 0x5f2   :  { %11519 = vmatpush3.bf16.msra.mxu1 %v13644_v31  ;;  %11583 = vmatpush3.bf16.msra.mxu0 %v13642_v30 }
 0x5f3   :  { %11521 = vmatprep.subr.bf16.mxu1 %v13655_v50  ;;  %11585 = vmatprep.subr.bf16.mxu0 %v13647_v37 }
 0x5f6   :  { %11523 = vmatpush3.bf16.msra.mxu1 %v13655_v50  ;;  %11587 = vmatpush3.bf16.msra.mxu0 %v13647_v37 }
 0x5f7   :  { %11525 = vmatprep.subr.bf16.mxu1 %v13662_v59  ;;  %11589 = vmatprep.subr.bf16.mxu0 %v13652_v46 }
 0x5fa   :  { %11527 = vmatpush3.bf16.msra.mxu1 %v13662_v59  ;;  %11591 = vmatpush3.bf16.msra.mxu0 %v13652_v46 }
 0x5fb   :  { %11529 = vmatprep.subr.bf16.mxu1 %v13675_v13  ;;  %11593 = vmatprep.subr.bf16.mxu0 %v13659_v56 }
 0x5fe   :  { %11531 = vmatpush3.bf16.msra.mxu1 %v13675_v13  ;;  %11595 = vmatpush3.bf16.msra.mxu0 %v13659_v56 }
 0x5ff   :  { %11533 = vmatprep.subr.bf16.mxu1 %v13687_v28  ;;  %11597 = vmatprep.subr.bf16.mxu0 %v13666_v0 }
 0x602   :  { %11535 = vmatpush3.bf16.msra.mxu1 %v13687_v28  ;;  %11599 = vmatpush3.bf16.msra.mxu0 %v13666_v0 }
 0x603   :  { %11537 = vmatprep.subr.bf16.mxu1 %v13695_v42  ;;  %11601 = vmatprep.subr.bf16.mxu0 %v13672_v9 }
 0x606   :  { %11539 = vmatpush3.bf16.msra.mxu1 %v13695_v42  ;;  %11603 = vmatpush3.bf16.msra.mxu0 %v13672_v9 }
 0x607   :  { %11541 = vmatprep.subr.bf16.mxu1 %v13699_v43  ;;  %11605 = vmatprep.subr.bf16.mxu0 %v13679_v17 }
 0x60a   :  { %11543 = vmatpush3.bf16.msra.mxu1 %v13699_v43  ;;  %11607 = vmatpush3.bf16.msra.mxu0 %v13679_v17 }
 0x60b   :  { %11545 = vmatprep.subr.bf16.mxu1 %v13718_v61  ;;  %11609 = vmatprep.subr.bf16.mxu0 %v13684_v26 }
 0x60c   :  { %v8892_v8 = vpop.f32.mrb[22].mxu0 }
 0x60d   :  { %v2297_v10 = vpop.f32.mrb[23].mxu0  ;;  %v2309_v12 = vmax.f32 %v8892_v8, 0.0  ;;  %v4370_v8 = vld [vmem:[#allocation11 + $0x28] sm:$0xff] }
 0x60e   :  { %v2308_v11 = vmax.f32 %v2297_v10, 0.0  ;;  %11547 = vmatpush3.bf16.msra.mxu1 %v13718_v61  ;;  %11611 = vmatpush3.bf16.msra.mxu0 %v13684_v26  ;;  %v14432_v10 = vpack.c.bf16 %v4370_v8, %v4369_v7 }
 0x60f   :  { %11613 = vmatprep.subr.bf16.mxu1 %v13644_v31  ;;  %11677 = vmatprep.subr.bf16.mxu0 %v13642_v30 }
 0x610   :  { %8960 = vmatprep.mubr.f32.mxu1 %v2308_v11  ;;  %9030 = vmatprep.mubr.f32.mxu0 %v2308_v11  ;;  %v4371_v11 = vld [vmem:[#allocation11 + $0x30] sm:$0xff] }
 0x611   :  { %8961 = vmatmul.mubr.f32.vlgmr.msra.gmra.mrb[38].mxu1 %v2309_v12  ;;  %9031 = vmatmul.mubr.f32.vlgmr.msra.gmra.mrb[26].mxu0 %v2309_v12  ;;  %v4372_v12 = vld [vmem:[#allocation11 + $0x38] sm:$0xff] }
 0x612   :  { %11615 = vmatpush3.bf16.msra.mxu1 %v13644_v31  ;;  %11679 = vmatpush3.bf16.msra.mxu0 %v13642_v30 }
 0x613   :  { %11617 = vmatprep.subr.bf16.mxu1 %v13655_v50  ;;  %11681 = vmatprep.subr.bf16.mxu0 %v13647_v37 }
 0x616   :  { %11619 = vmatpush3.bf16.msra.mxu1 %v13655_v50  ;;  %11683 = vmatpush3.bf16.msra.mxu0 %v13647_v37 }
 0x617   :  { %11621 = vmatprep.subr.bf16.mxu1 %v13662_v59  ;;  %11685 = vmatprep.subr.bf16.mxu0 %v13652_v46 }
 0x61a   :  { %11623 = vmatpush3.bf16.msra.mxu1 %v13662_v59  ;;  %11687 = vmatpush3.bf16.msra.mxu0 %v13652_v46 }
 0x61b   :  { %11625 = vmatprep.subr.bf16.mxu1 %v13675_v13  ;;  %11689 = vmatprep.subr.bf16.mxu0 %v13659_v56 }
 0x61e   :  { %11627 = vmatpush3.bf16.msra.mxu1 %v13675_v13  ;;  %11691 = vmatpush3.bf16.msra.mxu0 %v13659_v56 }
 0x61f   :  { %11629 = vmatprep.subr.bf16.mxu1 %v13687_v28  ;;  %11693 = vmatprep.subr.bf16.mxu0 %v13666_v0 }
 0x622   :  { %11631 = vmatpush3.bf16.msra.mxu1 %v13687_v28  ;;  %11695 = vmatpush3.bf16.msra.mxu0 %v13666_v0 }
 0x623   :  { %11633 = vmatprep.subr.bf16.mxu1 %v13695_v42  ;;  %11697 = vmatprep.subr.bf16.mxu0 %v13672_v9 }
 0x626   :  { %11635 = vmatpush3.bf16.msra.mxu1 %v13695_v42  ;;  %11699 = vmatpush3.bf16.msra.mxu0 %v13672_v9 }
 0x627   :  { %11637 = vmatprep.subr.bf16.mxu1 %v13699_v43  ;;  %11701 = vmatprep.subr.bf16.mxu0 %v13679_v17 }
 0x62a   :  { %11639 = vmatpush3.bf16.msra.mxu1 %v13699_v43  ;;  %11703 = vmatpush3.bf16.msra.mxu0 %v13679_v17 }
 0x62b   :  { %11641 = vmatprep.subr.bf16.mxu1 %v13718_v61  ;;  %11705 = vmatprep.subr.bf16.mxu0 %v13684_v26 }
 0x62e   :  { %11643 = vmatpush3.bf16.msra.mxu1 %v13718_v61  ;;  %11707 = vmatpush3.bf16.msra.mxu0 %v13684_v26 }
 0x62f   :  { %11645 = vmatprep.subr.bf16.mxu1 %v13644_v31  ;;  %11709 = vmatprep.subr.bf16.mxu0 %v13642_v30 }
 0x6c4   :  { %v8997_v14 = vpop.f32.mrb[24].mxu0 }
 0x6c5   :  { %v2535_v15 = vpop.f32.mrb[25].mxu0  ;;  %v2547_v22 = vmax.f32 %v8997_v14, 0.0  ;;  %v14436_v14 = vpack.c.bf16 %v4372_v12, %v4371_v11 }
 0x6c6   :  { %v2546_v16 = vmax.f32 %v2535_v15, 0.0  ;;  %v4373_v15 = vld [vmem:[#allocation11 + $0x40] sm:$0xff] }
 0x6c8   :  { %9065 = vmatprep.mubr.f32.mxu1 %v2546_v16  ;;  %9135 = vmatprep.mubr.f32.mxu0 %v2546_v16  ;;  %v4374_v16 = vld [vmem:[#allocation11 + $0x48] sm:$0xff] }
 0x6c9   :  { %9066 = vmatmul.mubr.f32.vlgmr.msra.gmra.mrb[40].mxu1 %v2547_v22  ;;  %9136 = vmatmul.mubr.f32.vlgmr.msra.gmra.mrb[28].mxu0 %v2547_v22  ;;  %v14440_v22 = vpack.c.bf16 %v4374_v16, %v4373_v15 }
 0x6ca   :  { %11647 = vmatpush3.bf16.msra.mxu1 %v13644_v31  ;;  %11711 = vmatpush3.bf16.msra.mxu0 %v13642_v30 }
 0x6cb   :  { %11649 = vmatprep.subr.bf16.mxu1 %v13655_v50  ;;  %11713 = vmatprep.subr.bf16.mxu0 %v13647_v37 }
 0x6ce   :  { %11651 = vmatpush3.bf16.msra.mxu1 %v13655_v50  ;;  %11715 = vmatpush3.bf16.msra.mxu0 %v13647_v37 }
 0x6cf   :  { %11653 = vmatprep.subr.bf16.mxu1 %v13662_v59  ;;  %11717 = vmatprep.subr.bf16.mxu0 %v13652_v46 }
 0x6d2   :  { %11655 = vmatpush3.bf16.msra.mxu1 %v13662_v59  ;;  %11719 = vmatpush3.bf16.msra.mxu0 %v13652_v46 }
 0x6d3   :  { %11657 = vmatprep.subr.bf16.mxu1 %v13675_v13  ;;  %11721 = vmatprep.subr.bf16.mxu0 %v13659_v56 }
 0x6d6   :  { %11659 = vmatpush3.bf16.msra.mxu1 %v13675_v13  ;;  %11723 = vmatpush3.bf16.msra.mxu0 %v13659_v56 }
 0x6d7   :  { %11661 = vmatprep.subr.bf16.mxu1 %v13687_v28  ;;  %11725 = vmatprep.subr.bf16.mxu0 %v13666_v0 }
 0x6da   :  { %11663 = vmatpush3.bf16.msra.mxu1 %v13687_v28  ;;  %11727 = vmatpush3.bf16.msra.mxu0 %v13666_v0 }
 0x6db   :  { %11665 = vmatprep.subr.bf16.mxu1 %v13695_v42  ;;  %11729 = vmatprep.subr.bf16.mxu0 %v13672_v9 }
 0x6de   :  { %11667 = vmatpush3.bf16.msra.mxu1 %v13695_v42  ;;  %11731 = vmatpush3.bf16.msra.mxu0 %v13672_v9 }
 0x6df   :  { %11669 = vmatprep.subr.bf16.mxu1 %v13699_v43  ;;  %11733 = vmatprep.subr.bf16.mxu0 %v13679_v17 }
 0x6e2   :  { %11671 = vmatpush3.bf16.msra.mxu1 %v13699_v43  ;;  %11735 = vmatpush3.bf16.msra.mxu0 %v13679_v17 }
 0x6e3   :  { %11673 = vmatprep.subr.bf16.mxu1 %v13718_v61  ;;  %11737 = vmatprep.subr.bf16.mxu0 %v13684_v26 }
 0x6e4   :  { %v9032_v23 = vpop.f32.mrb[26].mxu0 }
 0x6e5   :  { %v2614_v24 = vpop.f32.mrb[27].mxu0  ;;  %v2626_v27 = vmax.f32 %v9032_v23, 0.0  ;;  %v4375_v23 = vld [vmem:[#allocation11 + $0x50] sm:$0xff] }
 0x6e6   :  { %v2625_v25 = vmax.f32 %v2614_v24, 0.0  ;;  %11675 = vmatpush3.bf16.msra.mxu1 %v13718_v61  ;;  %11739 = vmatpush3.bf16.msra.mxu0 %v13684_v26  ;;  %v4376_v24 = vld [vmem:[#allocation11 + $0x58] sm:$0xff] }
 0x6e7   :  { %11741 = vmatprep.subr.bf16.mxu1 %v13644_v31  ;;  %11869 = vmatprep.subr.bf16.mxu0 %v13644_v31 }
 0x6e8   :  { %9100 = vmatprep.mubr.f32.mxu1 %v2625_v25  ;;  %9170 = vmatprep.mubr.f32.mxu0 %v2625_v25  ;;  %v14444_v25 = vpack.c.bf16 %v4376_v24, %v4375_v23 }
 0x6e9   :  { %9101 = vmatmul.mubr.f32.vlgmr.msra.gmra.mrb[42].mxu1 %v2626_v27  ;;  %9171 = vmatmul.mubr.f32.vlgmr.msra.gmra.mrb[30].mxu0 %v2626_v27  ;;  %v4377_v27 = vld [vmem:[#allocation11 + $0x60] sm:$0xff] }
 0x6ea   :  { %11743 = vmatpush3.bf16.msra.mxu1 %v13644_v31  ;;  %11871 = vmatpush3.bf16.msra.mxu0 %v13644_v31 }
 0x6eb   :  { %11745 = vmatprep.subr.bf16.mxu1 %v13655_v50  ;;  %11873 = vmatprep.subr.bf16.mxu0 %v13655_v50 }
 0x6ee   :  { %11747 = vmatpush3.bf16.msra.mxu1 %v13655_v50  ;;  %11875 = vmatpush3.bf16.msra.mxu0 %v13655_v50 }
 0x6ef   :  { %11749 = vmatprep.subr.bf16.mxu1 %v13662_v59  ;;  %11877 = vmatprep.subr.bf16.mxu0 %v13662_v59 }
 0x6f2   :  { %11751 = vmatpush3.bf16.msra.mxu1 %v13662_v59  ;;  %11879 = vmatpush3.bf16.msra.mxu0 %v13662_v59 }
 0x6f3   :  { %11753 = vmatprep.subr.bf16.mxu1 %v13675_v13  ;;  %11881 = vmatprep.subr.bf16.mxu0 %v13675_v13 }
 0x6f6   :  { %11755 = vmatpush3.bf16.msra.mxu1 %v13675_v13  ;;  %11883 = vmatpush3.bf16.msra.mxu0 %v13675_v13 }
 0x6f7   :  { %11757 = vmatprep.subr.bf16.mxu1 %v13687_v28  ;;  %11885 = vmatprep.subr.bf16.mxu0 %v13687_v28 }
 0x6fa   :  { %11759 = vmatpush3.bf16.msra.mxu1 %v13687_v28  ;;  %11887 = vmatpush3.bf16.msra.mxu0 %v13687_v28 }
 0x6fb   :  { %11761 = vmatprep.subr.bf16.mxu1 %v13695_v42  ;;  %11889 = vmatprep.subr.bf16.mxu0 %v13695_v42 }
 0x6fe   :  { %11763 = vmatpush3.bf16.msra.mxu1 %v13695_v42  ;;  %11891 = vmatpush3.bf16.msra.mxu0 %v13695_v42 }
 0x6ff   :  { %11765 = vmatprep.subr.bf16.mxu1 %v13699_v43  ;;  %11893 = vmatprep.subr.bf16.mxu0 %v13699_v43 }
 0x702   :  { %11767 = vmatpush3.bf16.msra.mxu1 %v13699_v43  ;;  %11895 = vmatpush3.bf16.msra.mxu0 %v13699_v43 }
 0x703   :  { %11769 = vmatprep.subr.bf16.mxu1 %v13718_v61  ;;  %11897 = vmatprep.subr.bf16.mxu0 %v13718_v61 }
 0x706   :  { %11771 = vmatpush3.bf16.msra.mxu1 %v13718_v61  ;;  %11899 = vmatpush3.bf16.msra.mxu0 %v13718_v61 }
 0x707   :  { %11773 = vmatprep.subr.bf16.mxu1 %v13644_v31  ;;  %11901 = vmatprep.subr.bf16.mxu0 %v13644_v31 }
 0x79c   :  { %v9137_v29 = vpop.f32.mrb[28].mxu0 }
 0x79d   :  { %v2852_v32 = vpop.f32.mrb[29].mxu0  ;;  %v2864_v34 = vmax.f32 %v9137_v29, 0.0  ;;  %v4378_v29 = vld [vmem:[#allocation11 + $0x68] sm:$0xff] }
 0x79e   :  { %v2863_v33 = vmax.f32 %v2852_v32, 0.0  ;;  %v14448_v32 = vpack.c.bf16 %v4378_v29, %v4377_v27 }
 0x7a0   :  { %9205 = vmatprep.mubr.f32.mxu1 %v2863_v33 }
 0x7a1   :  { %9206 = vmatmul.mubr.f32.vlgmr.msra.gmra.mrb[44].mxu1 %v2864_v34 }
 0x7a2   :  { %11775 = vmatpush3.bf16.msra.mxu1 %v13644_v31 }
 0x7a3   :  { %11777 = vmatprep.subr.bf16.mxu1 %v13655_v50 }
 0x7a6   :  { %11779 = vmatpush3.bf16.msra.mxu1 %v13655_v50 }
 0x7a7   :  { %11781 = vmatprep.subr.bf16.mxu1 %v13662_v59 }
 0x7aa   :  { %11783 = vmatpush3.bf16.msra.mxu1 %v13662_v59 }
 0x7ab   :  { %11785 = vmatprep.subr.bf16.mxu1 %v13675_v13 }
 0x7ae   :  { %11787 = vmatpush3.bf16.msra.mxu1 %v13675_v13 }
 0x7af   :  { %11789 = vmatprep.subr.bf16.mxu1 %v13687_v28 }
 0x7b2   :  { %11791 = vmatpush3.bf16.msra.mxu1 %v13687_v28 }
 0x7b3   :  { %11793 = vmatprep.subr.bf16.mxu1 %v13695_v42 }
 0x7b6   :  { %11795 = vmatpush3.bf16.msra.mxu1 %v13695_v42 }
 0x7b7   :  { %11797 = vmatprep.subr.bf16.mxu1 %v13699_v43 }
 0x7ba   :  { %11799 = vmatpush3.bf16.msra.mxu1 %v13699_v43 }
 0x7bb   :  { %11801 = vmatprep.subr.bf16.mxu1 %v13718_v61 }
 0x7bc   :  { %v9172_v35 = vpop.f32.mrb[30].mxu0 }
 0x7bd   :  { %v2931_v38 = vpop.f32.mrb[31].mxu0  ;;  %v2943_v40 = vmax.f32 %v9172_v35, 0.0 }
 0x7be   :  { %v2942_v39 = vmax.f32 %v2931_v38, 0.0  ;;  %11803 = vmatpush3.bf16.msra.mxu1 %v13718_v61 }
 0x7bf   :  { %11805 = vmatprep.subr.bf16.mxu1 %v13642_v30 }
 0x7c0   :  { %9240 = vmatprep.mubr.f32.mxu1 %v2942_v39 }
 0x7c1   :  { %9241 = vmatmul.mubr.f32.vlgmr.msra.gmra.mrb[46].mxu1 %v2943_v40 }
 0x7c2   :  { %11807 = vmatpush3.bf16.msra.mxu1 %v13642_v30  ;;  %9275 = vmatprep.mubr.f32.mxu1 %v2863_v33  ;;  %v4379_v33 = vld [vmem:[#allocation11 + $0x70] sm:$0xff] }
 0x7c3   :  { %11809 = vmatprep.subr.bf16.mxu1 %v13647_v37 }
 0x7c6   :  { %11811 = vmatpush3.bf16.msra.mxu1 %v13647_v37 }
 0x7c7   :  { %11813 = vmatprep.subr.bf16.mxu1 %v13652_v46 }
 0x7ca   :  { %11815 = vmatpush3.bf16.msra.mxu1 %v13652_v46 }
 0x7cb   :  { %11817 = vmatprep.subr.bf16.mxu1 %v13659_v56 }
 0x7ce   :  { %11819 = vmatpush3.bf16.msra.mxu1 %v13659_v56 }
 0x7cf   :  { %11821 = vmatprep.subr.bf16.mxu1 %v13666_v0 }
 0x7d2   :  { %11823 = vmatpush3.bf16.msra.mxu1 %v13666_v0 }
 0x7d3   :  { %11825 = vmatprep.subr.bf16.mxu1 %v13672_v9 }
 0x7d6   :  { %11827 = vmatpush3.bf16.msra.mxu1 %v13672_v9 }
 0x7d7   :  { %11829 = vmatprep.subr.bf16.mxu1 %v13679_v17 }
 0x7da   :  { %11831 = vmatpush3.bf16.msra.mxu1 %v13679_v17 }
 0x7db   :  { %11833 = vmatprep.subr.bf16.mxu1 %v13684_v26 }
 0x7de   :  { %11835 = vmatpush3.bf16.msra.mxu1 %v13684_v26 }
 0x7df   :  { %11837 = vmatprep.subr.bf16.mxu1 %v13642_v30 }
 0x7e1   :  { %9276 = vmatmul.mubr.f32.vlgmr.msra.gmra.mrb[0].mxu1 %v2864_v34  ;;  %v4380_v34 = vld [vmem:[#allocation11 + $0x78] sm:$0xff] }
 0x7e2   :  { %11839 = vmatpush3.bf16.msra.mxu1 %v13642_v30  ;;  %9310 = vmatprep.mubr.f32.mxu1 %v2942_v39  ;;  %v14452_v35 = vpack.c.bf16 %v4380_v34, %v4379_v33 }
 0x7e3   :  { %11841 = vmatprep.subr.bf16.mxu1 %v13647_v37 }
 0x7e6   :  { %11843 = vmatpush3.bf16.msra.mxu1 %v13647_v37 }
 0x7e7   :  { %11845 = vmatprep.subr.bf16.mxu1 %v13652_v46 }
 0x7ea   :  { %11847 = vmatpush3.bf16.msra.mxu1 %v13652_v46 }
 0x7eb   :  { %11849 = vmatprep.subr.bf16.mxu1 %v13659_v56 }
 0x7ee   :  { %11851 = vmatpush3.bf16.msra.mxu1 %v13659_v56 }
 0x7ef   :  { %11853 = vmatprep.subr.bf16.mxu1 %v13666_v0 }
 0x7f2   :  { %11855 = vmatpush3.bf16.msra.mxu1 %v13666_v0 }
 0x7f3   :  { %11857 = vmatprep.subr.bf16.mxu1 %v13672_v9 }
 0x7f6   :  { %11859 = vmatpush3.bf16.msra.mxu1 %v13672_v9 }
 0x7f7   :  { %11861 = vmatprep.subr.bf16.mxu1 %v13679_v17 }
 0x7fa   :  { %11863 = vmatpush3.bf16.msra.mxu1 %v13679_v17 }
 0x7fb   :  { %11865 = vmatprep.subr.bf16.mxu1 %v13684_v26 }
 0x7fe   :  { %11867 = vmatpush3.bf16.msra.mxu1 %v13684_v26 }
 0x7ff   :  { %11933 = vmatprep.subr.bf16.mxu1 %v13642_v30 }
 0x801   :  { %9311 = vmatmul.mubr.f32.vlgmr.msra.gmra.mrb[2].mxu1 %v2943_v40 }
 0x802   :  { %11935 = vmatpush3.bf16.msra.mxu1 %v13642_v30 }
 0x803   :  { %11937 = vmatprep.subr.bf16.mxu1 %v13647_v37 }
 0x806   :  { %11939 = vmatpush3.bf16.msra.mxu1 %v13647_v37 }
 0x807   :  { %11941 = vmatprep.subr.bf16.mxu1 %v13652_v46 }
 0x80a   :  { %11943 = vmatpush3.bf16.msra.mxu1 %v13652_v46 }
 0x80b   :  { %11945 = vmatprep.subr.bf16.mxu1 %v13659_v56 }
 0x80e   :  { %11947 = vmatpush3.bf16.msra.mxu1 %v13659_v56 }
 0x80f   :  { %11949 = vmatprep.subr.bf16.mxu1 %v13666_v0 }
 0x812   :  { %11951 = vmatpush3.bf16.msra.mxu1 %v13666_v0 }
 0x813   :  { %11953 = vmatprep.subr.bf16.mxu1 %v13672_v9 }
 0x816   :  { %11955 = vmatpush3.bf16.msra.mxu1 %v13672_v9 }
 0x817   :  { %11957 = vmatprep.subr.bf16.mxu1 %v13679_v17 }
 0x81a   :  { %11959 = vmatpush3.bf16.msra.mxu1 %v13679_v17 }
 0x81b   :  { %11961 = vmatprep.subr.bf16.mxu1 %v13684_v26 }
 0x81e   :  { %11963 = vmatpush3.bf16.msra.mxu1 %v13684_v26 }
 0x81f   :  { %11965 = vmatprep.subr.bf16.mxu1 %v13642_v30 }
 0x8b4   :  { %v9277_v41 = vpop.f32.mrb[0].mxu1 }
 0x8b5   :  { %v3168_v44 = vpop.f32.mrb[1].mxu1  ;;  %v3180_v47 = vmax.f32 %v9277_v41, 0.0 }
 0x8b6   :  { %v3179_v45 = vmax.f32 %v3168_v44, 0.0 }
 0x8b8   :  { %9345 = vmatprep.mubr.f32.mxu0 %v3179_v45  ;;  %9415 = vmatprep.mubr.f32.mxu1 %v3179_v45 }
 0x8b9   :  { %9346 = vmatmul.mubr.f32.vlgmr.msra.gmra.mrb[34].mxu0 %v3180_v47  ;;  %9416 = vmatmul.mubr.f32.vlgmr.msra.gmra.mrb[4].mxu1 %v3180_v47 }
 0x8ba   :  { %11903 = vmatpush3.bf16.msra.mxu0 %v13644_v31  ;;  %11967 = vmatpush3.bf16.msra.mxu1 %v13642_v30 }
 0x8bb   :  { %11905 = vmatprep.subr.bf16.mxu0 %v13655_v50  ;;  %11969 = vmatprep.subr.bf16.mxu1 %v13647_v37 }
 0x8be   :  { %11907 = vmatpush3.bf16.msra.mxu0 %v13655_v50  ;;  %11971 = vmatpush3.bf16.msra.mxu1 %v13647_v37 }
 0x8bf   :  { %11909 = vmatprep.subr.bf16.mxu0 %v13662_v59  ;;  %11973 = vmatprep.subr.bf16.mxu1 %v13652_v46 }
 0x8c2   :  { %11911 = vmatpush3.bf16.msra.mxu0 %v13662_v59  ;;  %11975 = vmatpush3.bf16.msra.mxu1 %v13652_v46 }
 0x8c3   :  { %11913 = vmatprep.subr.bf16.mxu0 %v13675_v13  ;;  %11977 = vmatprep.subr.bf16.mxu1 %v13659_v56 }
 0x8c6   :  { %11915 = vmatpush3.bf16.msra.mxu0 %v13675_v13  ;;  %11979 = vmatpush3.bf16.msra.mxu1 %v13659_v56 }
 0x8c7   :  { %11917 = vmatprep.subr.bf16.mxu0 %v13687_v28  ;;  %11981 = vmatprep.subr.bf16.mxu1 %v13666_v0 }
 0x8ca   :  { %11919 = vmatpush3.bf16.msra.mxu0 %v13687_v28  ;;  %11983 = vmatpush3.bf16.msra.mxu1 %v13666_v0 }
 0x8cb   :  { %11921 = vmatprep.subr.bf16.mxu0 %v13695_v42  ;;  %11985 = vmatprep.subr.bf16.mxu1 %v13672_v9 }
 0x8ce   :  { %11923 = vmatpush3.bf16.msra.mxu0 %v13695_v42  ;;  %11987 = vmatpush3.bf16.msra.mxu1 %v13672_v9 }
 0x8cf   :  { %11925 = vmatprep.subr.bf16.mxu0 %v13699_v43  ;;  %11989 = vmatprep.subr.bf16.mxu1 %v13679_v17 }
 0x8d2   :  { %11927 = vmatpush3.bf16.msra.mxu0 %v13699_v43  ;;  %11991 = vmatpush3.bf16.msra.mxu1 %v13679_v17 }
 0x8d3   :  { %11929 = vmatprep.subr.bf16.mxu0 %v13718_v61  ;;  %11993 = vmatprep.subr.bf16.mxu1 %v13684_v26 }
 0x8d4   :  { %v9312_v48 = vpop.f32.mrb[2].mxu1 }
 0x8d5   :  { %v3247_v49 = vpop.f32.mrb[3].mxu1  ;;  %v3259_v52 = vmax.f32 %v9312_v48, 0.0 }
 0x8d6   :  { %v3258_v51 = vmax.f32 %v3247_v49, 0.0  ;;  %11931 = vmatpush3.bf16.msra.mxu0 %v13718_v61  ;;  %11995 = vmatpush3.bf16.msra.mxu1 %v13684_v26 }
 0x8d7   :  { %11997 = vmatprep.subr.bf16.mxu0 %v13644_v31  ;;  %12061 = vmatprep.subr.bf16.mxu1 %v13642_v30 }
 0x8d8   :  { %9380 = vmatprep.mubr.f32.mxu0 %v3258_v51  ;;  %9450 = vmatprep.mubr.f32.mxu1 %v3258_v51 }
 0x8d9   :  { %9381 = vmatmul.mubr.f32.vlgmr.msra.gmra.mrb[36].mxu0 %v3259_v52  ;;  %9451 = vmatmul.mubr.f32.vlgmr.msra.gmra.mrb[6].mxu1 %v3259_v52 }
 0x8da   :  { %11999 = vmatpush3.bf16.msra.mxu0 %v13644_v31  ;;  %12063 = vmatpush3.bf16.msra.mxu1 %v13642_v30 }
 0x8db   :  { %12001 = vmatprep.subr.bf16.mxu0 %v13655_v50  ;;  %12065 = vmatprep.subr.bf16.mxu1 %v13647_v37 }
 0x8de   :  { %12003 = vmatpush3.bf16.msra.mxu0 %v13655_v50  ;;  %12067 = vmatpush3.bf16.msra.mxu1 %v13647_v37 }
 0x8df   :  { %12005 = vmatprep.subr.bf16.mxu0 %v13662_v59  ;;  %12069 = vmatprep.subr.bf16.mxu1 %v13652_v46 }
 0x8e2   :  { %12007 = vmatpush3.bf16.msra.mxu0 %v13662_v59  ;;  %12071 = vmatpush3.bf16.msra.mxu1 %v13652_v46 }
 0x8e3   :  { %12009 = vmatprep.subr.bf16.mxu0 %v13675_v13  ;;  %12073 = vmatprep.subr.bf16.mxu1 %v13659_v56 }
 0x8e6   :  { %12011 = vmatpush3.bf16.msra.mxu0 %v13675_v13  ;;  %12075 = vmatpush3.bf16.msra.mxu1 %v13659_v56 }
 0x8e7   :  { %12013 = vmatprep.subr.bf16.mxu0 %v13687_v28  ;;  %12077 = vmatprep.subr.bf16.mxu1 %v13666_v0 }
 0x8ea   :  { %12015 = vmatpush3.bf16.msra.mxu0 %v13687_v28  ;;  %12079 = vmatpush3.bf16.msra.mxu1 %v13666_v0 }
 0x8eb   :  { %12017 = vmatprep.subr.bf16.mxu0 %v13695_v42  ;;  %12081 = vmatprep.subr.bf16.mxu1 %v13672_v9 }
 0x8ee   :  { %12019 = vmatpush3.bf16.msra.mxu0 %v13695_v42  ;;  %12083 = vmatpush3.bf16.msra.mxu1 %v13672_v9 }
 0x8ef   :  { %12021 = vmatprep.subr.bf16.mxu0 %v13699_v43  ;;  %12085 = vmatprep.subr.bf16.mxu1 %v13679_v17 }
 0x8f2   :  { %12023 = vmatpush3.bf16.msra.mxu0 %v13699_v43  ;;  %12087 = vmatpush3.bf16.msra.mxu1 %v13679_v17 }
 0x8f3   :  { %12025 = vmatprep.subr.bf16.mxu0 %v13718_v61  ;;  %12089 = vmatprep.subr.bf16.mxu1 %v13684_v26 }
 0x8f6   :  { %12027 = vmatpush3.bf16.msra.mxu0 %v13718_v61  ;;  %12091 = vmatpush3.bf16.msra.mxu1 %v13684_v26 }
 0x8f7   :  { %12029 = vmatprep.subr.bf16.mxu0 %v13644_v31  ;;  %12093 = vmatprep.subr.bf16.mxu1 %v13642_v30 }
 0x98c   :  { %v9417_v53 = vpop.f32.mrb[4].mxu1 }
 0x98d   :  { %v3485_v54 = vpop.f32.mrb[5].mxu1  ;;  %v3497_v57 = vmax.f32 %v9417_v53, 0.0 }
 0x98e   :  { %v3496_v55 = vmax.f32 %v3485_v54, 0.0 }
 0x990   :  { %9485 = vmatprep.mubr.f32.mxu0 %v3496_v55  ;;  %9555 = vmatprep.mubr.f32.mxu1 %v3496_v55 }
 0x991   :  { %9486 = vmatmul.mubr.f32.vlgmr.msra.gmra.mrb[38].mxu0 %v3497_v57  ;;  %9556 = vmatmul.mubr.f32.vlgmr.msra.gmra.mrb[8].mxu1 %v3497_v57 }
 0x992   :  { %12031 = vmatpush3.bf16.msra.mxu0 %v13644_v31  ;;  %12095 = vmatpush3.bf16.msra.mxu1 %v13642_v30 }
 0x993   :  { %12033 = vmatprep.subr.bf16.mxu0 %v13655_v50  ;;  %12097 = vmatprep.subr.bf16.mxu1 %v13647_v37 }
 0x996   :  { %12035 = vmatpush3.bf16.msra.mxu0 %v13655_v50  ;;  %12099 = vmatpush3.bf16.msra.mxu1 %v13647_v37 }
 0x997   :  { %12037 = vmatprep.subr.bf16.mxu0 %v13662_v59  ;;  %12101 = vmatprep.subr.bf16.mxu1 %v13652_v46 }
 0x99a   :  { %12039 = vmatpush3.bf16.msra.mxu0 %v13662_v59  ;;  %12103 = vmatpush3.bf16.msra.mxu1 %v13652_v46 }
 0x99b   :  { %12041 = vmatprep.subr.bf16.mxu0 %v13675_v13  ;;  %12105 = vmatprep.subr.bf16.mxu1 %v13659_v56 }
 0x99e   :  { %12043 = vmatpush3.bf16.msra.mxu0 %v13675_v13  ;;  %12107 = vmatpush3.bf16.msra.mxu1 %v13659_v56 }
 0x99f   :  { %12045 = vmatprep.subr.bf16.mxu0 %v13687_v28  ;;  %12109 = vmatprep.subr.bf16.mxu1 %v13666_v0 }
 0x9a2   :  { %12047 = vmatpush3.bf16.msra.mxu0 %v13687_v28  ;;  %12111 = vmatpush3.bf16.msra.mxu1 %v13666_v0 }
 0x9a3   :  { %12049 = vmatprep.subr.bf16.mxu0 %v13695_v42  ;;  %12113 = vmatprep.subr.bf16.mxu1 %v13672_v9 }
 0x9a6   :  { %12051 = vmatpush3.bf16.msra.mxu0 %v13695_v42  ;;  %12115 = vmatpush3.bf16.msra.mxu1 %v13672_v9 }
 0x9a7   :  { %12053 = vmatprep.subr.bf16.mxu0 %v13699_v43  ;;  %12117 = vmatprep.subr.bf16.mxu1 %v13679_v17 }
 0x9aa   :  { %12055 = vmatpush3.bf16.msra.mxu0 %v13699_v43  ;;  %12119 = vmatpush3.bf16.msra.mxu1 %v13679_v17 }
 0x9ab   :  { %12057 = vmatprep.subr.bf16.mxu0 %v13718_v61  ;;  %12121 = vmatprep.subr.bf16.mxu1 %v13684_v26 }
 0x9ac   :  { %v9452_v58 = vpop.f32.mrb[6].mxu1 }
 0x9ad   :  { %v3564_v60 = vpop.f32.mrb[7].mxu1  ;;  %v3576_v63 = vmax.f32 %v9452_v58, 0.0 }
 0x9ae   :  { %v3575_v62 = vmax.f32 %v3564_v60, 0.0  ;;  %12059 = vmatpush3.bf16.msra.mxu0 %v13718_v61  ;;  %12123 = vmatpush3.bf16.msra.mxu1 %v13684_v26 }
 0x9af   :  { %12125 = vmatprep.subr.bf16.mxu0 %v13644_v31  ;;  %12189 = vmatprep.subr.bf16.mxu1 %v13642_v30 }
 0x9b0   :  { %9520 = vmatprep.mubr.f32.mxu0 %v3575_v62  ;;  %9590 = vmatprep.mubr.f32.mxu1 %v3575_v62 }
 0x9b1   :  { %9521 = vmatmul.mubr.f32.vlgmr.msra.gmra.mrb[40].mxu0 %v3576_v63  ;;  %9591 = vmatmul.mubr.f32.vlgmr.msra.gmra.mrb[10].mxu1 %v3576_v63 }
 0x9b2   :  { %12127 = vmatpush3.bf16.msra.mxu0 %v13644_v31  ;;  %12191 = vmatpush3.bf16.msra.mxu1 %v13642_v30 }
 0x9b3   :  { %12129 = vmatprep.subr.bf16.mxu0 %v13655_v50  ;;  %12193 = vmatprep.subr.bf16.mxu1 %v13647_v37 }
 0x9b6   :  { %12131 = vmatpush3.bf16.msra.mxu0 %v13655_v50  ;;  %12195 = vmatpush3.bf16.msra.mxu1 %v13647_v37 }
 0x9b7   :  { %12133 = vmatprep.subr.bf16.mxu0 %v13662_v59  ;;  %12197 = vmatprep.subr.bf16.mxu1 %v13652_v46 }
 0x9ba   :  { %12135 = vmatpush3.bf16.msra.mxu0 %v13662_v59  ;;  %12199 = vmatpush3.bf16.msra.mxu1 %v13652_v46 }
 0x9bb   :  { %12137 = vmatprep.subr.bf16.mxu0 %v13675_v13  ;;  %12201 = vmatprep.subr.bf16.mxu1 %v13659_v56 }
 0x9be   :  { %12139 = vmatpush3.bf16.msra.mxu0 %v13675_v13  ;;  %12203 = vmatpush3.bf16.msra.mxu1 %v13659_v56 }
 0x9bf   :  { %12141 = vmatprep.subr.bf16.mxu0 %v13687_v28  ;;  %12205 = vmatprep.subr.bf16.mxu1 %v13666_v0 }
 0x9c2   :  { %12143 = vmatpush3.bf16.msra.mxu0 %v13687_v28  ;;  %12207 = vmatpush3.bf16.msra.mxu1 %v13666_v0 }
 0x9c3   :  { %12145 = vmatprep.subr.bf16.mxu0 %v13695_v42  ;;  %12209 = vmatprep.subr.bf16.mxu1 %v13672_v9 }
 0x9c6   :  { %12147 = vmatpush3.bf16.msra.mxu0 %v13695_v42  ;;  %12211 = vmatpush3.bf16.msra.mxu1 %v13672_v9 }
 0x9c7   :  { %12149 = vmatprep.subr.bf16.mxu0 %v13699_v43  ;;  %12213 = vmatprep.subr.bf16.mxu1 %v13679_v17 }
 0x9ca   :  { %12151 = vmatpush3.bf16.msra.mxu0 %v13699_v43  ;;  %12215 = vmatpush3.bf16.msra.mxu1 %v13679_v17 }
 0x9cb   :  { %12153 = vmatprep.subr.bf16.mxu0 %v13718_v61  ;;  %12217 = vmatprep.subr.bf16.mxu1 %v13684_v26 }
 0x9ce   :  { %12155 = vmatpush3.bf16.msra.mxu0 %v13718_v61  ;;  %12219 = vmatpush3.bf16.msra.mxu1 %v13684_v26 }
 0x9cf   :  { %12157 = vmatprep.subr.bf16.mxu0 %v13644_v31  ;;  %12221 = vmatprep.subr.bf16.mxu1 %v13642_v30 }
 0xa64   :  { %v9557_v1 = vpop.f32.mrb[8].mxu1 }
 0xa65   :  { %v3802_v2 = vpop.f32.mrb[9].mxu1  ;;  %v3814_v4 = vmax.f32 %v9557_v1, 0.0 }
 0xa66   :  { %v3813_v3 = vmax.f32 %v3802_v2, 0.0 }
 0xa68   :  { %9625 = vmatprep.mubr.f32.mxu0 %v3813_v3  ;;  %9695 = vmatprep.mubr.f32.mxu1 %v3813_v3 }
 0xa69   :  { %9626 = vmatmul.mubr.f32.vlgmr.msra.gmra.mrb[42].mxu0 %v3814_v4  ;;  %9696 = vmatmul.mubr.f32.vlgmr.msra.gmra.mrb[12].mxu1 %v3814_v4 }
 0xa6a   :  { %12159 = vmatpush3.bf16.msra.mxu0 %v13644_v31  ;;  %12223 = vmatpush3.bf16.msra.mxu1 %v13642_v30 }
 0xa6b   :  { %12161 = vmatprep.subr.bf16.mxu0 %v13655_v50  ;;  %12225 = vmatprep.subr.bf16.mxu1 %v13647_v37 }
 0xa6e   :  { %12163 = vmatpush3.bf16.msra.mxu0 %v13655_v50  ;;  %12227 = vmatpush3.bf16.msra.mxu1 %v13647_v37 }
 0xa6f   :  { %12165 = vmatprep.subr.bf16.mxu0 %v13662_v59  ;;  %12229 = vmatprep.subr.bf16.mxu1 %v13652_v46 }
 0xa72   :  { %12167 = vmatpush3.bf16.msra.mxu0 %v13662_v59  ;;  %12231 = vmatpush3.bf16.msra.mxu1 %v13652_v46 }
 0xa73   :  { %12169 = vmatprep.subr.bf16.mxu0 %v13675_v13  ;;  %12233 = vmatprep.subr.bf16.mxu1 %v13659_v56 }
 0xa76   :  { %12171 = vmatpush3.bf16.msra.mxu0 %v13675_v13  ;;  %12235 = vmatpush3.bf16.msra.mxu1 %v13659_v56 }
 0xa77   :  { %12173 = vmatprep.subr.bf16.mxu0 %v13687_v28  ;;  %12237 = vmatprep.subr.bf16.mxu1 %v13666_v0 }
 0xa7a   :  { %12175 = vmatpush3.bf16.msra.mxu0 %v13687_v28  ;;  %12239 = vmatpush3.bf16.msra.mxu1 %v13666_v0  ;;  %v4365_v0 = vld [vmem:[#allocation11] sm:$0xff] }
 0xa7b   :  { %12177 = vmatprep.subr.bf16.mxu0 %v13695_v42  ;;  %12241 = vmatprep.subr.bf16.mxu1 %v13672_v9 }
 0xa7e   :  { %12179 = vmatpush3.bf16.msra.mxu0 %v13695_v42  ;;  %12243 = vmatpush3.bf16.msra.mxu1 %v13672_v9  ;;  %v4366_v9 = vld [vmem:[#allocation11 + $0x8] sm:$0xff] }
 0xa7f   :  { %12181 = vmatprep.subr.bf16.mxu0 %v13699_v43  ;;  %12245 = vmatprep.subr.bf16.mxu1 %v13679_v17 }
 0xa82   :  { %12183 = vmatpush3.bf16.msra.mxu0 %v13699_v43  ;;  %12247 = vmatpush3.bf16.msra.mxu1 %v13679_v17  ;;  %v14424_v17 = vpack.c.bf16 %v4366_v9, %v4365_v0 }
 0xa83   :  { %12185 = vmatprep.subr.bf16.mxu0 %v13718_v61  ;;  %12249 = vmatprep.subr.bf16.mxu1 %v13684_v26 }
 0xa84   :  { %v9592_v30 = vpop.f32.mrb[10].mxu1 }
 0xa85   :  { %v3881_v37 = vpop.f32.mrb[11].mxu1  ;;  %v3893_v56 = vmax.f32 %v9592_v30, 0.0 }
 0xa86   :  { %v3892_v46 = vmax.f32 %v3881_v37, 0.0  ;;  %12187 = vmatpush3.bf16.msra.mxu0 %v13718_v61  ;;  %12251 = vmatpush3.bf16.msra.mxu1 %v13684_v26  ;;  %v4367_v26 = vld [vmem:[#allocation11 + $0x10] sm:$0xff] }
 0xa87   :  { %12253 = vmatprep.subr.bf16.mxu0 %v13644_v31  ;;  %12349 = vmatprep.subr.bf16.mxu1 %v14424_v17  ;;  %v14428_v6 = vpack.c.bf16 %v4368_v5, %v4367_v26 }
 0xa88   :  { %9660 = vmatprep.mubr.f32.mxu0 %v3892_v46  ;;  %9730 = vmatprep.mubr.f32.mxu1 %v3892_v46 }
 0xa89   :  { %9661 = vmatmul.mubr.f32.vlgmr.msra.gmra.mrb[44].mxu0 %v3893_v56  ;;  %9731 = vmatmul.mubr.f32.vlgmr.msra.gmra.mrb[14].mxu1 %v3893_v56 }
 0xa8a   :  { %12255 = vmatpush3.bf16.msra.mxu0 %v13644_v31  ;;  %12351 = vmatpush3.bf16.msra.mxu1 %v14424_v17 }
 0xa8b   :  { %12257 = vmatprep.subr.bf16.mxu0 %v13655_v50  ;;  %12353 = vmatprep.subr.bf16.mxu1 %v14428_v6 }
 0xa8e   :  { %12259 = vmatpush3.bf16.msra.mxu0 %v13655_v50  ;;  %12355 = vmatpush3.bf16.msra.mxu1 %v14428_v6 }
 0xa8f   :  { %12261 = vmatprep.subr.bf16.mxu0 %v13662_v59  ;;  %12357 = vmatprep.subr.bf16.mxu1 %v14432_v10 }
 0xa92   :  { %12263 = vmatpush3.bf16.msra.mxu0 %v13662_v59  ;;  %12359 = vmatpush3.bf16.msra.mxu1 %v14432_v10 }
 0xa93   :  { %12265 = vmatprep.subr.bf16.mxu0 %v13675_v13  ;;  %12361 = vmatprep.subr.bf16.mxu1 %v14436_v14 }
 0xa96   :  { %12267 = vmatpush3.bf16.msra.mxu0 %v13675_v13  ;;  %12363 = vmatpush3.bf16.msra.mxu1 %v14436_v14 }
 0xa97   :  { %12269 = vmatprep.subr.bf16.mxu0 %v13687_v28  ;;  %12365 = vmatprep.subr.bf16.mxu1 %v14440_v22 }
 0xa9a   :  { %12271 = vmatpush3.bf16.msra.mxu0 %v13687_v28  ;;  %12367 = vmatpush3.bf16.msra.mxu1 %v14440_v22 }
 0xa9b   :  { %12273 = vmatprep.subr.bf16.mxu0 %v13695_v42  ;;  %12369 = vmatprep.subr.bf16.mxu1 %v14444_v25 }
 0xa9e   :  { %12275 = vmatpush3.bf16.msra.mxu0 %v13695_v42  ;;  %12371 = vmatpush3.bf16.msra.mxu1 %v14444_v25 }
 0xa9f   :  { %12277 = vmatprep.subr.bf16.mxu0 %v13699_v43  ;;  %12373 = vmatprep.subr.bf16.mxu1 %v14448_v32 }
 0xaa2   :  { %12279 = vmatpush3.bf16.msra.mxu0 %v13699_v43  ;;  %12375 = vmatpush3.bf16.msra.mxu1 %v14448_v32 }
 0xaa3   :  { %12281 = vmatprep.subr.bf16.mxu0 %v13718_v61  ;;  %12377 = vmatprep.subr.bf16.mxu1 %v14452_v35 }
 0xaa6   :  { %12283 = vmatpush3.bf16.msra.mxu0 %v13718_v61  ;;  %12379 = vmatpush3.bf16.msra.mxu1 %v14452_v35 }
 0xaa7   :  { %12285 = vmatprep.subr.bf16.mxu0 %v13644_v31  ;;  %12381 = vmatprep.subr.bf16.mxu1 %v14424_v17 }
 0xb3c   :  { %v9697_v38 = vpop.f32.mrb[12].mxu1 }
 0xb3d   :  { %v4119_v39 = vpop.f32.mrb[13].mxu1  ;;  %v4131_v41 = vmax.f32 %v9697_v38, 0.0 }
 0xb3e   :  { %v4130_v40 = vmax.f32 %v4119_v39, 0.0 }
 0xb40   :  { %9765 = vmatprep.mubr.f32.mxu0 %v4130_v40 }
 0xb41   :  { %9766 = vmatmul.mubr.f32.vlgmr.msra.gmra.mrb[46].mxu0 %v4131_v41 }
 0xb42   :  { %12287 = vmatpush3.bf16.msra.mxu0 %v13644_v31 }
 0xb43   :  { %12289 = vmatprep.subr.bf16.mxu0 %v13655_v50 }
 0xb46   :  { %12291 = vmatpush3.bf16.msra.mxu0 %v13655_v50 }
 0xb47   :  { %12293 = vmatprep.subr.bf16.mxu0 %v13662_v59 }
 0xb4a   :  { %12295 = vmatpush3.bf16.msra.mxu0 %v13662_v59 }
 0xb4b   :  { %12297 = vmatprep.subr.bf16.mxu0 %v13675_v13 }
 0xb4e   :  { %12299 = vmatpush3.bf16.msra.mxu0 %v13675_v13 }
 0xb4f   :  { %12301 = vmatprep.subr.bf16.mxu0 %v13687_v28 }
 0xb52   :  { %12303 = vmatpush3.bf16.msra.mxu0 %v13687_v28 }
 0xb53   :  { %12305 = vmatprep.subr.bf16.mxu0 %v13695_v42 }
 0xb56   :  { %12307 = vmatpush3.bf16.msra.mxu0 %v13695_v42 }
 0xb57   :  { %12309 = vmatprep.subr.bf16.mxu0 %v13699_v43 }
 0xb5a   :  { %12311 = vmatpush3.bf16.msra.mxu0 %v13699_v43 }
 0xb5b   :  { %12313 = vmatprep.subr.bf16.mxu0 %v13718_v61 }
 0xb5c   :  { %v9732_v31 = vpop.f32.mrb[14].mxu1 }
 0xb5d   :  { %v4198_v50 = vpop.f32.mrb[15].mxu1  ;;  %v4210_v13 = vmax.f32 %v9732_v31, 0.0 }
 0xb5e   :  { %v4209_v59 = vmax.f32 %v4198_v50, 0.0  ;;  %12315 = vmatpush3.bf16.msra.mxu0 %v13718_v61 }
 0xb5f   :  { %12317 = vmatprep.subr.bf16.mxu0 %v14424_v17 }
 0xb60   :  { %9800 = vmatprep.mubr.f32.mxu0 %v4209_v59 }
 0xb61   :  { %9801 = vmatmul.mubr.f32.vlgmr.msra.gmra.mrb[48].mxu0 %v4210_v13 }
 0xb62   :  { %12319 = vmatpush3.bf16.msra.mxu0 %v14424_v17  ;;  %9835 = vmatprep.mubr.f32.mxu0 %v13474_v36 }
 0xb63   :  { %12321 = vmatprep.subr.bf16.mxu0 %v14428_v6 }
 0xb66   :  { %12323 = vmatpush3.bf16.msra.mxu0 %v14428_v6 }
 0xb67   :  { %12325 = vmatprep.subr.bf16.mxu0 %v14432_v10 }
 0xb6a   :  { %12327 = vmatpush3.bf16.msra.mxu0 %v14432_v10 }
 0xb6b   :  { %12329 = vmatprep.subr.bf16.mxu0 %v14436_v14 }
 0xb6e   :  { %12331 = vmatpush3.bf16.msra.mxu0 %v14436_v14 }
 0xb6f   :  { %12333 = vmatprep.subr.bf16.mxu0 %v14440_v22 }
 0xb72   :  { %12335 = vmatpush3.bf16.msra.mxu0 %v14440_v22 }
 0xb73   :  { %12337 = vmatprep.subr.bf16.mxu0 %v14444_v25 }
 0xb76   :  { %12339 = vmatpush3.bf16.msra.mxu0 %v14444_v25 }
 0xb77   :  { %12341 = vmatprep.subr.bf16.mxu0 %v14448_v32 }
 0xb7a   :  { %12343 = vmatpush3.bf16.msra.mxu0 %v14448_v32 }
 0xb7b   :  { %12345 = vmatprep.subr.bf16.mxu0 %v14452_v35 }
 0xb7e   :  { %12347 = vmatpush3.bf16.msra.mxu0 %v14452_v35 }
 0xb7f   :  { %12797 = vmatprep.subr.bf16.mxu0 %v14424_v17 }
 0xb81   :  { %9836 = vmatmul.mubr.f32.vlgmr.msra.gmra.mrb[50].mxu0 %v13474_v36 }
 0xb82   :  { %12799 = vmatpush3.bf16.msra.mxu0 %v14424_v17 }
 0xb83   :  { %12801 = vmatprep.subr.bf16.mxu0 %v14428_v6 }
 0xb86   :  { %12803 = vmatpush3.bf16.msra.mxu0 %v14428_v6 }
 0xb87   :  { %12805 = vmatprep.subr.bf16.mxu0 %v14432_v10 }
 0xb8a   :  { %12807 = vmatpush3.bf16.msra.mxu0 %v14432_v10 }
 0xb8b   :  { %12809 = vmatprep.subr.bf16.mxu0 %v14436_v14 }
 0xb8e   :  { %12811 = vmatpush3.bf16.msra.mxu0 %v14436_v14 }
 0xb8f   :  { %12813 = vmatprep.subr.bf16.mxu0 %v14440_v22 }
 0xb92   :  { %12815 = vmatpush3.bf16.msra.mxu0 %v14440_v22 }
 0xb93   :  { %12817 = vmatprep.subr.bf16.mxu0 %v14444_v25 }
 0xb96   :  { %12819 = vmatpush3.bf16.msra.mxu0 %v14444_v25 }
 0xb97   :  { %12821 = vmatprep.subr.bf16.mxu0 %v14448_v32 }
 0xb9a   :  { %12823 = vmatpush3.bf16.msra.mxu0 %v14448_v32 }
 0xb9b   :  { %12825 = vmatprep.subr.bf16.mxu0 %v14452_v35 }
 0xb9e   :  { %12827 = vmatpush3.bf16.msra.mxu0 %v14452_v35 }
 0xb9f   :  { %12829 = vmatprep.subr.bf16.mxu0 %v14424_v17 }
 0xc54   :  { %v9837_v28 = vpop.f32.mrb[50].mxu0 }
 0xc55   :  { %v4461_v36 = vadd.f32 %v9837_v28, %v13793_v18  ;;  %v4465_v42 = vadd.f32 %v9837_v28, %v13795_v19  ;;  %v4451_v43 = vpop.f32.mrb[51].mxu0 }
 0xc56   :  { %v4460_v61 = vadd.f32 %v4451_v43, %v13797_v20  ;;  %v4464_v44 = vadd.f32 %v4451_v43, %v13799_v21 }
 0xc57   :  { %v4463_v47 = vmax.f32 %v4461_v36, 0.0  ;;  %v4467_v18 = vmax.f32 %v4465_v42, 0.0 }
 0xc58   :  { %v4462_v45 = vmax.f32 %v4460_v61, 0.0  ;;  %v4466_v48 = vmax.f32 %v4464_v44, 0.0 }
 0xc5a   :  { %9870 = vmatprep.mubr.f32.mxu1 %v4462_v45 }
 0xc5b   :  { %9871 = vmatmul.mubr.f32.vlgmr.msra.gmra.mrb[20].mxu1 %v4463_v47 }
 0xc5c   :  { %12383 = vmatpush3.bf16.msra.mxu1 %v14424_v17  ;;  %9905 = vmatprep.mubr.f32.mxu1 %v4466_v48 }
 0xc5d   :  { %12385 = vmatprep.subr.bf16.mxu1 %v14428_v6 }
 0xc60   :  { %12387 = vmatpush3.bf16.msra.mxu1 %v14428_v6 }
 0xc61   :  { %12389 = vmatprep.subr.bf16.mxu1 %v14432_v10 }
 0xc64   :  { %12391 = vmatpush3.bf16.msra.mxu1 %v14432_v10 }
 0xc65   :  { %12393 = vmatprep.subr.bf16.mxu1 %v14436_v14 }
 0xc68   :  { %12395 = vmatpush3.bf16.msra.mxu1 %v14436_v14 }
 0xc69   :  { %12397 = vmatprep.subr.bf16.mxu1 %v14440_v22 }
 0xc6c   :  { %12399 = vmatpush3.bf16.msra.mxu1 %v14440_v22 }
 0xc6d   :  { %12401 = vmatprep.subr.bf16.mxu1 %v14444_v25 }
 0xc70   :  { %12403 = vmatpush3.bf16.msra.mxu1 %v14444_v25 }
 0xc71   :  { %12405 = vmatprep.subr.bf16.mxu1 %v14448_v32 }
 0xc74   :  { %12407 = vmatpush3.bf16.msra.mxu1 %v14448_v32 }
 0xc75   :  { %12409 = vmatprep.subr.bf16.mxu1 %v14452_v35 }
 0xc78   :  { %12411 = vmatpush3.bf16.msra.mxu1 %v14452_v35 }
 0xc79   :  { %12413 = vmatprep.subr.bf16.mxu1 %v14424_v17 }
 0xc7b   :  { %9906 = vmatmul.mubr.f32.vlgmr.msra.gmra.mrb[22].mxu1 %v4467_v18 }
 0xc7c   :  { %12415 = vmatpush3.bf16.msra.mxu1 %v14424_v17 }
 0xc7d   :  { %12417 = vmatprep.subr.bf16.mxu1 %v14428_v6 }
 0xc80   :  { %12419 = vmatpush3.bf16.msra.mxu1 %v14428_v6 }
 0xc81   :  { %12421 = vmatprep.subr.bf16.mxu1 %v14432_v10 }
 0xc84   :  { %12423 = vmatpush3.bf16.msra.mxu1 %v14432_v10 }
 0xc85   :  { %12425 = vmatprep.subr.bf16.mxu1 %v14436_v14 }
 0xc88   :  { %12427 = vmatpush3.bf16.msra.mxu1 %v14436_v14 }
 0xc89   :  { %12429 = vmatprep.subr.bf16.mxu1 %v14440_v22 }
 0xc8c   :  { %12431 = vmatpush3.bf16.msra.mxu1 %v14440_v22 }
 0xc8d   :  { %12433 = vmatprep.subr.bf16.mxu1 %v14444_v25 }
 0xc90   :  { %12435 = vmatpush3.bf16.msra.mxu1 %v14444_v25 }
 0xc91   :  { %12437 = vmatprep.subr.bf16.mxu1 %v14448_v32 }
 0xc94   :  { %12439 = vmatpush3.bf16.msra.mxu1 %v14448_v32 }
 0xc95   :  { %12441 = vmatprep.subr.bf16.mxu1 %v14452_v35 }
 0xc98   :  { %12443 = vmatpush3.bf16.msra.mxu1 %v14452_v35 }
 0xc99   :  { %12445 = vmatprep.subr.bf16.mxu1 %v14424_v17 }
 0xd2e   :  { %v9872_v19 = vpop.f32.mrb[20].mxu1 }
 0xd2f   :  { %v4538_v20 = vpop.f32.mrb[21].mxu1  ;;  %v4550_v49 = vmax.f32 %v9872_v19, 0.0 }
 0xd30   :  { %v4549_v21 = vmax.f32 %v4538_v20, 0.0 }
 0xd32   :  { %9940 = vmatprep.mubr.f32.mxu1 %v4549_v21 }
 0xd33   :  { %9941 = vmatmul.mubr.f32.vlgmr.msra.gmra.mrb[24].mxu1 %v4550_v49 }
 0xd34   :  { %12447 = vmatpush3.bf16.msra.mxu1 %v14424_v17 }
 0xd35   :  { %12449 = vmatprep.subr.bf16.mxu1 %v14428_v6 }
 0xd38   :  { %12451 = vmatpush3.bf16.msra.mxu1 %v14428_v6 }
 0xd39   :  { %12453 = vmatprep.subr.bf16.mxu1 %v14432_v10 }
 0xd3c   :  { %12455 = vmatpush3.bf16.msra.mxu1 %v14432_v10 }
 0xd3d   :  { %12457 = vmatprep.subr.bf16.mxu1 %v14436_v14 }
 0xd40   :  { %12459 = vmatpush3.bf16.msra.mxu1 %v14436_v14 }
 0xd41   :  { %12461 = vmatprep.subr.bf16.mxu1 %v14440_v22 }
 0xd44   :  { %12463 = vmatpush3.bf16.msra.mxu1 %v14440_v22 }
 0xd45   :  { %12465 = vmatprep.subr.bf16.mxu1 %v14444_v25 }
 0xd48   :  { %12467 = vmatpush3.bf16.msra.mxu1 %v14444_v25 }
 0xd49   :  { %12469 = vmatprep.subr.bf16.mxu1 %v14448_v32 }
 0xd4c   :  { %12471 = vmatpush3.bf16.msra.mxu1 %v14448_v32 }
 0xd4d   :  { %12473 = vmatprep.subr.bf16.mxu1 %v14452_v35 }
 0xd4e   :  { %v9907_v51 = vpop.f32.mrb[22].mxu1 }
 0xd4f   :  { %v4617_v52 = vpop.f32.mrb[23].mxu1  ;;  %v4629_v54 = vmax.f32 %v9907_v51, 0.0 }
 0xd50   :  { %v4628_v53 = vmax.f32 %v4617_v52, 0.0  ;;  %12475 = vmatpush3.bf16.msra.mxu1 %v14452_v35 }
 0xd51   :  { %12477 = vmatprep.subr.bf16.mxu1 %v14424_v17 }
 0xd52   :  { %9975 = vmatprep.mubr.f32.mxu1 %v4628_v53 }
 0xd53   :  { %9976 = vmatmul.mubr.f32.vlgmr.msra.gmra.mrb[26].mxu1 %v4629_v54 }
 0xd54   :  { %12479 = vmatpush3.bf16.msra.mxu1 %v14424_v17 }
 0xd55   :  { %12481 = vmatprep.subr.bf16.mxu1 %v14428_v6 }
 0xd58   :  { %12483 = vmatpush3.bf16.msra.mxu1 %v14428_v6 }
 0xd59   :  { %12485 = vmatprep.subr.bf16.mxu1 %v14432_v10 }
 0xd5c   :  { %12487 = vmatpush3.bf16.msra.mxu1 %v14432_v10 }
 0xd5d   :  { %12489 = vmatprep.subr.bf16.mxu1 %v14436_v14 }
 0xd60   :  { %12491 = vmatpush3.bf16.msra.mxu1 %v14436_v14 }
 0xd61   :  { %12493 = vmatprep.subr.bf16.mxu1 %v14440_v22 }
 0xd64   :  { %12495 = vmatpush3.bf16.msra.mxu1 %v14440_v22 }
 0xd65   :  { %12497 = vmatprep.subr.bf16.mxu1 %v14444_v25 }
 0xd68   :  { %12499 = vmatpush3.bf16.msra.mxu1 %v14444_v25 }
 0xd69   :  { %12501 = vmatprep.subr.bf16.mxu1 %v14448_v32 }
 0xd6c   :  { %12503 = vmatpush3.bf16.msra.mxu1 %v14448_v32 }
 0xd6d   :  { %12505 = vmatprep.subr.bf16.mxu1 %v14452_v35 }
 0xd70   :  { %12507 = vmatpush3.bf16.msra.mxu1 %v14452_v35 }
 0xd71   :  { %12509 = vmatprep.subr.bf16.mxu1 %v14424_v17 }
 0xe06   :  { %v9942_v55 = vpop.f32.mrb[24].mxu1 }
 0xe07   :  { %v4700_v57 = vpop.f32.mrb[25].mxu1  ;;  %v4712_v60 = vmax.f32 %v9942_v55, 0.0 }
 0xe08   :  { %v4711_v58 = vmax.f32 %v4700_v57, 0.0 }
 0xe0a   :  { %10010 = vmatprep.mubr.f32.mxu1 %v4711_v58 }
 0xe0b   :  { %10011 = vmatmul.mubr.f32.vlgmr.msra.gmra.mrb[28].mxu1 %v4712_v60 }
 0xe0c   :  { %12511 = vmatpush3.bf16.msra.mxu1 %v14424_v17 }
 0xe0d   :  { %12513 = vmatprep.subr.bf16.mxu1 %v14428_v6 }
 0xe10   :  { %12515 = vmatpush3.bf16.msra.mxu1 %v14428_v6 }
 0xe11   :  { %12517 = vmatprep.subr.bf16.mxu1 %v14432_v10 }
 0xe14   :  { %12519 = vmatpush3.bf16.msra.mxu1 %v14432_v10 }
 0xe15   :  { %12521 = vmatprep.subr.bf16.mxu1 %v14436_v14 }
 0xe18   :  { %12523 = vmatpush3.bf16.msra.mxu1 %v14436_v14 }
 0xe19   :  { %12525 = vmatprep.subr.bf16.mxu1 %v14440_v22 }
 0xe1c   :  { %12527 = vmatpush3.bf16.msra.mxu1 %v14440_v22 }
 0xe1d   :  { %12529 = vmatprep.subr.bf16.mxu1 %v14444_v25 }
 0xe20   :  { %12531 = vmatpush3.bf16.msra.mxu1 %v14444_v25 }
 0xe21   :  { %12533 = vmatprep.subr.bf16.mxu1 %v14448_v32 }
 0xe24   :  { %12535 = vmatpush3.bf16.msra.mxu1 %v14448_v32 }
 0xe25   :  { %12537 = vmatprep.subr.bf16.mxu1 %v14452_v35 }
 0xe26   :  { %v9977_v62 = vpop.f32.mrb[26].mxu1 }
 0xe27   :  { %v4779_v63 = vpop.f32.mrb[27].mxu1  ;;  %v4791_v2 = vmax.f32 %v9977_v62, 0.0 }
 0xe28   :  { %v4790_v1 = vmax.f32 %v4779_v63, 0.0  ;;  %12539 = vmatpush3.bf16.msra.mxu1 %v14452_v35 }
 0xe29   :  { %12541 = vmatprep.subr.bf16.mxu1 %v14424_v17 }
 0xe2a   :  { %10045 = vmatprep.mubr.f32.mxu1 %v4790_v1 }
 0xe2b   :  { %10046 = vmatmul.mubr.f32.vlgmr.msra.gmra.mrb[30].mxu1 %v4791_v2 }
 0xe2c   :  { %12543 = vmatpush3.bf16.msra.mxu1 %v14424_v17 }
 0xe2d   :  { %12545 = vmatprep.subr.bf16.mxu1 %v14428_v6 }
 0xe30   :  { %12547 = vmatpush3.bf16.msra.mxu1 %v14428_v6 }
 0xe31   :  { %12549 = vmatprep.subr.bf16.mxu1 %v14432_v10 }
 0xe34   :  { %12551 = vmatpush3.bf16.msra.mxu1 %v14432_v10 }
 0xe35   :  { %12553 = vmatprep.subr.bf16.mxu1 %v14436_v14 }
 0xe38   :  { %12555 = vmatpush3.bf16.msra.mxu1 %v14436_v14 }
 0xe39   :  { %12557 = vmatprep.subr.bf16.mxu1 %v14440_v22 }
 0xe3c   :  { %12559 = vmatpush3.bf16.msra.mxu1 %v14440_v22 }
 0xe3d   :  { %12561 = vmatprep.subr.bf16.mxu1 %v14444_v25 }
 0xe40   :  { %12563 = vmatpush3.bf16.msra.mxu1 %v14444_v25 }
 0xe41   :  { %12565 = vmatprep.subr.bf16.mxu1 %v14448_v32 }
 0xe44   :  { %12567 = vmatpush3.bf16.msra.mxu1 %v14448_v32 }
 0xe45   :  { %12569 = vmatprep.subr.bf16.mxu1 %v14452_v35 }
 0xe48   :  { %12571 = vmatpush3.bf16.msra.mxu1 %v14452_v35 }
 0xe49   :  { %12573 = vmatprep.subr.bf16.mxu1 %v14424_v17 }
 0xede   :  { %v10012_v3 = vpop.f32.mrb[28].mxu1 }
 0xedf   :  { %v4862_v4 = vpop.f32.mrb[29].mxu1  ;;  %v4874_v37 = vmax.f32 %v10012_v3, 0.0 }
 0xee0   :  { %v4873_v30 = vmax.f32 %v4862_v4, 0.0 }
 0xee2   :  { %10080 = vmatprep.mubr.f32.mxu1 %v4873_v30 }
 0xee3   :  { %10081 = vmatmul.mubr.f32.vlgmr.msra.gmra.mrb[32].mxu1 %v4874_v37 }
 0xee4   :  { %12575 = vmatpush3.bf16.msra.mxu1 %v14424_v17 }
 0xee5   :  { %12577 = vmatprep.subr.bf16.mxu1 %v14428_v6 }
 0xee8   :  { %12579 = vmatpush3.bf16.msra.mxu1 %v14428_v6 }
 0xee9   :  { %12581 = vmatprep.subr.bf16.mxu1 %v14432_v10 }
 0xeec   :  { %12583 = vmatpush3.bf16.msra.mxu1 %v14432_v10 }
 0xeed   :  { %12585 = vmatprep.subr.bf16.mxu1 %v14436_v14 }
 0xef0   :  { %12587 = vmatpush3.bf16.msra.mxu1 %v14436_v14 }
 0xef1   :  { %12589 = vmatprep.subr.bf16.mxu1 %v14440_v22 }
 0xef4   :  { %12591 = vmatpush3.bf16.msra.mxu1 %v14440_v22 }
 0xef5   :  { %12593 = vmatprep.subr.bf16.mxu1 %v14444_v25 }
 0xef8   :  { %12595 = vmatpush3.bf16.msra.mxu1 %v14444_v25 }
 0xef9   :  { %12597 = vmatprep.subr.bf16.mxu1 %v14448_v32 }
 0xefc   :  { %12599 = vmatpush3.bf16.msra.mxu1 %v14448_v32 }
 0xefd   :  { %12601 = vmatprep.subr.bf16.mxu1 %v14452_v35 }
 0xefe   :  { %v10047_v46 = vpop.f32.mrb[30].mxu1 }
 0xeff   :  { %v4941_v56 = vpop.f32.mrb[31].mxu1  ;;  %v4953_v9 = vmax.f32 %v10047_v46, 0.0 }
 0xf00   :  { %v4952_v0 = vmax.f32 %v4941_v56, 0.0  ;;  %12603 = vmatpush3.bf16.msra.mxu1 %v14452_v35  ;;  %v6253_v56 = vld [vmem:[#allocation12 + $0x18] sm:$0xff] }
 0xf01   :  { %12605 = vmatprep.subr.bf16.mxu1 %v14424_v17 }
 0xf02   :  { %10115 = vmatprep.mubr.f32.mxu1 %v4952_v0 }
 0xf03   :  { %10116 = vmatmul.mubr.f32.vlgmr.msra.gmra.mrb[34].mxu1 %v4953_v9 }
 0xf04   :  { %12607 = vmatpush3.bf16.msra.mxu1 %v14424_v17 }
 0xf05   :  { %12609 = vmatprep.subr.bf16.mxu1 %v14428_v6 }
 0xf08   :  { %12611 = vmatpush3.bf16.msra.mxu1 %v14428_v6 }
 0xf09   :  { %12613 = vmatprep.subr.bf16.mxu1 %v14432_v10 }
 0xf0c   :  { %12615 = vmatpush3.bf16.msra.mxu1 %v14432_v10 }
 0xf0d   :  { %12617 = vmatprep.subr.bf16.mxu1 %v14436_v14 }
 0xf10   :  { %12619 = vmatpush3.bf16.msra.mxu1 %v14436_v14 }
 0xf11   :  { %12621 = vmatprep.subr.bf16.mxu1 %v14440_v22 }
 0xf14   :  { %12623 = vmatpush3.bf16.msra.mxu1 %v14440_v22 }
 0xf15   :  { %12625 = vmatprep.subr.bf16.mxu1 %v14444_v25 }
 0xf18   :  { %12627 = vmatpush3.bf16.msra.mxu1 %v14444_v25 }
 0xf19   :  { %12629 = vmatprep.subr.bf16.mxu1 %v14448_v32 }
 0xf1c   :  { %12631 = vmatpush3.bf16.msra.mxu1 %v14448_v32 }
 0xf1d   :  { %12633 = vmatprep.subr.bf16.mxu1 %v14452_v35 }
 0xf20   :  { %12635 = vmatpush3.bf16.msra.mxu1 %v14452_v35 }
 0xf21   :  { %12637 = vmatprep.subr.bf16.mxu1 %v14424_v17 }
 0xfb6   :  { %v10082_v26 = vpop.f32.mrb[32].mxu1 }
 0xfb7   :  { %v5024_v5 = vpop.f32.mrb[33].mxu1  ;;  %v5036_v8 = vmax.f32 %v10082_v26, 0.0  ;;  %v6254_v26 = vld [vmem:[#allocation12 + $0x20] sm:$0xff] }
 0xfb8   :  { %v5035_v7 = vmax.f32 %v5024_v5, 0.0  ;;  %v6255_v5 = vld [vmem:[#allocation12 + $0x28] sm:$0xff] }
 0xfba   :  { %10150 = vmatprep.mubr.f32.mxu1 %v5035_v7  ;;  %v6256_v7 = vld [vmem:[#allocation12 + $0x30] sm:$0xff] }
 0xfbb   :  { %10151 = vmatmul.mubr.f32.vlgmr.msra.gmra.mrb[36].mxu1 %v5036_v8  ;;  %v6257_v8 = vld [vmem:[#allocation12 + $0x38] sm:$0xff] }
 0xfbc   :  { %12639 = vmatpush3.bf16.msra.mxu1 %v14424_v17 }
 0xfbd   :  { %12641 = vmatprep.subr.bf16.mxu1 %v14428_v6 }
 0xfc0   :  { %12643 = vmatpush3.bf16.msra.mxu1 %v14428_v6 }
 0xfc1   :  { %12645 = vmatprep.subr.bf16.mxu1 %v14432_v10 }
 0xfc4   :  { %12647 = vmatpush3.bf16.msra.mxu1 %v14432_v10 }
 0xfc5   :  { %12649 = vmatprep.subr.bf16.mxu1 %v14436_v14 }
 0xfc8   :  { %12651 = vmatpush3.bf16.msra.mxu1 %v14436_v14 }
 0xfc9   :  { %12653 = vmatprep.subr.bf16.mxu1 %v14440_v22 }
 0xfcc   :  { %12655 = vmatpush3.bf16.msra.mxu1 %v14440_v22 }
 0xfcd   :  { %12657 = vmatprep.subr.bf16.mxu1 %v14444_v25 }
 0xfd0   :  { %12659 = vmatpush3.bf16.msra.mxu1 %v14444_v25 }
 0xfd1   :  { %12661 = vmatprep.subr.bf16.mxu1 %v14448_v32 }
 0xfd4   :  { %12663 = vmatpush3.bf16.msra.mxu1 %v14448_v32 }
 0xfd5   :  { %12665 = vmatprep.subr.bf16.mxu1 %v14452_v35 }
 0xfd6   :  { %v10117_v11 = vpop.f32.mrb[34].mxu1 }
 0xfd7   :  { %v5103_v12 = vpop.f32.mrb[35].mxu1  ;;  %v5115_v16 = vmax.f32 %v10117_v11, 0.0  ;;  %v6258_v11 = vld [vmem:[#allocation12 + $0x40] sm:$0xff] }
 0xfd8   :  { %v5114_v15 = vmax.f32 %v5103_v12, 0.0  ;;  %12667 = vmatpush3.bf16.msra.mxu1 %v14452_v35  ;;  %v6259_v12 = vld [vmem:[#allocation12 + $0x48] sm:$0xff] }
 0xfd9   :  { %12669 = vmatprep.subr.bf16.mxu1 %v14424_v17 }
 0xfda   :  { %10185 = vmatprep.mubr.f32.mxu1 %v5114_v15  ;;  %v14844_v15 = vpack.c.bf16 %v6259_v12, %v6258_v11 }
 0xfdb   :  { %10186 = vmatmul.mubr.f32.vlgmr.msra.gmra.mrb[38].mxu1 %v5115_v16  ;;  %v6260_v16 = vld [vmem:[#allocation12 + $0x50] sm:$0xff] }
 0xfdc   :  { %12671 = vmatpush3.bf16.msra.mxu1 %v14424_v17 }
 0xfdd   :  { %12673 = vmatprep.subr.bf16.mxu1 %v14428_v6 }
 0xfe0   :  { %12675 = vmatpush3.bf16.msra.mxu1 %v14428_v6 }
 0xfe1   :  { %12677 = vmatprep.subr.bf16.mxu1 %v14432_v10 }
 0xfe4   :  { %12679 = vmatpush3.bf16.msra.mxu1 %v14432_v10 }
 0xfe5   :  { %12681 = vmatprep.subr.bf16.mxu1 %v14436_v14 }
 0xfe8   :  { %12683 = vmatpush3.bf16.msra.mxu1 %v14436_v14 }
 0xfe9   :  { %12685 = vmatprep.subr.bf16.mxu1 %v14440_v22 }
 0xfec   :  { %12687 = vmatpush3.bf16.msra.mxu1 %v14440_v22 }
 0xfed   :  { %12689 = vmatprep.subr.bf16.mxu1 %v14444_v25 }
 0xff0   :  { %12691 = vmatpush3.bf16.msra.mxu1 %v14444_v25 }
 0xff1   :  { %12693 = vmatprep.subr.bf16.mxu1 %v14448_v32 }
 0xff4   :  { %12695 = vmatpush3.bf16.msra.mxu1 %v14448_v32 }
 0xff5   :  { %12697 = vmatprep.subr.bf16.mxu1 %v14452_v35 }
 0xff8   :  { %12699 = vmatpush3.bf16.msra.mxu1 %v14452_v35 }
 0xff9   :  { %12701 = vmatprep.subr.bf16.mxu1 %v14424_v17 }
0x108e   :  { %v10152_v23 = vpop.f32.mrb[36].mxu1 }
0x108f   :  { %v5186_v24 = vpop.f32.mrb[37].mxu1  ;;  %v5198_v29 = vmax.f32 %v10152_v23, 0.0  ;;  %v6261_v23 = vld [vmem:[#allocation12 + $0x58] sm:$0xff] }
0x1090   :  { %v5197_v27 = vmax.f32 %v5186_v24, 0.0  ;;  %v14848_v24 = vpack.c.bf16 %v6261_v23, %v6260_v16 }
0x1092   :  { %10220 = vmatprep.mubr.f32.mxu1 %v5197_v27  ;;  %v6262_v27 = vld [vmem:[#allocation12 + $0x60] sm:$0xff] }
0x1093   :  { %10221 = vmatmul.mubr.f32.vlgmr.msra.gmra.mrb[40].mxu1 %v5198_v29  ;;  %v6263_v29 = vld [vmem:[#allocation12 + $0x68] sm:$0xff] }
0x1094   :  { %12703 = vmatpush3.bf16.msra.mxu1 %v14424_v17 }
0x1095   :  { %12705 = vmatprep.subr.bf16.mxu1 %v14428_v6 }
0x1098   :  { %12707 = vmatpush3.bf16.msra.mxu1 %v14428_v6 }
0x1099   :  { %12709 = vmatprep.subr.bf16.mxu1 %v14432_v10 }
0x109c   :  { %12711 = vmatpush3.bf16.msra.mxu1 %v14432_v10 }
0x109d   :  { %12713 = vmatprep.subr.bf16.mxu1 %v14436_v14 }
0x10a0   :  { %12715 = vmatpush3.bf16.msra.mxu1 %v14436_v14 }
0x10a1   :  { %12717 = vmatprep.subr.bf16.mxu1 %v14440_v22 }
0x10a4   :  { %12719 = vmatpush3.bf16.msra.mxu1 %v14440_v22 }
0x10a5   :  { %12721 = vmatprep.subr.bf16.mxu1 %v14444_v25 }
0x10a8   :  { %12723 = vmatpush3.bf16.msra.mxu1 %v14444_v25 }
0x10a9   :  { %12725 = vmatprep.subr.bf16.mxu1 %v14448_v32 }
0x10ac   :  { %12727 = vmatpush3.bf16.msra.mxu1 %v14448_v32 }
0x10ad   :  { %12729 = vmatprep.subr.bf16.mxu1 %v14452_v35 }
0x10ae   :  { %v10187_v33 = vpop.f32.mrb[38].mxu1 }
0x10af   :  { %v5265_v34 = vpop.f32.mrb[39].mxu1  ;;  %v5277_v39 = vmax.f32 %v10187_v33, 0.0  ;;  %v14852_v33 = vpack.c.bf16 %v6263_v29, %v6262_v27 }
0x10b0   :  { %v5276_v38 = vmax.f32 %v5265_v34, 0.0  ;;  %12731 = vmatpush3.bf16.msra.mxu1 %v14452_v35  ;;  %v6264_v34 = vld [vmem:[#allocation12 + $0x70] sm:$0xff] }
0x10b1   :  { %12733 = vmatprep.subr.bf16.mxu1 %v14424_v17 }
0x10b2   :  { %10255 = vmatprep.mubr.f32.mxu1 %v5276_v38  ;;  %v6265_v38 = vld [vmem:[#allocation12 + $0x78] sm:$0xff] }
0x10b3   :  { %10256 = vmatmul.mubr.f32.vlgmr.msra.gmra.mrb[42].mxu1 %v5277_v39  ;;  %v14857_v39 = vpack.c.bf16 %v6265_v38, %v6264_v34 }
0x10b4   :  { %12735 = vmatpush3.bf16.msra.mxu1 %v14424_v17 }
0x10b5   :  { %12737 = vmatprep.subr.bf16.mxu1 %v14428_v6 }
0x10b8   :  { %12739 = vmatpush3.bf16.msra.mxu1 %v14428_v6 }
0x10b9   :  { %12741 = vmatprep.subr.bf16.mxu1 %v14432_v10 }
0x10bc   :  { %12743 = vmatpush3.bf16.msra.mxu1 %v14432_v10 }
0x10bd   :  { %12745 = vmatprep.subr.bf16.mxu1 %v14436_v14 }
0x10c0   :  { %12747 = vmatpush3.bf16.msra.mxu1 %v14436_v14 }
0x10c1   :  { %12749 = vmatprep.subr.bf16.mxu1 %v14440_v22 }
0x10c4   :  { %12751 = vmatpush3.bf16.msra.mxu1 %v14440_v22 }
0x10c5   :  { %12753 = vmatprep.subr.bf16.mxu1 %v14444_v25 }
0x10c8   :  { %12755 = vmatpush3.bf16.msra.mxu1 %v14444_v25 }
0x10c9   :  { %12757 = vmatprep.subr.bf16.mxu1 %v14448_v32 }
0x10cc   :  { %12759 = vmatpush3.bf16.msra.mxu1 %v14448_v32 }
0x10cd   :  { %12761 = vmatprep.subr.bf16.mxu1 %v14452_v35 }
0x10d0   :  { %12763 = vmatpush3.bf16.msra.mxu1 %v14452_v35 }
0x10d1   :  { %12765 = vmatprep.subr.bf16.mxu1 %v14424_v17 }
0x1166   :  { %v10222_v40 = vpop.f32.mrb[40].mxu1 }
0x1167   :  { %v5348_v41 = vpop.f32.mrb[41].mxu1  ;;  %v5360_v50 = vmax.f32 %v10222_v40, 0.0  ;;  %v6266_v40 = vld [vmem:[#allocation14] sm:$0xff] }
0x1168   :  { %v5359_v31 = vmax.f32 %v5348_v41, 0.0  ;;  %v6267_v41 = vld [vmem:[#allocation14 + $0x8] sm:$0xff] }
0x116a   :  { %10290 = vmatprep.mubr.f32.mxu1 %v5359_v31  ;;  %v14861_v31 = vpack.c.bf16 %v6267_v41, %v6266_v40 }
0x116b   :  { %10291 = vmatmul.mubr.f32.vlgmr.msra.gmra.mrb[44].mxu1 %v5360_v50 }
0x116c   :  { %12767 = vmatpush3.bf16.msra.mxu1 %v14424_v17 }
0x116d   :  { %12769 = vmatprep.subr.bf16.mxu1 %v14428_v6 }
0x1170   :  { %12771 = vmatpush3.bf16.msra.mxu1 %v14428_v6 }
0x1171   :  { %12773 = vmatprep.subr.bf16.mxu1 %v14432_v10 }
0x1174   :  { %12775 = vmatpush3.bf16.msra.mxu1 %v14432_v10 }
0x1175   :  { %12777 = vmatprep.subr.bf16.mxu1 %v14436_v14 }
0x1178   :  { %12779 = vmatpush3.bf16.msra.mxu1 %v14436_v14 }
0x1179   :  { %12781 = vmatprep.subr.bf16.mxu1 %v14440_v22 }
0x117c   :  { %12783 = vmatpush3.bf16.msra.mxu1 %v14440_v22 }
0x117d   :  { %12785 = vmatprep.subr.bf16.mxu1 %v14444_v25 }
0x1180   :  { %12787 = vmatpush3.bf16.msra.mxu1 %v14444_v25 }
0x1181   :  { %12789 = vmatprep.subr.bf16.mxu1 %v14448_v32 }
0x1184   :  { %12791 = vmatpush3.bf16.msra.mxu1 %v14448_v32 }
0x1185   :  { %12793 = vmatprep.subr.bf16.mxu1 %v14452_v35 }
0x1186   :  { %v10257_v59 = vpop.f32.mrb[42].mxu1 }
0x1187   :  { %v5427_v13 = vpop.f32.mrb[43].mxu1  ;;  %v5439_v36 = vmax.f32 %v10257_v59, 0.0  ;;  %v6268_v59 = vld [vmem:[#allocation14 + $0x10] sm:$0xff] }
0x1188   :  { %v5438_v28 = vmax.f32 %v5427_v13, 0.0  ;;  %12795 = vmatpush3.bf16.msra.mxu1 %v14452_v35  ;;  %v6269_v13 = vld [vmem:[#allocation14 + $0x18] sm:$0xff] }
0x118a   :  { %10325 = vmatprep.mubr.f32.mxu1 %v5438_v28 }
0x118b   :  { %10326 = vmatmul.mubr.f32.vlgmr.msra.gmra.mrb[46].mxu1 %v5439_v36 }
0x123e   :  { %v10292_v42 = vpop.f32.mrb[44].mxu1 }
0x123f   :  { %v5510_v43 = vpop.f32.mrb[45].mxu1  ;;  %v5522_v44 = vmax.f32 %v10292_v42, 0.0 }
0x1240   :  { %v5521_v61 = vmax.f32 %v5510_v43, 0.0  ;;  %v14864_v43 = vpack.c.bf16 %v6269_v13, %v6268_v59 }
0x1242   :  { %10360 = vmatprep.mubr.f32.mxu0 %v5521_v61  ;;  %v6270_v61 = vld [vmem:[#allocation14 + $0x20] sm:$0xff] }
0x1243   :  { %10361 = vmatmul.mubr.f32.vlgmr.msra.gmra.mrb[34].mxu0 %v5522_v44  ;;  %v6271_v44 = vld [vmem:[#allocation14 + $0x28] sm:$0xff] }
0x1244   :  { %12831 = vmatpush3.bf16.msra.mxu0 %v14424_v17 }
0x1245   :  { %12833 = vmatprep.subr.bf16.mxu0 %v14428_v6 }
0x1248   :  { %12835 = vmatpush3.bf16.msra.mxu0 %v14428_v6 }
0x1249   :  { %12837 = vmatprep.subr.bf16.mxu0 %v14432_v10 }
0x124c   :  { %12839 = vmatpush3.bf16.msra.mxu0 %v14432_v10 }
0x124d   :  { %12841 = vmatprep.subr.bf16.mxu0 %v14436_v14 }
0x1250   :  { %12843 = vmatpush3.bf16.msra.mxu0 %v14436_v14 }
0x1251   :  { %12845 = vmatprep.subr.bf16.mxu0 %v14440_v22 }
0x1254   :  { %12847 = vmatpush3.bf16.msra.mxu0 %v14440_v22 }
0x1255   :  { %12849 = vmatprep.subr.bf16.mxu0 %v14444_v25 }
0x1258   :  { %12851 = vmatpush3.bf16.msra.mxu0 %v14444_v25 }
0x1259   :  { %12853 = vmatprep.subr.bf16.mxu0 %v14448_v32 }
0x125c   :  { %12855 = vmatpush3.bf16.msra.mxu0 %v14448_v32 }
0x125d   :  { %12857 = vmatprep.subr.bf16.mxu0 %v14452_v35 }
0x125e   :  { %v10327_v45 = vpop.f32.mrb[46].mxu1 }
0x125f   :  { %v5589_v47 = vpop.f32.mrb[47].mxu1  ;;  %v5601_v18 = vmax.f32 %v10327_v45, 0.0  ;;  %v13092_v45 = vpack.c.bf16 %v6271_v44, %v6270_v61 }
0x1260   :  { %v5600_v48 = vmax.f32 %v5589_v47, 0.0  ;;  %12859 = vmatpush3.bf16.msra.mxu0 %v14452_v35  ;;  %v6272_v47 = vld [vmem:[#allocation14 + $0x30] sm:$0xff] }
0x1261   :  { %12861 = vmatprep.subr.bf16.mxu0 %v14424_v17 }
0x1262   :  { %10395 = vmatprep.mubr.f32.mxu0 %v5600_v48  ;;  %v6273_v48 = vld [vmem:[#allocation14 + $0x38] sm:$0xff] }
0x1263   :  { %10396 = vmatmul.mubr.f32.vlgmr.msra.gmra.mrb[36].mxu0 %v5601_v18  ;;  %v13096_v18 = vpack.c.bf16 %v6273_v48, %v6272_v47 }
0x1264   :  { %12863 = vmatpush3.bf16.msra.mxu0 %v14424_v17 }
0x1265   :  { %12865 = vmatprep.subr.bf16.mxu0 %v14428_v6 }
0x1268   :  { %12867 = vmatpush3.bf16.msra.mxu0 %v14428_v6 }
0x1269   :  { %12869 = vmatprep.subr.bf16.mxu0 %v14432_v10 }
0x126c   :  { %12871 = vmatpush3.bf16.msra.mxu0 %v14432_v10 }
0x126d   :  { %12873 = vmatprep.subr.bf16.mxu0 %v14436_v14 }
0x1270   :  { %12875 = vmatpush3.bf16.msra.mxu0 %v14436_v14 }
0x1271   :  { %12877 = vmatprep.subr.bf16.mxu0 %v14440_v22 }
0x1274   :  { %12879 = vmatpush3.bf16.msra.mxu0 %v14440_v22 }
0x1275   :  { %12881 = vmatprep.subr.bf16.mxu0 %v14444_v25 }
0x1278   :  { %12883 = vmatpush3.bf16.msra.mxu0 %v14444_v25 }
0x1279   :  { %12885 = vmatprep.subr.bf16.mxu0 %v14448_v32 }
0x127c   :  { %12887 = vmatpush3.bf16.msra.mxu0 %v14448_v32 }
0x127d   :  { %12889 = vmatprep.subr.bf16.mxu0 %v14452_v35 }
0x1280   :  { %12891 = vmatpush3.bf16.msra.mxu0 %v14452_v35 }
0x1281   :  { %12893 = vmatprep.subr.bf16.mxu0 %v14424_v17 }
0x1316   :  { %v10362_v19 = vpop.f32.mrb[34].mxu0 }
0x1317   :  { %v5672_v20 = vpop.f32.mrb[35].mxu0  ;;  %v5684_v49 = vmax.f32 %v10362_v19, 0.0  ;;  %v6274_v19 = vld [vmem:[#allocation14 + $0x40] sm:$0xff] }
0x1318   :  { %v5683_v21 = vmax.f32 %v5672_v20, 0.0  ;;  %v6275_v20 = vld [vmem:[#allocation14 + $0x48] sm:$0xff] }
0x131a   :  { %10430 = vmatprep.mubr.f32.mxu0 %v5683_v21  ;;  %v13100_v21 = vpack.c.bf16 %v6275_v20, %v6274_v19 }
0x131b   :  { %10431 = vmatmul.mubr.f32.vlgmr.msra.gmra.mrb[38].mxu0 %v5684_v49  ;;  %v6276_v49 = vld [vmem:[#allocation14 + $0x50] sm:$0xff] }
0x131c   :  { %12895 = vmatpush3.bf16.msra.mxu0 %v14424_v17 }
0x131d   :  { %12897 = vmatprep.subr.bf16.mxu0 %v14428_v6 }
0x1320   :  { %12899 = vmatpush3.bf16.msra.mxu0 %v14428_v6 }
0x1321   :  { %12901 = vmatprep.subr.bf16.mxu0 %v14432_v10 }
0x1324   :  { %12903 = vmatpush3.bf16.msra.mxu0 %v14432_v10 }
0x1325   :  { %12905 = vmatprep.subr.bf16.mxu0 %v14436_v14 }
0x1328   :  { %12907 = vmatpush3.bf16.msra.mxu0 %v14436_v14 }
0x1329   :  { %12909 = vmatprep.subr.bf16.mxu0 %v14440_v22 }
0x132c   :  { %12911 = vmatpush3.bf16.msra.mxu0 %v14440_v22 }
0x132d   :  { %12913 = vmatprep.subr.bf16.mxu0 %v14444_v25 }
0x1330   :  { %12915 = vmatpush3.bf16.msra.mxu0 %v14444_v25 }
0x1331   :  { %12917 = vmatprep.subr.bf16.mxu0 %v14448_v32 }
0x1334   :  { %12919 = vmatpush3.bf16.msra.mxu0 %v14448_v32 }
0x1335   :  { %12921 = vmatprep.subr.bf16.mxu0 %v14452_v35 }
0x1336   :  { %v10397_v51 = vpop.f32.mrb[36].mxu0 }
0x1337   :  { %v5751_v52 = vpop.f32.mrb[37].mxu0  ;;  %v5763_v54 = vmax.f32 %v10397_v51, 0.0  ;;  %v6277_v51 = vld [vmem:[#allocation14 + $0x58] sm:$0xff] }
0x1338   :  { %v5762_v53 = vmax.f32 %v5751_v52, 0.0  ;;  %12923 = vmatpush3.bf16.msra.mxu0 %v14452_v35  ;;  %v13104_v52 = vpack.c.bf16 %v6277_v51, %v6276_v49 }
0x1339   :  { %12925 = vmatprep.subr.bf16.mxu0 %v14424_v17 }
0x133a   :  { %10465 = vmatprep.mubr.f32.mxu0 %v5762_v53  ;;  %v6278_v53 = vld [vmem:[#allocation14 + $0x60] sm:$0xff] }
0x133b   :  { %10466 = vmatmul.mubr.f32.vlgmr.msra.gmra.mrb[40].mxu0 %v5763_v54  ;;  %v6279_v54 = vld [vmem:[#allocation14 + $0x68] sm:$0xff] }
0x133c   :  { %12927 = vmatpush3.bf16.msra.mxu0 %v14424_v17 }
0x133d   :  { %12929 = vmatprep.subr.bf16.mxu0 %v14428_v6 }
0x1340   :  { %12931 = vmatpush3.bf16.msra.mxu0 %v14428_v6 }
0x1341   :  { %12933 = vmatprep.subr.bf16.mxu0 %v14432_v10 }
0x1344   :  { %12935 = vmatpush3.bf16.msra.mxu0 %v14432_v10 }
0x1345   :  { %12937 = vmatprep.subr.bf16.mxu0 %v14436_v14 }
0x1348   :  { %12939 = vmatpush3.bf16.msra.mxu0 %v14436_v14 }
0x1349   :  { %12941 = vmatprep.subr.bf16.mxu0 %v14440_v22 }
0x134c   :  { %12943 = vmatpush3.bf16.msra.mxu0 %v14440_v22 }
0x134d   :  { %12945 = vmatprep.subr.bf16.mxu0 %v14444_v25 }
0x1350   :  { %12947 = vmatpush3.bf16.msra.mxu0 %v14444_v25 }
0x1351   :  { %12949 = vmatprep.subr.bf16.mxu0 %v14448_v32 }
0x1354   :  { %12951 = vmatpush3.bf16.msra.mxu0 %v14448_v32 }
0x1355   :  { %12953 = vmatprep.subr.bf16.mxu0 %v14452_v35 }
0x1358   :  { %12955 = vmatpush3.bf16.msra.mxu0 %v14452_v35 }
0x1359   :  { %12957 = vmatprep.subr.bf16.mxu0 %v14424_v17 }
0x13ee   :  { %v10432_v55 = vpop.f32.mrb[38].mxu0 }
0x13ef   :  { %v5834_v57 = vpop.f32.mrb[39].mxu0  ;;  %v5846_v60 = vmax.f32 %v10432_v55, 0.0  ;;  %v13108_v55 = vpack.c.bf16 %v6279_v54, %v6278_v53 }
0x13f0   :  { %v5845_v58 = vmax.f32 %v5834_v57, 0.0 }
0x13f2   :  { %10500 = vmatprep.mubr.f32.mxu0 %v5845_v58 }
0x13f3   :  { %10501 = vmatmul.mubr.f32.vlgmr.msra.gmra.mrb[42].mxu0 %v5846_v60  ;;  %v6280_v60 = vld [vmem:[#allocation14 + $0x70] sm:$0xff] }
0x13f4   :  { %12959 = vmatpush3.bf16.msra.mxu0 %v14424_v17 }
0x13f5   :  { %12961 = vmatprep.subr.bf16.mxu0 %v14428_v6 }
0x13f8   :  { %12963 = vmatpush3.bf16.msra.mxu0 %v14428_v6 }
0x13f9   :  { %12965 = vmatprep.subr.bf16.mxu0 %v14432_v10 }
0x13fc   :  { %12967 = vmatpush3.bf16.msra.mxu0 %v14432_v10 }
0x13fd   :  { %12969 = vmatprep.subr.bf16.mxu0 %v14436_v14 }
0x1400   :  { %12971 = vmatpush3.bf16.msra.mxu0 %v14436_v14 }
0x1401   :  { %12973 = vmatprep.subr.bf16.mxu0 %v14440_v22 }
0x1404   :  { %12975 = vmatpush3.bf16.msra.mxu0 %v14440_v22 }
0x1405   :  { %12977 = vmatprep.subr.bf16.mxu0 %v14444_v25 }
0x1408   :  { %12979 = vmatpush3.bf16.msra.mxu0 %v14444_v25 }
0x1409   :  { %12981 = vmatprep.subr.bf16.mxu0 %v14448_v32 }
0x140c   :  { %12983 = vmatpush3.bf16.msra.mxu0 %v14448_v32 }
0x140d   :  { %12985 = vmatprep.subr.bf16.mxu0 %v14452_v35 }
0x140e   :  { %v10467_v62 = vpop.f32.mrb[40].mxu0 }
0x140f   :  { %v5913_v63 = vpop.f32.mrb[41].mxu0  ;;  %v5925_v2 = vmax.f32 %v10467_v62, 0.0  ;;  %v6281_v62 = vld [vmem:[#allocation14 + $0x78] sm:$0xff] }
0x1410   :  { %v5924_v1 = vmax.f32 %v5913_v63, 0.0  ;;  %12987 = vmatpush3.bf16.msra.mxu0 %v14452_v35  ;;  %v13112_v63 = vpack.c.bf16 %v6281_v62, %v6280_v60 }
0x1411   :  { %12989 = vmatprep.subr.bf16.mxu0 %v14424_v17 }
0x1412   :  { %10535 = vmatprep.mubr.f32.mxu0 %v5924_v1 }
0x1413   :  { %10536 = vmatmul.mubr.f32.vlgmr.msra.gmra.mrb[44].mxu0 %v5925_v2 }
0x1414   :  { %12991 = vmatpush3.bf16.msra.mxu0 %v14424_v17 }
0x1415   :  { %12993 = vmatprep.subr.bf16.mxu0 %v14428_v6 }
0x1418   :  { %12995 = vmatpush3.bf16.msra.mxu0 %v14428_v6 }
0x1419   :  { %12997 = vmatprep.subr.bf16.mxu0 %v14432_v10 }
0x141c   :  { %12999 = vmatpush3.bf16.msra.mxu0 %v14432_v10 }
0x141d   :  { %13001 = vmatprep.subr.bf16.mxu0 %v14436_v14 }
0x1420   :  { %13003 = vmatpush3.bf16.msra.mxu0 %v14436_v14 }
0x1421   :  { %13005 = vmatprep.subr.bf16.mxu0 %v14440_v22 }
0x1424   :  { %13007 = vmatpush3.bf16.msra.mxu0 %v14440_v22 }
0x1425   :  { %13009 = vmatprep.subr.bf16.mxu0 %v14444_v25 }
0x1428   :  { %13011 = vmatpush3.bf16.msra.mxu0 %v14444_v25 }
0x1429   :  { %13013 = vmatprep.subr.bf16.mxu0 %v14448_v32 }
0x142c   :  { %13015 = vmatpush3.bf16.msra.mxu0 %v14448_v32 }
0x142d   :  { %13017 = vmatprep.subr.bf16.mxu0 %v14452_v35 }
0x1430   :  { %13019 = vmatpush3.bf16.msra.mxu0 %v14452_v35 }
0x1431   :  { %13021 = vmatprep.subr.bf16.mxu0 %v14424_v17 }
0x14c6   :  { %v10502_v3 = vpop.f32.mrb[42].mxu0 }
0x14c7   :  { %v5996_v4 = vpop.f32.mrb[43].mxu0  ;;  %v6008_v37 = vmax.f32 %v10502_v3, 0.0 }
0x14c8   :  { %v6007_v30 = vmax.f32 %v5996_v4, 0.0 }
0x14ca   :  { %10570 = vmatprep.mubr.f32.mxu0 %v6007_v30 }
0x14cb   :  { %10571 = vmatmul.mubr.f32.vlgmr.msra.gmra.mrb[46].mxu0 %v6008_v37 }
0x14cc   :  { %13023 = vmatpush3.bf16.msra.mxu0 %v14424_v17  ;;  %v6250_v17 = vld [vmem:[#allocation12] sm:$0xff] }
0x14cd   :  { %13025 = vmatprep.subr.bf16.mxu0 %v14428_v6 }
0x14d0   :  { %13027 = vmatpush3.bf16.msra.mxu0 %v14428_v6  ;;  %v6251_v6 = vld [vmem:[#allocation12 + $0x8] sm:$0xff] }
0x14d1   :  { %13029 = vmatprep.subr.bf16.mxu0 %v14432_v10 }
0x14d4   :  { %13031 = vmatpush3.bf16.msra.mxu0 %v14432_v10  ;;  %v14828_v10 = vpack.c.bf16 %v6251_v6, %v6250_v17 }
0x14d5   :  { %13033 = vmatprep.subr.bf16.mxu0 %v14436_v14 }
0x14d8   :  { %13035 = vmatpush3.bf16.msra.mxu0 %v14436_v14  ;;  %v6252_v14 = vld [vmem:[#allocation12 + $0x10] sm:$0xff] }
0x14d9   :  { %13037 = vmatprep.subr.bf16.mxu0 %v14440_v22 }
0x14dc   :  { %13039 = vmatpush3.bf16.msra.mxu0 %v14440_v22 }
0x14dd   :  { %13041 = vmatprep.subr.bf16.mxu0 %v14444_v25 }
0x14e0   :  { %13043 = vmatpush3.bf16.msra.mxu0 %v14444_v25  ;;  %v14832_v25 = vpack.c.bf16 %v6253_v56, %v6252_v14 }
0x14e1   :  { %13045 = vmatprep.subr.bf16.mxu0 %v14448_v32 }
0x14e4   :  { %13047 = vmatpush3.bf16.msra.mxu0 %v14448_v32  ;;  %v14836_v32 = vpack.c.bf16 %v6255_v5, %v6254_v26 }
0x14e5   :  { %13049 = vmatprep.subr.bf16.mxu0 %v14452_v35 }
0x14e6   :  { %v10537_v46 = vpop.f32.mrb[44].mxu0 }
0x14e7   :  { %v6075_v0 = vpop.f32.mrb[45].mxu0  ;;  %v6087_v22 = vmax.f32 %v10537_v46, 0.0 }
0x14e8   :  { %v6086_v9 = vmax.f32 %v6075_v0, 0.0  ;;  %13051 = vmatpush3.bf16.msra.mxu0 %v14452_v35  ;;  %v14840_v35 = vpack.c.bf16 %v6257_v8, %v6256_v7 }
0x14e9   :  { %13053 = vmatprep.subr.bf16.mxu0 %v14828_v10 }
0x14ea   :  { %10605 = vmatprep.mubr.f32.mxu0 %v6086_v9 }
0x14eb   :  { %10606 = vmatmul.mubr.f32.vlgmr.msra.gmra.mrb[48].mxu0 %v6087_v22 }
0x14ec   :  { %13055 = vmatpush3.bf16.msra.mxu0 %v14828_v10 }
0x14ed   :  { %13057 = vmatprep.subr.bf16.mxu0 %v14832_v25 }
0x14f0   :  { %13059 = vmatpush3.bf16.msra.mxu0 %v14832_v25 }
0x14f1   :  { %13061 = vmatprep.subr.bf16.mxu0 %v14836_v32 }
0x14f4   :  { %13063 = vmatpush3.bf16.msra.mxu0 %v14836_v32 }
0x14f5   :  { %13065 = vmatprep.subr.bf16.mxu0 %v14840_v35 }
0x14f8   :  { %13067 = vmatpush3.bf16.msra.mxu0 %v14840_v35 }
0x14f9   :  { %13069 = vmatprep.subr.bf16.mxu0 %v14844_v15 }
0x14fc   :  { %13071 = vmatpush3.bf16.msra.mxu0 %v14844_v15 }
0x14fd   :  { %13073 = vmatprep.subr.bf16.mxu0 %v14848_v24 }
0x1500   :  { %13075 = vmatpush3.bf16.msra.mxu0 %v14848_v24 }
0x1501   :  { %13077 = vmatprep.subr.bf16.mxu0 %v14852_v33 }
0x1504   :  { %13079 = vmatpush3.bf16.msra.mxu0 %v14852_v33 }
0x1505   :  { %13081 = vmatprep.subr.bf16.mxu0 %v14857_v39 }
0x1508   :  { %13083 = vmatpush3.bf16.msra.mxu0 %v14857_v39 }
0x1509   :  { %13085 = vmatprep.subr.bf16.mxu0 %v14861_v31 }
0x159e   :  { %v10572_v50 = vpop.f32.mrb[46].mxu0 }
0x159f   :  { %v6158_v28 = vpop.f32.mrb[47].mxu0  ;;  %v6170_v42 = vmax.f32 %v10572_v50, 0.0 }
0x15a0   :  { %v6169_v36 = vmax.f32 %v6158_v28, 0.0 }
0x15a2   :  { %10640 = vmatprep.mubr.f32.mxu0 %v6169_v36 }
0x15a3   :  { %10641 = vmatmul.mubr.f32.vlgmr.msra.gmra.mrb[52].mxu0 %v6170_v42 }
0x15a4   :  { %13087 = vmatpush3.bf16.msra.mxu0 %v14861_v31 }
0x15a5   :  { %13089 = vmatprep.subr.bf16.mxu0 %v14864_v43 }
0x15a8   :  { %13091 = vmatpush3.bf16.msra.mxu0 %v14864_v43 }
0x15a9   :  { %13093 = vmatprep.subr.bf16.mxu0 %v13092_v45 }
0x15ac   :  { %13095 = vmatpush3.bf16.msra.mxu0 %v13092_v45 }
0x15ad   :  { %13097 = vmatprep.subr.bf16.mxu0 %v13096_v18 }
0x15b0   :  { %13099 = vmatpush3.bf16.msra.mxu0 %v13096_v18 }
0x15b1   :  { %13101 = vmatprep.subr.bf16.mxu0 %v13100_v21 }
0x15b4   :  { %13103 = vmatpush3.bf16.msra.mxu0 %v13100_v21 }
0x15b5   :  { %13105 = vmatprep.subr.bf16.mxu0 %v13104_v52 }
0x15b8   :  { %13107 = vmatpush3.bf16.msra.mxu0 %v13104_v52 }
0x15b9   :  { %13109 = vmatprep.subr.bf16.mxu0 %v13108_v55 }
0x15bc   :  { %13111 = vmatpush3.bf16.msra.mxu0 %v13108_v55 }
0x15bd   :  { %13113 = vmatprep.subr.bf16.mxu0 %v13112_v63 }
0x15be   :  { %v10607_v57 = vpop.f32.mrb[48].mxu0 }
0x15bf   :  { %v6237_v58 = vpop.f32.mrb[49].mxu0  ;;  %v6249_v37 = vmax.f32 %v10607_v57, 0.0 }
0x15c0   :  { %13115 = vmatpush3.bf16.msra.mxu0 %v13112_v63  ;;  %v6248_v30 = vmax.f32 %v6237_v58, 0.0 }
0x15c1   :  { %13117 = vmatprep.subr.bf16.mxu0 %v14828_v10 }
0x1676   :  { %v10642_v1 = vpop.f32.mrb[52].mxu0 }
0x1677   :  { %v6348_v2 = vpop.f32.mrb[53].mxu0  ;;  %v6358_v4 = vmax.f32 %v10642_v1, 0.0 }
0x1678   :  { %v6357_v3 = vmax.f32 %v6348_v2, 0.0 }
0x167a   :  { %10675 = vmatprep.mubr.f32.mxu0 %v6357_v3 }
0x167b   :  { %10676 = vmatmul.mubr.f32.vlgmr.msra.gmra.mrb[54].mxu0 %v6358_v4 }
0x167c   :  { %13119 = vmatpush3.bf16.msra.mxu0 %v14828_v10  ;;  %10710 = vmatprep.mubr.f32.mxu0 %v6248_v30 }
0x167d   :  { %13121 = vmatprep.subr.bf16.mxu0 %v14832_v25 }
0x1680   :  { %13123 = vmatpush3.bf16.msra.mxu0 %v14832_v25 }
0x1681   :  { %13125 = vmatprep.subr.bf16.mxu0 %v14836_v32 }
0x1684   :  { %13127 = vmatpush3.bf16.msra.mxu0 %v14836_v32 }
0x1685   :  { %13129 = vmatprep.subr.bf16.mxu0 %v14840_v35 }
0x1688   :  { %13131 = vmatpush3.bf16.msra.mxu0 %v14840_v35 }
0x1689   :  { %13133 = vmatprep.subr.bf16.mxu0 %v14844_v15 }
0x168c   :  { %13135 = vmatpush3.bf16.msra.mxu0 %v14844_v15 }
0x168d   :  { %13137 = vmatprep.subr.bf16.mxu0 %v14848_v24 }
0x1690   :  { %13139 = vmatpush3.bf16.msra.mxu0 %v14848_v24 }
0x1691   :  { %13141 = vmatprep.subr.bf16.mxu0 %v14852_v33 }
0x1694   :  { %13143 = vmatpush3.bf16.msra.mxu0 %v14852_v33 }
0x1695   :  { %13145 = vmatprep.subr.bf16.mxu0 %v14857_v39 }
0x1698   :  { %13147 = vmatpush3.bf16.msra.mxu0 %v14857_v39 }
0x1699   :  { %13149 = vmatprep.subr.bf16.mxu0 %v14861_v31 }
0x169b   :  { %10711 = vmatmul.mubr.f32.vlgmr.msra.gmra.mrb[56].mxu0 %v6249_v37 }
0x169c   :  { %13151 = vmatpush3.bf16.msra.mxu0 %v14861_v31 }
0x169d   :  { %13153 = vmatprep.subr.bf16.mxu0 %v14864_v43 }
0x16a0   :  { %13155 = vmatpush3.bf16.msra.mxu0 %v14864_v43 }
0x16a1   :  { %13157 = vmatprep.subr.bf16.mxu0 %v13092_v45 }
0x16a4   :  { %13159 = vmatpush3.bf16.msra.mxu0 %v13092_v45 }
0x16a5   :  { %13161 = vmatprep.subr.bf16.mxu0 %v13096_v18 }
0x16a8   :  { %13163 = vmatpush3.bf16.msra.mxu0 %v13096_v18 }
0x16a9   :  { %13165 = vmatprep.subr.bf16.mxu0 %v13100_v21 }
0x16ac   :  { %13167 = vmatpush3.bf16.msra.mxu0 %v13100_v21 }
0x16ad   :  { %13169 = vmatprep.subr.bf16.mxu0 %v13104_v52 }
0x16b0   :  { %13171 = vmatpush3.bf16.msra.mxu0 %v13104_v52 }
0x16b1   :  { %13173 = vmatprep.subr.bf16.mxu0 %v13108_v55 }
0x16b4   :  { %13175 = vmatpush3.bf16.msra.mxu0 %v13108_v55 }
0x16b5   :  { %13177 = vmatprep.subr.bf16.mxu0 %v13112_v63 }
0x16b8   :  { %13179 = vmatpush3.bf16.msra.mxu0 %v13112_v63 }
0x174e   :  { %v10677_v17 = vpop.f32.mrb[54].mxu0 }
0x174f   :  { %6435 = vst [vmem:[#allocation15 + $0x8] sm:$0xff] %v10677_v17  ;;  %v6425_v6 = vpop.f32.mrb[55].mxu0 }
0x1750   :  { %6434 = vst [vmem:[#allocation15] sm:$0xff] %v6425_v6 }
0x176e   :  { %v10712_v10 = vpop.f32.mrb[56].mxu0 }
0x176f   :  { %v6502_v46 = vpop.f32.mrb[57].mxu0  ;;  %v6512_v56 = vmax.f32 %v10712_v10, 0.0 }
0x1770   :  { %v6511_v14 = vmax.f32 %v6502_v46, 0.0 }
0x1772   :  { %10745 = vmatprep.mubr.f32.mxu0 %v6511_v14 }
0x1773   :  { %10746 = vmatmul.mubr.f32.vlgmr.msra.gmra.mrb[58].mxu0 %v6512_v56 }
0x1846   :  { %v10747_v0 = vpop.f32.mrb[58].mxu0 }
0x1847   :  { %6589 = vst [vmem:[#allocation15 + $0x18] sm:$0xff] %v10747_v0  ;;  %v6579_v9 = vpop.f32.mrb[59].mxu0 }
0x1848   :  { %6588 = vst [vmem:[#allocation15 + $0x10] sm:$0xff] %v6579_v9 }
0x1849   :  { %13444 = shalt.err (!%p13441_p4)
}
0x184a   :  { %s13445_s27 = scalar_lea.hbm %s14911_s7, 512 }
0x184b   :  { %p13446_p5 = scmp.ne.s32.totalorder %s14911_s7, %s13445_s27  ;;  %p13449_p6 = scmp.lt.u32.totalorder %s13445_s27, %s14911_s7 }
0x184d   :  { %p13451_p7 = pnand %p13449_p6, %p13446_p5 }
0x184f   :  { %13454 = shalt.err (!%p13451_p7)
}
0x1850   :  { %6601 = dma.vmem_to_hbm [thread:$0]  %s6596_s16, 512, %s14911_s7, [#allocation5], %s13467_s13, %s13467_s13, %s13468_s14  }
0x1851   :  { %13463 = dma.done.wait [#allocation5], 512  }
0x1852   :  { %13464 = vsyncadd [#allocation5], 4294966784 }
0x1853   :  { %6605 = vsyncpa [#allocation4], 1 }
0x1854   :  { %6606 = vsyncpa [#allocation7], 1 }
0x1855   :  { %6607 = vsyncpa [#allocation10], 1 }
0x1856   :  { %6608 = vsyncpa [#allocation13], 1 }
0x1857   :  { %6609 = vsyncpa [#allocation5], 1 }

</bundles_post_ra>
